<compile_context>
chip_gen: v7x
topology: tpu7x:2x2x1
jax: 0.10.0
libtpu: 0.0.40
codegen_flags: <defaults>
</compile_context>

<pallas_src>
import numpy as np

import jax
import jax.numpy as jnp
from jax import lax
from jax.experimental import pallas as pl
from jax.experimental.pallas import tpu as pltpu

EPS = 1e-5  # torch.nn.InstanceNorm2d default


# ----------------------------------------------------------------------------
# Fused kernel
# ----------------------------------------------------------------------------
def lenet_kernel(x_ref,
                 m1_ref, cb1_ref, s1_ref, s1t_ref, eo1_ref, aa1_ref,
                 m2_ref, cb2_ref, s2_ref, s2t_ref, eo2_ref, aa2_ref,
                 w1_ref, b1_ref, w2_ref, b2_ref, w3_ref, b3_ref,
                 out_ref):
    """Full INormLeNet5 forward for one batch tile.

    x_ref:   (BT, H, W*Cin)  bf16   image tile, channels-last-in-lanes
    m*_ref:  (K, Win*Cin, Wo*Cout)  bf16   banded conv matrices (one per kh)
    cb*_ref: (1, Wo*Cout)    f32    conv bias broadcast along lanes
    s*_ref:  (Wo*Cout, Cout) f32    per-channel sum selector (instance norm)
    s*t_ref: (Cout, Wo*Cout) f32    its transpose (broadcast back)
    eo*_ref: (2, Ho/2, Ho)   bf16   even/odd row (sublane) pool selectors
    aa*_ref: (2, Wo*Cout, Wo/2*Cout) bf16  even/odd column-group pool selectors
    w1_ref:  (5, 80, 120)    bf16   fc1 weight regrouped so no in-kernel flatten
    w2_ref:  (120, 84) bf16, w3_ref: (84, 128) bf16 (zero-padded classes)
    b*_ref:  f32 bias rows
    out_ref: (1, BT, 128)    f32    lane-dense logits slab
    """
    f32 = jnp.float32
    bf16 = jnp.bfloat16
    bt = x_ref.shape[0]

    # ---- hoist every resident operand load out of the per-image loop --------
    def load_stage(m_ref, cb_ref, s_ref, st_ref, eo_ref, aa_ref):
        return dict(
            m=[m_ref[kh] for kh in range(m_ref.shape[0])],
            cb=cb_ref[...],
            s=s_ref[...], st=st_ref[...],
            eo0=eo_ref[0], eo1=eo_ref[1],
            aa0=aa_ref[0], aa1=aa_ref[1],
            ho=eo_ref.shape[-1], cout=s_ref.shape[1],
        )

    stage1 = load_stage(m1_ref, cb1_ref, s1_ref, s1t_ref, eo1_ref, aa1_ref)
    stage2 = load_stage(m2_ref, cb2_ref, s2_ref, s2t_ref, eo2_ref, aa2_ref)
    w1h = [w1_ref[h] for h in range(w1_ref.shape[0])]
    b1 = b1_ref[...]
    w2 = w2_ref[...]
    b2 = b2_ref[...]
    w3 = w3_ref[...]
    b3 = b3_ref[...]

    def conv_in_relu_pool(img_bf, st):
        m = st["m"]
        ho = st["ho"]
        cout = st["cout"]
        wo = st["s"].shape[0] // cout
        inv_area = 1.0 / float(ho * wo)

        # ---- conv (VALID, stride 1) as K banded matmuls, f32 accumulation ----
        y = jnp.dot(img_bf[0:ho, :], m[0], preferred_element_type=f32)
        for kh in range(1, len(m)):
            y = y + jnp.dot(img_bf[kh:kh + ho, :], m[kh],
                            preferred_element_type=f32)
        y = y + st["cb"]                                   # (ho, wo*cout)

        # ---- InstanceNorm2d (per channel over ho*wo, biased var) ------------
        # One selector matmul for [row-sum; row-sum-of-squares] -> per-channel
        # stats, one matmul to broadcast [mean; inv_std] back across lanes.
        rows = jnp.concatenate(
            [jnp.sum(y, axis=0, keepdims=True),
             jnp.sum(y * y, axis=0, keepdims=True)], axis=0)       # (2, wo*cout)
        stats = jnp.dot(rows, st["s"], preferred_element_type=f32) * inv_area
        mean, ex2 = stats[0:1], stats[1:2]                          # (1, cout)
        inv_std = lax.rsqrt(ex2 - mean * mean + EPS)
        bcast = jnp.dot(jnp.concatenate([mean, inv_std], axis=0),
                        st["st"], preferred_element_type=f32)       # (2, wo*cout)

        # ---- ReLU -----------------------------------------------------------
        a = jnp.maximum((y - bcast[0:1]) * bcast[1:2], 0.0).astype(bf16)

        # ---- 2x2 max-pool: sublane pairs, then lane (column-group) pairs ----
        ph = jnp.maximum(
            jnp.dot(st["eo0"], a, preferred_element_type=f32),
            jnp.dot(st["eo1"], a, preferred_element_type=f32)).astype(bf16)
        return jnp.maximum(
            jnp.dot(ph, st["aa0"], preferred_element_type=f32),
            jnp.dot(ph, st["aa1"], preferred_element_type=f32))  # (ho/2, wo/2*cout) f32

    # per-image conv stages (small, fully unrolled over the batch tile)
    feats = []
    for b in range(bt):
        p1 = conv_in_relu_pool(x_ref[b], stage1)                  # (14, 84)
        p2 = conv_in_relu_pool(p1.astype(bf16), stage2)           # (5, 80)
        feats.append(p2)

    # ---- fc1: contraction split per spatial row h, so the (5, 80) feature map
    #      never needs an in-kernel flatten/reshape; batch tile shares the matmul.
    nh = len(w1h)
    h1 = None
    for h in range(nh):
        xh = jnp.concatenate([feats[b][h:h + 1, :] for b in range(bt)],
                             axis=0).astype(bf16)                 # (bt, 80)
        part = jnp.dot(xh, w1h[h], preferred_element_type=f32)
        h1 = part if h1 is None else h1 + part
    h1 = jnp.maximum(h1 + b1, 0.0).astype(bf16)                   # (bt, 120)
    h2 = jnp.maximum(jnp.dot(h1, w2, preferred_element_type=f32) + b2,
                     0.0).astype(bf16)                            # (bt, 84)
    out_ref[0] = jnp.dot(h2, w3, preferred_element_type=f32) + b3  # (bt, 128)


# ----------------------------------------------------------------------------
# Host-side (one-time) operand preparation: pure numpy, no per-forward cost.
# ----------------------------------------------------------------------------
def _band_matrices(w_oihw, w_in):
    """M[kh, w*Cin+c, wo*Cout+o] = w[o, c, kh, w-wo] for 0 <= w-wo < K."""
    cout, cin, k, _ = w_oihw.shape
    wo = w_in - k + 1
    m = np.zeros((k, w_in * cin, wo * cout), np.float32)
    for kh in range(k):
        blk = np.transpose(w_oihw[:, :, kh, :], (2, 1, 0)).reshape(k * cin, cout)
        for j in range(wo):
            m[kh, j * cin:j * cin + k * cin, j * cout:(j + 1) * cout] = blk
    return m


def _row_pool_selectors(ho):
    ho2 = ho // 2
    sel = np.zeros((2, ho2, ho), np.float32)
    sel[0, np.arange(ho2), 2 * np.arange(ho2)] = 1.0
    sel[1, np.arange(ho2), 2 * np.arange(ho2) + 1] = 1.0
    return sel


def _col_pool_selectors(wo, cout):
    wo2 = wo // 2
    sel = np.zeros((2, wo * cout, wo2 * cout), np.float32)
    for j in range(wo2):
        for o in range(cout):
            sel[0, (2 * j) * cout + o, j * cout + o] = 1.0
            sel[1, (2 * j + 1) * cout + o, j * cout + o] = 1.0
    return sel


def _channel_sum(wo, cout):
    return np.tile(np.eye(cout, dtype=np.float32), (wo, 1))      # (wo*cout, cout)


def prepare_operands(params, h=32, w=32):
    """Rearrange PyTorch-layout params into the kernel's resident operands."""
    (w1, b1, w2, b2, fw1, fb1, fw2, fb2, fw3, fb3) = [
        np.asarray(p, np.float32) for p in params]
    cin, c1, c2 = w1.shape[1], w1.shape[0], w2.shape[0]
    ncls = fw3.shape[0]
    k = w1.shape[2]
    ho1, wo1 = h - k + 1, w - k + 1                   # 28, 28
    h1p, w1p = ho1 // 2, wo1 // 2                     # 14, 14
    ho2, wo2 = h1p - k + 1, w1p - k + 1               # 10, 10
    h2p, w2p = ho2 // 2, wo2 // 2                     # 5, 5

    bf, f32 = jnp.bfloat16, jnp.float32

    m1 = jnp.asarray(_band_matrices(w1, w), bf)                    # (5, 96, 168)
    cb1 = jnp.asarray(np.tile(b1, wo1)[None, :], f32)              # (1, 168)
    s1 = jnp.asarray(_channel_sum(wo1, c1), f32)                   # (168, 6)
    s1t = jnp.asarray(_channel_sum(wo1, c1).T, f32)                # (6, 168)
    eo1 = jnp.asarray(_row_pool_selectors(ho1), bf)                # (2, 14, 28)
    aa1 = jnp.asarray(_col_pool_selectors(wo1, c1), bf)            # (2, 168, 84)

    m2 = jnp.asarray(_band_matrices(w2, w1p), bf)                  # (5, 84, 160)
    cb2 = jnp.asarray(np.tile(b2, wo2)[None, :], f32)              # (1, 160)
    s2 = jnp.asarray(_channel_sum(wo2, c2), f32)                   # (160, 16)
    s2t = jnp.asarray(_channel_sum(wo2, c2).T, f32)                # (16, 160)
    eo2 = jnp.asarray(_row_pool_selectors(ho2), bf)                # (2, 5, 10)
    aa2 = jnp.asarray(_col_pool_selectors(wo2, c2), bf)            # (2, 160, 80)

    # fc1 weight regrouped to [h, w*C2+c, j] so the kernel's (h, w*C2+c) pooled
    # activation can be contracted directly (PyTorch flatten order is (c, h, w)).
    w1h = jnp.asarray(
        fw1.reshape(-1, c2, h2p, w2p).transpose(2, 3, 1, 0).reshape(h2p, w2p * c2, -1),
        bf)                                                        # (5, 80, 120)
    fb1r = jnp.asarray(fb1[None, :], f32)
    w2t = jnp.asarray(fw2.T, bf)                                   # (120, 84)
    fb2r = jnp.asarray(fb2[None, :], f32)

    ncol = ((ncls + 127) // 128) * 128                              # lane-dense logits
    w3p = np.zeros((fw3.shape[1], ncol), np.float32)
    w3p[:, :ncls] = fw3.T
    fb3p = np.zeros((1, ncol), np.float32)
    fb3p[0, :ncls] = fb3

    ops = (m1, cb1, s1, s1t, eo1, aa1, m2, cb2, s2, s2t, eo2, aa2,
           w1h, fb1r, jnp.asarray(w2t, bf), fb2r,
           jnp.asarray(w3p, bf), jnp.asarray(fb3p, f32))
    return ops, ncls


# ----------------------------------------------------------------------------
# Forward wrapper
# ----------------------------------------------------------------------------
def _const_spec(arr):
    rank = arr.ndim
    return pl.BlockSpec(arr.shape, lambda *_, _r=rank: (0,) * _r)


def lenet5_forward(x, prepared, batch_tile=None):
    """x: (N, Cin, 32, 32) f32 NCHW.  Returns logits (N, n_classes) f32."""
    ops, ncls = prepared
    n, cin, h, w = x.shape
    if batch_tile is None:
        batch_tile = max(d for d in range(1, min(n, 8) + 1) if n % d == 0)
    bt = batch_tile
    assert n % bt == 0
    g = n // bt
    ncol = ops[-1].shape[1]

    # NCHW -> per-image lane-dense (H, W*Cin), bf16 (halves the input DMA)
    x2d = jnp.transpose(x, (0, 2, 3, 1)).reshape(n, h, w * cin).astype(jnp.bfloat16)

    out = pl.pallas_call(
        lenet_kernel,
        out_shape=jax.ShapeDtypeStruct((g, bt, ncol), jnp.float32),
        grid=(g,),
        in_specs=[pl.BlockSpec((bt, h, w * cin), lambda i: (i, 0, 0))]
                 + [_const_spec(op) for op in ops],
        out_specs=pl.BlockSpec((1, bt, ncol), lambda i: (i, 0, 0)),
        compiler_params=pltpu.CompilerParams(dimension_semantics=("parallel",)),
    )(x2d, *ops)

    return out.reshape(n, ncol)[:, :ncls]


# ----------------------------------------------------------------------------
# Pure-JAX reference (mirrors the PyTorch module) for validation
# ----------------------------------------------------------------------------
def lenet5_reference(x, params):
    (w1, b1, w2, b2, fw1, fb1, fw2, fb2, fw3, fb3) = params
    dn = ("NCHW", "OIHW", "NCHW")

    def inorm(y):  # InstanceNorm2d: affine=False, biased var, eps=1e-5
        m = jnp.mean(y, axis=(2, 3), keepdims=True)
        v = jnp.var(y, axis=(2, 3), keepdims=True)
        return (y - m) * lax.rsqrt(v + EPS)

    def pool(y):
        return lax.reduce_window(y, -jnp.inf, lax.max, (1, 1, 2, 2), (1, 1, 2, 2), "VALID")

    y = lax.conv_general_dilated(x, w1, (1, 1), "VALID", dimension_numbers=dn)
    y = pool(jax.nn.relu(inorm(y + b1[None, :, None, None])))
    y = lax.conv_general_dilated(y, w2, (1, 1), "VALID", dimension_numbers=dn)
    y = pool(jax.nn.relu(inorm(y + b2[None, :, None, None])))
    y = y.reshape(y.shape[0], -1)
    y = jax.nn.relu(y @ fw1.T + fb1)
    y = jax.nn.relu(y @ fw2.T + fb2)
    return y @ fw3.T + fb3


# ----------------------------------------------------------------------------
def init_params(key, in_channels=3, n_classes=10):
    ks = jax.random.split(key, 10)

    def lin(k, shape, fan_in):
        return (jax.random.normal(k, shape, jnp.float32) / jnp.sqrt(fan_in)).astype(jnp.float32)

    w1 = lin(ks[0], (6, in_channels, 5, 5), in_channels * 25)
    b1 = lin(ks[1], (6,), in_channels * 25)
    w2 = lin(ks[2], (16, 6, 5, 5), 6 * 25)
    b2 = lin(ks[3], (16,), 6 * 25)
    fw1 = lin(ks[4], (120, 400), 400)
    fb1 = lin(ks[5], (120,), 400)
    fw2 = lin(ks[6], (84, 120), 120)
    fb2 = lin(ks[7], (84,), 120)
    fw3 = lin(ks[8], (n_classes, 84), 84)
    fb3 = lin(ks[9], (n_classes,), 84)
    return (w1, b1, w2, b2, fw1, fb1, fw2, fb2, fw3, fb3)


if __name__ == "__main__":
    key = jax.random.PRNGKey(0)
    k_x, k_p = jax.random.split(key)

    # LeNet-5 geometry requires 32x32 spatial input (16*5*5 flatten).
    x = jax.random.normal(k_x, (2, 3, 32, 32), jnp.float32)
    params = init_params(k_p)

    prepared = prepare_operands(params)
    out = jax.block_until_ready(lenet5_forward(x, prepared))
    ref = jax.block_until_ready(lenet5_reference(x, params))

    assert out.shape == (2, 10) and out.dtype == jnp.float32
    max_err = float(jnp.max(jnp.abs(out - ref)))
    # bf16 matmul operands vs f32 reference -> tolerance loosened accordingly.
    assert jnp.allclose(out, ref, rtol=3e-2, atol=3e-2), \
        f"Pallas INormLeNet5 mismatch vs reference (max abs err {max_err})"
    print("KERNEL_OK")
</pallas_src>

<mosaic_0001>
module attributes {stable_mosaic.version = 11 : i64} {
  func.func @lenet_kernel(%arg0: i32, %arg1: memref<2x32x96xbf16, #tpu.memory_space<vmem>>, %arg2: memref<5x96x168xbf16, #tpu.memory_space<vmem>>, %arg3: memref<1x168xf32, #tpu.memory_space<vmem>>, %arg4: memref<168x6xf32, #tpu.memory_space<vmem>>, %arg5: memref<6x168xf32, #tpu.memory_space<vmem>>, %arg6: memref<2x14x28xbf16, #tpu.memory_space<vmem>>, %arg7: memref<2x168x84xbf16, #tpu.memory_space<vmem>>, %arg8: memref<5x84x160xbf16, #tpu.memory_space<vmem>>, %arg9: memref<1x160xf32, #tpu.memory_space<vmem>>, %arg10: memref<160x16xf32, #tpu.memory_space<vmem>>, %arg11: memref<16x160xf32, #tpu.memory_space<vmem>>, %arg12: memref<2x5x10xbf16, #tpu.memory_space<vmem>>, %arg13: memref<2x160x80xbf16, #tpu.memory_space<vmem>>, %arg14: memref<5x80x120xbf16, #tpu.memory_space<vmem>>, %arg15: memref<1x120xf32, #tpu.memory_space<vmem>>, %arg16: memref<120x84xbf16, #tpu.memory_space<vmem>>, %arg17: memref<1x84xf32, #tpu.memory_space<vmem>>, %arg18: memref<84x128xbf16, #tpu.memory_space<vmem>>, %arg19: memref<1x128xf32, #tpu.memory_space<vmem>>, %arg20: memref<1x2x128xf32, #tpu.memory_space<vmem>>) attributes {dimension_semantics = [#tpu.dimension_semantics<parallel>], iteration_bounds = array<i64: 1>, scalar_prefetch = 0 : i64, scratch_operands = 0 : i64, tpu.core_type = #tpu.core_type<tc>, window_params = [{transform_indices = @transform_0, window_bounds = array<i64: 2, 32, 96>}, {pipeline_mode = #tpu.pipeline_mode<synchronous>, transform_indices = @transform_1, window_bounds = array<i64: 5, 96, 168>}, {pipeline_mode = #tpu.pipeline_mode<synchronous>, transform_indices = @transform_2, window_bounds = array<i64: 1, 168>}, {pipeline_mode = #tpu.pipeline_mode<synchronous>, transform_indices = @transform_3, window_bounds = array<i64: 168, 6>}, {pipeline_mode = #tpu.pipeline_mode<synchronous>, transform_indices = @transform_4, window_bounds = array<i64: 6, 168>}, {pipeline_mode = #tpu.pipeline_mode<synchronous>, transform_indices = @transform_5, window_bounds = array<i64: 2, 14, 28>}, {pipeline_mode = #tpu.pipeline_mode<synchronous>, transform_indices = @transform_6, window_bounds = array<i64: 2, 168, 84>}, {pipeline_mode = #tpu.pipeline_mode<synchronous>, transform_indices = @transform_7, window_bounds = array<i64: 5, 84, 160>}, {pipeline_mode = #tpu.pipeline_mode<synchronous>, transform_indices = @transform_8, window_bounds = array<i64: 1, 160>}, {pipeline_mode = #tpu.pipeline_mode<synchronous>, transform_indices = @transform_9, window_bounds = array<i64: 160, 16>}, {pipeline_mode = #tpu.pipeline_mode<synchronous>, transform_indices = @transform_10, window_bounds = array<i64: 16, 160>}, {pipeline_mode = #tpu.pipeline_mode<synchronous>, transform_indices = @transform_11, window_bounds = array<i64: 2, 5, 10>}, {pipeline_mode = #tpu.pipeline_mode<synchronous>, transform_indices = @transform_12, window_bounds = array<i64: 2, 160, 80>}, {pipeline_mode = #tpu.pipeline_mode<synchronous>, transform_indices = @transform_13, window_bounds = array<i64: 5, 80, 120>}, {pipeline_mode = #tpu.pipeline_mode<synchronous>, transform_indices = @transform_14, window_bounds = array<i64: 1, 120>}, {pipeline_mode = #tpu.pipeline_mode<synchronous>, transform_indices = @transform_15, window_bounds = array<i64: 120, 84>}, {pipeline_mode = #tpu.pipeline_mode<synchronous>, transform_indices = @transform_16, window_bounds = array<i64: 1, 84>}, {pipeline_mode = #tpu.pipeline_mode<synchronous>, transform_indices = @transform_17, window_bounds = array<i64: 84, 128>}, {pipeline_mode = #tpu.pipeline_mode<synchronous>, transform_indices = @transform_18, window_bounds = array<i64: 1, 128>}, {transform_indices = @transform_19, window_bounds = array<i64: 1, 2, 128>}]} {
    %c0 = arith.constant 0 : index
    %c0_0 = arith.constant 0 : index
    %c0_1 = arith.constant 0 : index
    %0 = vector.load %arg2[%c0, %c0_0, %c0_1] : memref<5x96x168xbf16, #tpu.memory_space<vmem>>, vector<1x96x168xbf16>
    %1 = vector.shape_cast %0 : vector<1x96x168xbf16> to vector<96x168xbf16>
    %c1 = arith.constant 1 : index
    %c0_2 = arith.constant 0 : index
    %c0_3 = arith.constant 0 : index
    %2 = vector.load %arg2[%c1, %c0_2, %c0_3] : memref<5x96x168xbf16, #tpu.memory_space<vmem>>, vector<1x96x168xbf16>
    %3 = vector.shape_cast %2 : vector<1x96x168xbf16> to vector<96x168xbf16>
    %c2 = arith.constant 2 : index
    %c0_4 = arith.constant 0 : index
    %c0_5 = arith.constant 0 : index
    %4 = vector.load %arg2[%c2, %c0_4, %c0_5] : memref<5x96x168xbf16, #tpu.memory_space<vmem>>, vector<1x96x168xbf16>
    %5 = vector.shape_cast %4 : vector<1x96x168xbf16> to vector<96x168xbf16>
    %c3 = arith.constant 3 : index
    %c0_6 = arith.constant 0 : index
    %c0_7 = arith.constant 0 : index
    %6 = vector.load %arg2[%c3, %c0_6, %c0_7] : memref<5x96x168xbf16, #tpu.memory_space<vmem>>, vector<1x96x168xbf16>
    %7 = vector.shape_cast %6 : vector<1x96x168xbf16> to vector<96x168xbf16>
    %c4 = arith.constant 4 : index
    %c0_8 = arith.constant 0 : index
    %c0_9 = arith.constant 0 : index
    %8 = vector.load %arg2[%c4, %c0_8, %c0_9] : memref<5x96x168xbf16, #tpu.memory_space<vmem>>, vector<1x96x168xbf16>
    %9 = vector.shape_cast %8 : vector<1x96x168xbf16> to vector<96x168xbf16>
    %c0_10 = arith.constant 0 : index
    %c0_11 = arith.constant 0 : index
    %10 = vector.load %arg3[%c0_10, %c0_11] : memref<1x168xf32, #tpu.memory_space<vmem>>, vector<1x168xf32>
    %c0_12 = arith.constant 0 : index
    %c0_13 = arith.constant 0 : index
    %11 = vector.load %arg4[%c0_12, %c0_13] : memref<168x6xf32, #tpu.memory_space<vmem>>, vector<168x6xf32>
    %c0_14 = arith.constant 0 : index
    %c0_15 = arith.constant 0 : index
    %12 = vector.load %arg5[%c0_14, %c0_15] : memref<6x168xf32, #tpu.memory_space<vmem>>, vector<6x168xf32>
    %c0_16 = arith.constant 0 : index
    %c0_17 = arith.constant 0 : index
    %c0_18 = arith.constant 0 : index
    %13 = vector.load %arg6[%c0_16, %c0_17, %c0_18] : memref<2x14x28xbf16, #tpu.memory_space<vmem>>, vector<1x14x28xbf16>
    %14 = vector.shape_cast %13 : vector<1x14x28xbf16> to vector<14x28xbf16>
    %c1_19 = arith.constant 1 : index
    %c0_20 = arith.constant 0 : index
    %c0_21 = arith.constant 0 : index
    %15 = vector.load %arg6[%c1_19, %c0_20, %c0_21] : memref<2x14x28xbf16, #tpu.memory_space<vmem>>, vector<1x14x28xbf16>
    %16 = vector.shape_cast %15 : vector<1x14x28xbf16> to vector<14x28xbf16>
    %c0_22 = arith.constant 0 : index
    %c0_23 = arith.constant 0 : index
    %c0_24 = arith.constant 0 : index
    %17 = vector.load %arg7[%c0_22, %c0_23, %c0_24] : memref<2x168x84xbf16, #tpu.memory_space<vmem>>, vector<1x168x84xbf16>
    %18 = vector.shape_cast %17 : vector<1x168x84xbf16> to vector<168x84xbf16>
    %c1_25 = arith.constant 1 : index
    %c0_26 = arith.constant 0 : index
    %c0_27 = arith.constant 0 : index
    %19 = vector.load %arg7[%c1_25, %c0_26, %c0_27] : memref<2x168x84xbf16, #tpu.memory_space<vmem>>, vector<1x168x84xbf16>
    %20 = vector.shape_cast %19 : vector<1x168x84xbf16> to vector<168x84xbf16>
    %c0_28 = arith.constant 0 : index
    %c0_29 = arith.constant 0 : index
    %c0_30 = arith.constant 0 : index
    %21 = vector.load %arg8[%c0_28, %c0_29, %c0_30] : memref<5x84x160xbf16, #tpu.memory_space<vmem>>, vector<1x84x160xbf16>
    %22 = vector.shape_cast %21 : vector<1x84x160xbf16> to vector<84x160xbf16>
    %c1_31 = arith.constant 1 : index
    %c0_32 = arith.constant 0 : index
    %c0_33 = arith.constant 0 : index
    %23 = vector.load %arg8[%c1_31, %c0_32, %c0_33] : memref<5x84x160xbf16, #tpu.memory_space<vmem>>, vector<1x84x160xbf16>
    %24 = vector.shape_cast %23 : vector<1x84x160xbf16> to vector<84x160xbf16>
    %c2_34 = arith.constant 2 : index
    %c0_35 = arith.constant 0 : index
    %c0_36 = arith.constant 0 : index
    %25 = vector.load %arg8[%c2_34, %c0_35, %c0_36] : memref<5x84x160xbf16, #tpu.memory_space<vmem>>, vector<1x84x160xbf16>
    %26 = vector.shape_cast %25 : vector<1x84x160xbf16> to vector<84x160xbf16>
    %c3_37 = arith.constant 3 : index
    %c0_38 = arith.constant 0 : index
    %c0_39 = arith.constant 0 : index
    %27 = vector.load %arg8[%c3_37, %c0_38, %c0_39] : memref<5x84x160xbf16, #tpu.memory_space<vmem>>, vector<1x84x160xbf16>
    %28 = vector.shape_cast %27 : vector<1x84x160xbf16> to vector<84x160xbf16>
    %c4_40 = arith.constant 4 : index
    %c0_41 = arith.constant 0 : index
    %c0_42 = arith.constant 0 : index
    %29 = vector.load %arg8[%c4_40, %c0_41, %c0_42] : memref<5x84x160xbf16, #tpu.memory_space<vmem>>, vector<1x84x160xbf16>
    %30 = vector.shape_cast %29 : vector<1x84x160xbf16> to vector<84x160xbf16>
    %c0_43 = arith.constant 0 : index
    %c0_44 = arith.constant 0 : index
    %31 = vector.load %arg9[%c0_43, %c0_44] : memref<1x160xf32, #tpu.memory_space<vmem>>, vector<1x160xf32>
    %c0_45 = arith.constant 0 : index
    %c0_46 = arith.constant 0 : index
    %32 = vector.load %arg10[%c0_45, %c0_46] : memref<160x16xf32, #tpu.memory_space<vmem>>, vector<160x16xf32>
    %c0_47 = arith.constant 0 : index
    %c0_48 = arith.constant 0 : index
    %33 = vector.load %arg11[%c0_47, %c0_48] : memref<16x160xf32, #tpu.memory_space<vmem>>, vector<16x160xf32>
    %c0_49 = arith.constant 0 : index
    %c0_50 = arith.constant 0 : index
    %c0_51 = arith.constant 0 : index
    %34 = vector.load %arg12[%c0_49, %c0_50, %c0_51] : memref<2x5x10xbf16, #tpu.memory_space<vmem>>, vector<1x5x10xbf16>
    %35 = vector.shape_cast %34 : vector<1x5x10xbf16> to vector<5x10xbf16>
    %c1_52 = arith.constant 1 : index
    %c0_53 = arith.constant 0 : index
    %c0_54 = arith.constant 0 : index
    %36 = vector.load %arg12[%c1_52, %c0_53, %c0_54] : memref<2x5x10xbf16, #tpu.memory_space<vmem>>, vector<1x5x10xbf16>
    %37 = vector.shape_cast %36 : vector<1x5x10xbf16> to vector<5x10xbf16>
    %c0_55 = arith.constant 0 : index
    %c0_56 = arith.constant 0 : index
    %c0_57 = arith.constant 0 : index
    %38 = vector.load %arg13[%c0_55, %c0_56, %c0_57] : memref<2x160x80xbf16, #tpu.memory_space<vmem>>, vector<1x160x80xbf16>
    %39 = vector.shape_cast %38 : vector<1x160x80xbf16> to vector<160x80xbf16>
    %c1_58 = arith.constant 1 : index
    %c0_59 = arith.constant 0 : index
    %c0_60 = arith.constant 0 : index
    %40 = vector.load %arg13[%c1_58, %c0_59, %c0_60] : memref<2x160x80xbf16, #tpu.memory_space<vmem>>, vector<1x160x80xbf16>
    %41 = vector.shape_cast %40 : vector<1x160x80xbf16> to vector<160x80xbf16>
    %c0_61 = arith.constant 0 : index
    %c0_62 = arith.constant 0 : index
    %c0_63 = arith.constant 0 : index
    %42 = vector.load %arg14[%c0_61, %c0_62, %c0_63] : memref<5x80x120xbf16, #tpu.memory_space<vmem>>, vector<1x80x120xbf16>
    %43 = vector.shape_cast %42 : vector<1x80x120xbf16> to vector<80x120xbf16>
    %c1_64 = arith.constant 1 : index
    %c0_65 = arith.constant 0 : index
    %c0_66 = arith.constant 0 : index
    %44 = vector.load %arg14[%c1_64, %c0_65, %c0_66] : memref<5x80x120xbf16, #tpu.memory_space<vmem>>, vector<1x80x120xbf16>
    %45 = vector.shape_cast %44 : vector<1x80x120xbf16> to vector<80x120xbf16>
    %c2_67 = arith.constant 2 : index
    %c0_68 = arith.constant 0 : index
    %c0_69 = arith.constant 0 : index
    %46 = vector.load %arg14[%c2_67, %c0_68, %c0_69] : memref<5x80x120xbf16, #tpu.memory_space<vmem>>, vector<1x80x120xbf16>
    %47 = vector.shape_cast %46 : vector<1x80x120xbf16> to vector<80x120xbf16>
    %c3_70 = arith.constant 3 : index
    %c0_71 = arith.constant 0 : index
    %c0_72 = arith.constant 0 : index
    %48 = vector.load %arg14[%c3_70, %c0_71, %c0_72] : memref<5x80x120xbf16, #tpu.memory_space<vmem>>, vector<1x80x120xbf16>
    %49 = vector.shape_cast %48 : vector<1x80x120xbf16> to vector<80x120xbf16>
    %c4_73 = arith.constant 4 : index
    %c0_74 = arith.constant 0 : index
    %c0_75 = arith.constant 0 : index
    %50 = vector.load %arg14[%c4_73, %c0_74, %c0_75] : memref<5x80x120xbf16, #tpu.memory_space<vmem>>, vector<1x80x120xbf16>
    %51 = vector.shape_cast %50 : vector<1x80x120xbf16> to vector<80x120xbf16>
    %c0_76 = arith.constant 0 : index
    %c0_77 = arith.constant 0 : index
    %52 = vector.load %arg15[%c0_76, %c0_77] : memref<1x120xf32, #tpu.memory_space<vmem>>, vector<1x120xf32>
    %c0_78 = arith.constant 0 : index
    %c0_79 = arith.constant 0 : index
    %53 = vector.load %arg16[%c0_78, %c0_79] : memref<120x84xbf16, #tpu.memory_space<vmem>>, vector<120x84xbf16>
    %c0_80 = arith.constant 0 : index
    %c0_81 = arith.constant 0 : index
    %54 = vector.load %arg17[%c0_80, %c0_81] : memref<1x84xf32, #tpu.memory_space<vmem>>, vector<1x84xf32>
    %c0_82 = arith.constant 0 : index
    %c0_83 = arith.constant 0 : index
    %55 = vector.load %arg18[%c0_82, %c0_83] : memref<84x128xbf16, #tpu.memory_space<vmem>>, vector<84x128xbf16>
    %c0_84 = arith.constant 0 : index
    %c0_85 = arith.constant 0 : index
    %56 = vector.load %arg19[%c0_84, %c0_85] : memref<1x128xf32, #tpu.memory_space<vmem>>, vector<1x128xf32>
    %c0_86 = arith.constant 0 : index
    %c0_87 = arith.constant 0 : index
    %c0_88 = arith.constant 0 : index
    %57 = vector.load %arg1[%c0_86, %c0_87, %c0_88] : memref<2x32x96xbf16, #tpu.memory_space<vmem>>, vector<1x32x96xbf16>
    %58 = vector.shape_cast %57 : vector<1x32x96xbf16> to vector<32x96xbf16>
    %59 = vector.extract_strided_slice %58 {offsets = [0, 0], sizes = [28, 96], strides = [1, 1]} : vector<32x96xbf16> to vector<28x96xbf16>
    %cst = arith.constant dense<0.000000e+00> : vector<28x168xf32>
    %60 = tpu.matmul %59, %1, %cst {dimension_numbers = #tpu.dot_dimension_numbers<[1], [0], [0], [1], [0, 0, 1, 1], [], []>} : vector<28x96xbf16>, vector<96x168xbf16>, vector<28x168xf32> -> vector<28x168xf32>
    %61 = vector.extract_strided_slice %58 {offsets = [1, 0], sizes = [28, 96], strides = [1, 1]} : vector<32x96xbf16> to vector<28x96xbf16>
    %cst_89 = arith.constant dense<0.000000e+00> : vector<28x168xf32>
    %62 = tpu.matmul %61, %3, %cst_89 {dimension_numbers = #tpu.dot_dimension_numbers<[1], [0], [0], [1], [0, 0, 1, 1], [], []>} : vector<28x96xbf16>, vector<96x168xbf16>, vector<28x168xf32> -> vector<28x168xf32>
    %63 = arith.addf %60, %62 : vector<28x168xf32>
    %64 = vector.extract_strided_slice %58 {offsets = [2, 0], sizes = [28, 96], strides = [1, 1]} : vector<32x96xbf16> to vector<28x96xbf16>
    %cst_90 = arith.constant dense<0.000000e+00> : vector<28x168xf32>
    %65 = tpu.matmul %64, %5, %cst_90 {dimension_numbers = #tpu.dot_dimension_numbers<[1], [0], [0], [1], [0, 0, 1, 1], [], []>} : vector<28x96xbf16>, vector<96x168xbf16>, vector<28x168xf32> -> vector<28x168xf32>
    %66 = arith.addf %63, %65 : vector<28x168xf32>
    %67 = vector.extract_strided_slice %58 {offsets = [3, 0], sizes = [28, 96], strides = [1, 1]} : vector<32x96xbf16> to vector<28x96xbf16>
    %cst_91 = arith.constant dense<0.000000e+00> : vector<28x168xf32>
    %68 = tpu.matmul %67, %7, %cst_91 {dimension_numbers = #tpu.dot_dimension_numbers<[1], [0], [0], [1], [0, 0, 1, 1], [], []>} : vector<28x96xbf16>, vector<96x168xbf16>, vector<28x168xf32> -> vector<28x168xf32>
    %69 = arith.addf %66, %68 : vector<28x168xf32>
    %70 = vector.extract_strided_slice %58 {offsets = [4, 0], sizes = [28, 96], strides = [1, 1]} : vector<32x96xbf16> to vector<28x96xbf16>
    %cst_92 = arith.constant dense<0.000000e+00> : vector<28x168xf32>
    %71 = tpu.matmul %70, %9, %cst_92 {dimension_numbers = #tpu.dot_dimension_numbers<[1], [0], [0], [1], [0, 0, 1, 1], [], []>} : vector<28x96xbf16>, vector<96x168xbf16>, vector<28x168xf32> -> vector<28x168xf32>
    %72 = arith.addf %69, %71 : vector<28x168xf32>
    %73 = vector.broadcast %10 : vector<1x168xf32> to vector<28x168xf32>
    %74 = arith.addf %72, %73 : vector<28x168xf32>
    %cst_93 = arith.constant dense<0.000000e+00> : vector<168xf32>
    %75 = vector.multi_reduction <add>, %74, %cst_93 [0] : vector<28x168xf32> to vector<168xf32>
    %76 = vector.shape_cast %75 : vector<168xf32> to vector<1x168xf32>
    %77 = arith.mulf %74, %74 : vector<28x168xf32>
    %cst_94 = arith.constant dense<0.000000e+00> : vector<168xf32>
    %78 = vector.multi_reduction <add>, %77, %cst_94 [0] : vector<28x168xf32> to vector<168xf32>
    %79 = vector.shape_cast %78 : vector<168xf32> to vector<1x168xf32>
    %80 = tpu.concatenate %76, %79 in 0 : vector<1x168xf32>, vector<1x168xf32> -> vector<2x168xf32>
    %cst_95 = arith.constant dense<0.000000e+00> : vector<2x6xf32>
    %81 = tpu.matmul %80, %11, %cst_95 {dimension_numbers = #tpu.dot_dimension_numbers<[1], [0], [0], [1], [0, 0, 1, 1], [], []>} : vector<2x168xf32>, vector<168x6xf32>, vector<2x6xf32> -> vector<2x6xf32>
    %cst_96 = arith.constant 0.00127551018 : f32
    %82 = vector.broadcast %cst_96 : f32 to vector<2x6xf32>
    %83 = arith.mulf %81, %82 : vector<2x6xf32>
    %84 = vector.extract_strided_slice %83 {offsets = [0, 0], sizes = [1, 6], strides = [1, 1]} : vector<2x6xf32> to vector<1x6xf32>
    %85 = vector.extract_strided_slice %83 {offsets = [1, 0], sizes = [1, 6], strides = [1, 1]} : vector<2x6xf32> to vector<1x6xf32>
    %86 = arith.mulf %84, %84 : vector<1x6xf32>
    %87 = arith.subf %85, %86 : vector<1x6xf32>
    %cst_97 = arith.constant 9.99999974E-6 : f32
    %88 = vector.broadcast %cst_97 : f32 to vector<1x6xf32>
    %89 = arith.addf %87, %88 : vector<1x6xf32>
    %90 = math.rsqrt %89 : vector<1x6xf32>
    %91 = tpu.concatenate %84, %90 in 0 : vector<1x6xf32>, vector<1x6xf32> -> vector<2x6xf32>
    %cst_98 = arith.constant dense<0.000000e+00> : vector<2x168xf32>
    %92 = tpu.matmul %91, %12, %cst_98 {dimension_numbers = #tpu.dot_dimension_numbers<[1], [0], [0], [1], [0, 0, 1, 1], [], []>} : vector<2x6xf32>, vector<6x168xf32>, vector<2x168xf32> -> vector<2x168xf32>
    %93 = vector.extract_strided_slice %92 {offsets = [0, 0], sizes = [1, 168], strides = [1, 1]} : vector<2x168xf32> to vector<1x168xf32>
    %94 = vector.broadcast %93 : vector<1x168xf32> to vector<28x168xf32>
    %95 = arith.subf %74, %94 : vector<28x168xf32>
    %96 = vector.extract_strided_slice %92 {offsets = [1, 0], sizes = [1, 168], strides = [1, 1]} : vector<2x168xf32> to vector<1x168xf32>
    %97 = vector.broadcast %96 : vector<1x168xf32> to vector<28x168xf32>
    %98 = arith.mulf %95, %97 : vector<28x168xf32>
    %cst_99 = arith.constant 0.000000e+00 : f32
    %99 = vector.broadcast %cst_99 : f32 to vector<28x168xf32>
    %100 = arith.maximumf %98, %99 : vector<28x168xf32>
    %101 = arith.truncf %100 : vector<28x168xf32> to vector<28x168xbf16>
    %cst_100 = arith.constant dense<0.000000e+00> : vector<14x168xf32>
    %102 = tpu.matmul %14, %101, %cst_100 {dimension_numbers = #tpu.dot_dimension_numbers<[1], [0], [0], [1], [0, 0, 1, 1], [], []>} : vector<14x28xbf16>, vector<28x168xbf16>, vector<14x168xf32> -> vector<14x168xf32>
    %cst_101 = arith.constant dense<0.000000e+00> : vector<14x168xf32>
    %103 = tpu.matmul %16, %101, %cst_101 {dimension_numbers = #tpu.dot_dimension_numbers<[1], [0], [0], [1], [0, 0, 1, 1], [], []>} : vector<14x28xbf16>, vector<28x168xbf16>, vector<14x168xf32> -> vector<14x168xf32>
    %104 = arith.maximumf %102, %103 : vector<14x168xf32>
    %105 = arith.truncf %104 : vector<14x168xf32> to vector<14x168xbf16>
    %cst_102 = arith.constant dense<0.000000e+00> : vector<14x84xf32>
    %106 = tpu.matmul %105, %18, %cst_102 {dimension_numbers = #tpu.dot_dimension_numbers<[1], [0], [0], [1], [0, 0, 1, 1], [], []>} : vector<14x168xbf16>, vector<168x84xbf16>, vector<14x84xf32> -> vector<14x84xf32>
    %cst_103 = arith.constant dense<0.000000e+00> : vector<14x84xf32>
    %107 = tpu.matmul %105, %20, %cst_103 {dimension_numbers = #tpu.dot_dimension_numbers<[1], [0], [0], [1], [0, 0, 1, 1], [], []>} : vector<14x168xbf16>, vector<168x84xbf16>, vector<14x84xf32> -> vector<14x84xf32>
    %108 = arith.maximumf %106, %107 : vector<14x84xf32>
    %109 = arith.truncf %108 : vector<14x84xf32> to vector<14x84xbf16>
    %110 = vector.extract_strided_slice %109 {offsets = [0, 0], sizes = [10, 84], strides = [1, 1]} : vector<14x84xbf16> to vector<10x84xbf16>
    %cst_104 = arith.constant dense<0.000000e+00> : vector<10x160xf32>
    %111 = tpu.matmul %110, %22, %cst_104 {dimension_numbers = #tpu.dot_dimension_numbers<[1], [0], [0], [1], [0, 0, 1, 1], [], []>} : vector<10x84xbf16>, vector<84x160xbf16>, vector<10x160xf32> -> vector<10x160xf32>
    %112 = vector.extract_strided_slice %109 {offsets = [1, 0], sizes = [10, 84], strides = [1, 1]} : vector<14x84xbf16> to vector<10x84xbf16>
    %cst_105 = arith.constant dense<0.000000e+00> : vector<10x160xf32>
    %113 = tpu.matmul %112, %24, %cst_105 {dimension_numbers = #tpu.dot_dimension_numbers<[1], [0], [0], [1], [0, 0, 1, 1], [], []>} : vector<10x84xbf16>, vector<84x160xbf16>, vector<10x160xf32> -> vector<10x160xf32>
    %114 = arith.addf %111, %113 : vector<10x160xf32>
    %115 = vector.extract_strided_slice %109 {offsets = [2, 0], sizes = [10, 84], strides = [1, 1]} : vector<14x84xbf16> to vector<10x84xbf16>
    %cst_106 = arith.constant dense<0.000000e+00> : vector<10x160xf32>
    %116 = tpu.matmul %115, %26, %cst_106 {dimension_numbers = #tpu.dot_dimension_numbers<[1], [0], [0], [1], [0, 0, 1, 1], [], []>} : vector<10x84xbf16>, vector<84x160xbf16>, vector<10x160xf32> -> vector<10x160xf32>
    %117 = arith.addf %114, %116 : vector<10x160xf32>
    %118 = vector.extract_strided_slice %109 {offsets = [3, 0], sizes = [10, 84], strides = [1, 1]} : vector<14x84xbf16> to vector<10x84xbf16>
    %cst_107 = arith.constant dense<0.000000e+00> : vector<10x160xf32>
    %119 = tpu.matmul %118, %28, %cst_107 {dimension_numbers = #tpu.dot_dimension_numbers<[1], [0], [0], [1], [0, 0, 1, 1], [], []>} : vector<10x84xbf16>, vector<84x160xbf16>, vector<10x160xf32> -> vector<10x160xf32>
    %120 = arith.addf %117, %119 : vector<10x160xf32>
    %121 = vector.extract_strided_slice %109 {offsets = [4, 0], sizes = [10, 84], strides = [1, 1]} : vector<14x84xbf16> to vector<10x84xbf16>
    %cst_108 = arith.constant dense<0.000000e+00> : vector<10x160xf32>
    %122 = tpu.matmul %121, %30, %cst_108 {dimension_numbers = #tpu.dot_dimension_numbers<[1], [0], [0], [1], [0, 0, 1, 1], [], []>} : vector<10x84xbf16>, vector<84x160xbf16>, vector<10x160xf32> -> vector<10x160xf32>
    %123 = arith.addf %120, %122 : vector<10x160xf32>
    %124 = vector.broadcast %31 : vector<1x160xf32> to vector<10x160xf32>
    %125 = arith.addf %123, %124 : vector<10x160xf32>
    %cst_109 = arith.constant dense<0.000000e+00> : vector<160xf32>
    %126 = vector.multi_reduction <add>, %125, %cst_109 [0] : vector<10x160xf32> to vector<160xf32>
    %127 = vector.shape_cast %126 : vector<160xf32> to vector<1x160xf32>
    %128 = arith.mulf %125, %125 : vector<10x160xf32>
    %cst_110 = arith.constant dense<0.000000e+00> : vector<160xf32>
    %129 = vector.multi_reduction <add>, %128, %cst_110 [0] : vector<10x160xf32> to vector<160xf32>
    %130 = vector.shape_cast %129 : vector<160xf32> to vector<1x160xf32>
    %131 = tpu.concatenate %127, %130 in 0 : vector<1x160xf32>, vector<1x160xf32> -> vector<2x160xf32>
    %cst_111 = arith.constant dense<0.000000e+00> : vector<2x16xf32>
    %132 = tpu.matmul %131, %32, %cst_111 {dimension_numbers = #tpu.dot_dimension_numbers<[1], [0], [0], [1], [0, 0, 1, 1], [], []>} : vector<2x160xf32>, vector<160x16xf32>, vector<2x16xf32> -> vector<2x16xf32>
    %cst_112 = arith.constant 0.00999999977 : f32
    %133 = vector.broadcast %cst_112 : f32 to vector<2x16xf32>
    %134 = arith.mulf %132, %133 : vector<2x16xf32>
    %135 = vector.extract_strided_slice %134 {offsets = [0, 0], sizes = [1, 16], strides = [1, 1]} : vector<2x16xf32> to vector<1x16xf32>
    %136 = vector.extract_strided_slice %134 {offsets = [1, 0], sizes = [1, 16], strides = [1, 1]} : vector<2x16xf32> to vector<1x16xf32>
    %137 = arith.mulf %135, %135 : vector<1x16xf32>
    %138 = arith.subf %136, %137 : vector<1x16xf32>
    %cst_113 = arith.constant 9.99999974E-6 : f32
    %139 = vector.broadcast %cst_113 : f32 to vector<1x16xf32>
    %140 = arith.addf %138, %139 : vector<1x16xf32>
    %141 = math.rsqrt %140 : vector<1x16xf32>
    %142 = tpu.concatenate %135, %141 in 0 : vector<1x16xf32>, vector<1x16xf32> -> vector<2x16xf32>
    %cst_114 = arith.constant dense<0.000000e+00> : vector<2x160xf32>
    %143 = tpu.matmul %142, %33, %cst_114 {dimension_numbers = #tpu.dot_dimension_numbers<[1], [0], [0], [1], [0, 0, 1, 1], [], []>} : vector<2x16xf32>, vector<16x160xf32>, vector<2x160xf32> -> vector<2x160xf32>
    %144 = vector.extract_strided_slice %143 {offsets = [0, 0], sizes = [1, 160], strides = [1, 1]} : vector<2x160xf32> to vector<1x160xf32>
    %145 = vector.broadcast %144 : vector<1x160xf32> to vector<10x160xf32>
    %146 = arith.subf %125, %145 : vector<10x160xf32>
    %147 = vector.extract_strided_slice %143 {offsets = [1, 0], sizes = [1, 160], strides = [1, 1]} : vector<2x160xf32> to vector<1x160xf32>
    %148 = vector.broadcast %147 : vector<1x160xf32> to vector<10x160xf32>
    %149 = arith.mulf %146, %148 : vector<10x160xf32>
    %cst_115 = arith.constant 0.000000e+00 : f32
    %150 = vector.broadcast %cst_115 : f32 to vector<10x160xf32>
    %151 = arith.maximumf %149, %150 : vector<10x160xf32>
    %152 = arith.truncf %151 : vector<10x160xf32> to vector<10x160xbf16>
    %cst_116 = arith.constant dense<0.000000e+00> : vector<5x160xf32>
    %153 = tpu.matmul %35, %152, %cst_116 {dimension_numbers = #tpu.dot_dimension_numbers<[1], [0], [0], [1], [0, 0, 1, 1], [], []>} : vector<5x10xbf16>, vector<10x160xbf16>, vector<5x160xf32> -> vector<5x160xf32>
    %cst_117 = arith.constant dense<0.000000e+00> : vector<5x160xf32>
    %154 = tpu.matmul %37, %152, %cst_117 {dimension_numbers = #tpu.dot_dimension_numbers<[1], [0], [0], [1], [0, 0, 1, 1], [], []>} : vector<5x10xbf16>, vector<10x160xbf16>, vector<5x160xf32> -> vector<5x160xf32>
    %155 = arith.maximumf %153, %154 : vector<5x160xf32>
    %156 = arith.truncf %155 : vector<5x160xf32> to vector<5x160xbf16>
    %cst_118 = arith.constant dense<0.000000e+00> : vector<5x80xf32>
    %157 = tpu.matmul %156, %39, %cst_118 {dimension_numbers = #tpu.dot_dimension_numbers<[1], [0], [0], [1], [0, 0, 1, 1], [], []>} : vector<5x160xbf16>, vector<160x80xbf16>, vector<5x80xf32> -> vector<5x80xf32>
    %cst_119 = arith.constant dense<0.000000e+00> : vector<5x80xf32>
    %158 = tpu.matmul %156, %41, %cst_119 {dimension_numbers = #tpu.dot_dimension_numbers<[1], [0], [0], [1], [0, 0, 1, 1], [], []>} : vector<5x160xbf16>, vector<160x80xbf16>, vector<5x80xf32> -> vector<5x80xf32>
    %159 = arith.maximumf %157, %158 : vector<5x80xf32>
    %c1_120 = arith.constant 1 : index
    %c0_121 = arith.constant 0 : index
    %c0_122 = arith.constant 0 : index
    %160 = vector.load %arg1[%c1_120, %c0_121, %c0_122] : memref<2x32x96xbf16, #tpu.memory_space<vmem>>, vector<1x32x96xbf16>
    %161 = vector.shape_cast %160 : vector<1x32x96xbf16> to vector<32x96xbf16>
    %162 = vector.extract_strided_slice %161 {offsets = [0, 0], sizes = [28, 96], strides = [1, 1]} : vector<32x96xbf16> to vector<28x96xbf16>
    %cst_123 = arith.constant dense<0.000000e+00> : vector<28x168xf32>
    %163 = tpu.matmul %162, %1, %cst_123 {dimension_numbers = #tpu.dot_dimension_numbers<[1], [0], [0], [1], [0, 0, 1, 1], [], []>} : vector<28x96xbf16>, vector<96x168xbf16>, vector<28x168xf32> -> vector<28x168xf32>
    %164 = vector.extract_strided_slice %161 {offsets = [1, 0], sizes = [28, 96], strides = [1, 1]} : vector<32x96xbf16> to vector<28x96xbf16>
    %cst_124 = arith.constant dense<0.000000e+00> : vector<28x168xf32>
    %165 = tpu.matmul %164, %3, %cst_124 {dimension_numbers = #tpu.dot_dimension_numbers<[1], [0], [0], [1], [0, 0, 1, 1], [], []>} : vector<28x96xbf16>, vector<96x168xbf16>, vector<28x168xf32> -> vector<28x168xf32>
    %166 = arith.addf %163, %165 : vector<28x168xf32>
    %167 = vector.extract_strided_slice %161 {offsets = [2, 0], sizes = [28, 96], strides = [1, 1]} : vector<32x96xbf16> to vector<28x96xbf16>
    %cst_125 = arith.constant dense<0.000000e+00> : vector<28x168xf32>
    %168 = tpu.matmul %167, %5, %cst_125 {dimension_numbers = #tpu.dot_dimension_numbers<[1], [0], [0], [1], [0, 0, 1, 1], [], []>} : vector<28x96xbf16>, vector<96x168xbf16>, vector<28x168xf32> -> vector<28x168xf32>
    %169 = arith.addf %166, %168 : vector<28x168xf32>
    %170 = vector.extract_strided_slice %161 {offsets = [3, 0], sizes = [28, 96], strides = [1, 1]} : vector<32x96xbf16> to vector<28x96xbf16>
    %cst_126 = arith.constant dense<0.000000e+00> : vector<28x168xf32>
    %171 = tpu.matmul %170, %7, %cst_126 {dimension_numbers = #tpu.dot_dimension_numbers<[1], [0], [0], [1], [0, 0, 1, 1], [], []>} : vector<28x96xbf16>, vector<96x168xbf16>, vector<28x168xf32> -> vector<28x168xf32>
    %172 = arith.addf %169, %171 : vector<28x168xf32>
    %173 = vector.extract_strided_slice %161 {offsets = [4, 0], sizes = [28, 96], strides = [1, 1]} : vector<32x96xbf16> to vector<28x96xbf16>
    %cst_127 = arith.constant dense<0.000000e+00> : vector<28x168xf32>
    %174 = tpu.matmul %173, %9, %cst_127 {dimension_numbers = #tpu.dot_dimension_numbers<[1], [0], [0], [1], [0, 0, 1, 1], [], []>} : vector<28x96xbf16>, vector<96x168xbf16>, vector<28x168xf32> -> vector<28x168xf32>
    %175 = arith.addf %172, %174 : vector<28x168xf32>
    %176 = vector.broadcast %10 : vector<1x168xf32> to vector<28x168xf32>
    %177 = arith.addf %175, %176 : vector<28x168xf32>
    %cst_128 = arith.constant dense<0.000000e+00> : vector<168xf32>
    %178 = vector.multi_reduction <add>, %177, %cst_128 [0] : vector<28x168xf32> to vector<168xf32>
    %179 = vector.shape_cast %178 : vector<168xf32> to vector<1x168xf32>
    %180 = arith.mulf %177, %177 : vector<28x168xf32>
    %cst_129 = arith.constant dense<0.000000e+00> : vector<168xf32>
    %181 = vector.multi_reduction <add>, %180, %cst_129 [0] : vector<28x168xf32> to vector<168xf32>
    %182 = vector.shape_cast %181 : vector<168xf32> to vector<1x168xf32>
    %183 = tpu.concatenate %179, %182 in 0 : vector<1x168xf32>, vector<1x168xf32> -> vector<2x168xf32>
    %cst_130 = arith.constant dense<0.000000e+00> : vector<2x6xf32>
    %184 = tpu.matmul %183, %11, %cst_130 {dimension_numbers = #tpu.dot_dimension_numbers<[1], [0], [0], [1], [0, 0, 1, 1], [], []>} : vector<2x168xf32>, vector<168x6xf32>, vector<2x6xf32> -> vector<2x6xf32>
    %cst_131 = arith.constant 0.00127551018 : f32
    %185 = vector.broadcast %cst_131 : f32 to vector<2x6xf32>
    %186 = arith.mulf %184, %185 : vector<2x6xf32>
    %187 = vector.extract_strided_slice %186 {offsets = [0, 0], sizes = [1, 6], strides = [1, 1]} : vector<2x6xf32> to vector<1x6xf32>
    %188 = vector.extract_strided_slice %186 {offsets = [1, 0], sizes = [1, 6], strides = [1, 1]} : vector<2x6xf32> to vector<1x6xf32>
    %189 = arith.mulf %187, %187 : vector<1x6xf32>
    %190 = arith.subf %188, %189 : vector<1x6xf32>
    %cst_132 = arith.constant 9.99999974E-6 : f32
    %191 = vector.broadcast %cst_132 : f32 to vector<1x6xf32>
    %192 = arith.addf %190, %191 : vector<1x6xf32>
    %193 = math.rsqrt %192 : vector<1x6xf32>
    %194 = tpu.concatenate %187, %193 in 0 : vector<1x6xf32>, vector<1x6xf32> -> vector<2x6xf32>
    %cst_133 = arith.constant dense<0.000000e+00> : vector<2x168xf32>
    %195 = tpu.matmul %194, %12, %cst_133 {dimension_numbers = #tpu.dot_dimension_numbers<[1], [0], [0], [1], [0, 0, 1, 1], [], []>} : vector<2x6xf32>, vector<6x168xf32>, vector<2x168xf32> -> vector<2x168xf32>
    %196 = vector.extract_strided_slice %195 {offsets = [0, 0], sizes = [1, 168], strides = [1, 1]} : vector<2x168xf32> to vector<1x168xf32>
    %197 = vector.broadcast %196 : vector<1x168xf32> to vector<28x168xf32>
    %198 = arith.subf %177, %197 : vector<28x168xf32>
    %199 = vector.extract_strided_slice %195 {offsets = [1, 0], sizes = [1, 168], strides = [1, 1]} : vector<2x168xf32> to vector<1x168xf32>
    %200 = vector.broadcast %199 : vector<1x168xf32> to vector<28x168xf32>
    %201 = arith.mulf %198, %200 : vector<28x168xf32>
    %cst_134 = arith.constant 0.000000e+00 : f32
    %202 = vector.broadcast %cst_134 : f32 to vector<28x168xf32>
    %203 = arith.maximumf %201, %202 : vector<28x168xf32>
    %204 = arith.truncf %203 : vector<28x168xf32> to vector<28x168xbf16>
    %cst_135 = arith.constant dense<0.000000e+00> : vector<14x168xf32>
    %205 = tpu.matmul %14, %204, %cst_135 {dimension_numbers = #tpu.dot_dimension_numbers<[1], [0], [0], [1], [0, 0, 1, 1], [], []>} : vector<14x28xbf16>, vector<28x168xbf16>, vector<14x168xf32> -> vector<14x168xf32>
    %cst_136 = arith.constant dense<0.000000e+00> : vector<14x168xf32>
    %206 = tpu.matmul %16, %204, %cst_136 {dimension_numbers = #tpu.dot_dimension_numbers<[1], [0], [0], [1], [0, 0, 1, 1], [], []>} : vector<14x28xbf16>, vector<28x168xbf16>, vector<14x168xf32> -> vector<14x168xf32>
    %207 = arith.maximumf %205, %206 : vector<14x168xf32>
    %208 = arith.truncf %207 : vector<14x168xf32> to vector<14x168xbf16>
    %cst_137 = arith.constant dense<0.000000e+00> : vector<14x84xf32>
    %209 = tpu.matmul %208, %18, %cst_137 {dimension_numbers = #tpu.dot_dimension_numbers<[1], [0], [0], [1], [0, 0, 1, 1], [], []>} : vector<14x168xbf16>, vector<168x84xbf16>, vector<14x84xf32> -> vector<14x84xf32>
    %cst_138 = arith.constant dense<0.000000e+00> : vector<14x84xf32>
    %210 = tpu.matmul %208, %20, %cst_138 {dimension_numbers = #tpu.dot_dimension_numbers<[1], [0], [0], [1], [0, 0, 1, 1], [], []>} : vector<14x168xbf16>, vector<168x84xbf16>, vector<14x84xf32> -> vector<14x84xf32>
    %211 = arith.maximumf %209, %210 : vector<14x84xf32>
    %212 = arith.truncf %211 : vector<14x84xf32> to vector<14x84xbf16>
    %213 = vector.extract_strided_slice %212 {offsets = [0, 0], sizes = [10, 84], strides = [1, 1]} : vector<14x84xbf16> to vector<10x84xbf16>
    %cst_139 = arith.constant dense<0.000000e+00> : vector<10x160xf32>
    %214 = tpu.matmul %213, %22, %cst_139 {dimension_numbers = #tpu.dot_dimension_numbers<[1], [0], [0], [1], [0, 0, 1, 1], [], []>} : vector<10x84xbf16>, vector<84x160xbf16>, vector<10x160xf32> -> vector<10x160xf32>
    %215 = vector.extract_strided_slice %212 {offsets = [1, 0], sizes = [10, 84], strides = [1, 1]} : vector<14x84xbf16> to vector<10x84xbf16>
    %cst_140 = arith.constant dense<0.000000e+00> : vector<10x160xf32>
    %216 = tpu.matmul %215, %24, %cst_140 {dimension_numbers = #tpu.dot_dimension_numbers<[1], [0], [0], [1], [0, 0, 1, 1], [], []>} : vector<10x84xbf16>, vector<84x160xbf16>, vector<10x160xf32> -> vector<10x160xf32>
    %217 = arith.addf %214, %216 : vector<10x160xf32>
    %218 = vector.extract_strided_slice %212 {offsets = [2, 0], sizes = [10, 84], strides = [1, 1]} : vector<14x84xbf16> to vector<10x84xbf16>
    %cst_141 = arith.constant dense<0.000000e+00> : vector<10x160xf32>
    %219 = tpu.matmul %218, %26, %cst_141 {dimension_numbers = #tpu.dot_dimension_numbers<[1], [0], [0], [1], [0, 0, 1, 1], [], []>} : vector<10x84xbf16>, vector<84x160xbf16>, vector<10x160xf32> -> vector<10x160xf32>
    %220 = arith.addf %217, %219 : vector<10x160xf32>
    %221 = vector.extract_strided_slice %212 {offsets = [3, 0], sizes = [10, 84], strides = [1, 1]} : vector<14x84xbf16> to vector<10x84xbf16>
    %cst_142 = arith.constant dense<0.000000e+00> : vector<10x160xf32>
    %222 = tpu.matmul %221, %28, %cst_142 {dimension_numbers = #tpu.dot_dimension_numbers<[1], [0], [0], [1], [0, 0, 1, 1], [], []>} : vector<10x84xbf16>, vector<84x160xbf16>, vector<10x160xf32> -> vector<10x160xf32>
    %223 = arith.addf %220, %222 : vector<10x160xf32>
    %224 = vector.extract_strided_slice %212 {offsets = [4, 0], sizes = [10, 84], strides = [1, 1]} : vector<14x84xbf16> to vector<10x84xbf16>
    %cst_143 = arith.constant dense<0.000000e+00> : vector<10x160xf32>
    %225 = tpu.matmul %224, %30, %cst_143 {dimension_numbers = #tpu.dot_dimension_numbers<[1], [0], [0], [1], [0, 0, 1, 1], [], []>} : vector<10x84xbf16>, vector<84x160xbf16>, vector<10x160xf32> -> vector<10x160xf32>
    %226 = arith.addf %223, %225 : vector<10x160xf32>
    %227 = vector.broadcast %31 : vector<1x160xf32> to vector<10x160xf32>
    %228 = arith.addf %226, %227 : vector<10x160xf32>
    %cst_144 = arith.constant dense<0.000000e+00> : vector<160xf32>
    %229 = vector.multi_reduction <add>, %228, %cst_144 [0] : vector<10x160xf32> to vector<160xf32>
    %230 = vector.shape_cast %229 : vector<160xf32> to vector<1x160xf32>
    %231 = arith.mulf %228, %228 : vector<10x160xf32>
    %cst_145 = arith.constant dense<0.000000e+00> : vector<160xf32>
    %232 = vector.multi_reduction <add>, %231, %cst_145 [0] : vector<10x160xf32> to vector<160xf32>
    %233 = vector.shape_cast %232 : vector<160xf32> to vector<1x160xf32>
    %234 = tpu.concatenate %230, %233 in 0 : vector<1x160xf32>, vector<1x160xf32> -> vector<2x160xf32>
    %cst_146 = arith.constant dense<0.000000e+00> : vector<2x16xf32>
    %235 = tpu.matmul %234, %32, %cst_146 {dimension_numbers = #tpu.dot_dimension_numbers<[1], [0], [0], [1], [0, 0, 1, 1], [], []>} : vector<2x160xf32>, vector<160x16xf32>, vector<2x16xf32> -> vector<2x16xf32>
    %cst_147 = arith.constant 0.00999999977 : f32
    %236 = vector.broadcast %cst_147 : f32 to vector<2x16xf32>
    %237 = arith.mulf %235, %236 : vector<2x16xf32>
    %238 = vector.extract_strided_slice %237 {offsets = [0, 0], sizes = [1, 16], strides = [1, 1]} : vector<2x16xf32> to vector<1x16xf32>
    %239 = vector.extract_strided_slice %237 {offsets = [1, 0], sizes = [1, 16], strides = [1, 1]} : vector<2x16xf32> to vector<1x16xf32>
    %240 = arith.mulf %238, %238 : vector<1x16xf32>
    %241 = arith.subf %239, %240 : vector<1x16xf32>
    %cst_148 = arith.constant 9.99999974E-6 : f32
    %242 = vector.broadcast %cst_148 : f32 to vector<1x16xf32>
    %243 = arith.addf %241, %242 : vector<1x16xf32>
    %244 = math.rsqrt %243 : vector<1x16xf32>
    %245 = tpu.concatenate %238, %244 in 0 : vector<1x16xf32>, vector<1x16xf32> -> vector<2x16xf32>
    %cst_149 = arith.constant dense<0.000000e+00> : vector<2x160xf32>
    %246 = tpu.matmul %245, %33, %cst_149 {dimension_numbers = #tpu.dot_dimension_numbers<[1], [0], [0], [1], [0, 0, 1, 1], [], []>} : vector<2x16xf32>, vector<16x160xf32>, vector<2x160xf32> -> vector<2x160xf32>
    %247 = vector.extract_strided_slice %246 {offsets = [0, 0], sizes = [1, 160], strides = [1, 1]} : vector<2x160xf32> to vector<1x160xf32>
    %248 = vector.broadcast %247 : vector<1x160xf32> to vector<10x160xf32>
    %249 = arith.subf %228, %248 : vector<10x160xf32>
    %250 = vector.extract_strided_slice %246 {offsets = [1, 0], sizes = [1, 160], strides = [1, 1]} : vector<2x160xf32> to vector<1x160xf32>
    %251 = vector.broadcast %250 : vector<1x160xf32> to vector<10x160xf32>
    %252 = arith.mulf %249, %251 : vector<10x160xf32>
    %cst_150 = arith.constant 0.000000e+00 : f32
    %253 = vector.broadcast %cst_150 : f32 to vector<10x160xf32>
    %254 = arith.maximumf %252, %253 : vector<10x160xf32>
    %255 = arith.truncf %254 : vector<10x160xf32> to vector<10x160xbf16>
    %cst_151 = arith.constant dense<0.000000e+00> : vector<5x160xf32>
    %256 = tpu.matmul %35, %255, %cst_151 {dimension_numbers = #tpu.dot_dimension_numbers<[1], [0], [0], [1], [0, 0, 1, 1], [], []>} : vector<5x10xbf16>, vector<10x160xbf16>, vector<5x160xf32> -> vector<5x160xf32>
    %cst_152 = arith.constant dense<0.000000e+00> : vector<5x160xf32>
    %257 = tpu.matmul %37, %255, %cst_152 {dimension_numbers = #tpu.dot_dimension_numbers<[1], [0], [0], [1], [0, 0, 1, 1], [], []>} : vector<5x10xbf16>, vector<10x160xbf16>, vector<5x160xf32> -> vector<5x160xf32>
    %258 = arith.maximumf %256, %257 : vector<5x160xf32>
    %259 = arith.truncf %258 : vector<5x160xf32> to vector<5x160xbf16>
    %cst_153 = arith.constant dense<0.000000e+00> : vector<5x80xf32>
    %260 = tpu.matmul %259, %39, %cst_153 {dimension_numbers = #tpu.dot_dimension_numbers<[1], [0], [0], [1], [0, 0, 1, 1], [], []>} : vector<5x160xbf16>, vector<160x80xbf16>, vector<5x80xf32> -> vector<5x80xf32>
    %cst_154 = arith.constant dense<0.000000e+00> : vector<5x80xf32>
    %261 = tpu.matmul %259, %41, %cst_154 {dimension_numbers = #tpu.dot_dimension_numbers<[1], [0], [0], [1], [0, 0, 1, 1], [], []>} : vector<5x160xbf16>, vector<160x80xbf16>, vector<5x80xf32> -> vector<5x80xf32>
    %262 = arith.maximumf %260, %261 : vector<5x80xf32>
    %263 = vector.extract_strided_slice %159 {offsets = [0, 0], sizes = [1, 80], strides = [1, 1]} : vector<5x80xf32> to vector<1x80xf32>
    %264 = vector.extract_strided_slice %262 {offsets = [0, 0], sizes = [1, 80], strides = [1, 1]} : vector<5x80xf32> to vector<1x80xf32>
    %265 = tpu.concatenate %263, %264 in 0 : vector<1x80xf32>, vector<1x80xf32> -> vector<2x80xf32>
    %266 = arith.truncf %265 : vector<2x80xf32> to vector<2x80xbf16>
    %cst_155 = arith.constant dense<0.000000e+00> : vector<2x120xf32>
    %267 = tpu.matmul %266, %43, %cst_155 {dimension_numbers = #tpu.dot_dimension_numbers<[1], [0], [0], [1], [0, 0, 1, 1], [], []>} : vector<2x80xbf16>, vector<80x120xbf16>, vector<2x120xf32> -> vector<2x120xf32>
    %268 = vector.extract_strided_slice %159 {offsets = [1, 0], sizes = [1, 80], strides = [1, 1]} : vector<5x80xf32> to vector<1x80xf32>
    %269 = vector.extract_strided_slice %262 {offsets = [1, 0], sizes = [1, 80], strides = [1, 1]} : vector<5x80xf32> to vector<1x80xf32>
    %270 = tpu.concatenate %268, %269 in 0 : vector<1x80xf32>, vector<1x80xf32> -> vector<2x80xf32>
    %271 = arith.truncf %270 : vector<2x80xf32> to vector<2x80xbf16>
    %cst_156 = arith.constant dense<0.000000e+00> : vector<2x120xf32>
    %272 = tpu.matmul %271, %45, %cst_156 {dimension_numbers = #tpu.dot_dimension_numbers<[1], [0], [0], [1], [0, 0, 1, 1], [], []>} : vector<2x80xbf16>, vector<80x120xbf16>, vector<2x120xf32> -> vector<2x120xf32>
    %273 = arith.addf %267, %272 : vector<2x120xf32>
    %274 = vector.extract_strided_slice %159 {offsets = [2, 0], sizes = [1, 80], strides = [1, 1]} : vector<5x80xf32> to vector<1x80xf32>
    %275 = vector.extract_strided_slice %262 {offsets = [2, 0], sizes = [1, 80], strides = [1, 1]} : vector<5x80xf32> to vector<1x80xf32>
    %276 = tpu.concatenate %274, %275 in 0 : vector<1x80xf32>, vector<1x80xf32> -> vector<2x80xf32>
    %277 = arith.truncf %276 : vector<2x80xf32> to vector<2x80xbf16>
    %cst_157 = arith.constant dense<0.000000e+00> : vector<2x120xf32>
    %278 = tpu.matmul %277, %47, %cst_157 {dimension_numbers = #tpu.dot_dimension_numbers<[1], [0], [0], [1], [0, 0, 1, 1], [], []>} : vector<2x80xbf16>, vector<80x120xbf16>, vector<2x120xf32> -> vector<2x120xf32>
    %279 = arith.addf %273, %278 : vector<2x120xf32>
    %280 = vector.extract_strided_slice %159 {offsets = [3, 0], sizes = [1, 80], strides = [1, 1]} : vector<5x80xf32> to vector<1x80xf32>
    %281 = vector.extract_strided_slice %262 {offsets = [3, 0], sizes = [1, 80], strides = [1, 1]} : vector<5x80xf32> to vector<1x80xf32>
    %282 = tpu.concatenate %280, %281 in 0 : vector<1x80xf32>, vector<1x80xf32> -> vector<2x80xf32>
    %283 = arith.truncf %282 : vector<2x80xf32> to vector<2x80xbf16>
    %cst_158 = arith.constant dense<0.000000e+00> : vector<2x120xf32>
    %284 = tpu.matmul %283, %49, %cst_158 {dimension_numbers = #tpu.dot_dimension_numbers<[1], [0], [0], [1], [0, 0, 1, 1], [], []>} : vector<2x80xbf16>, vector<80x120xbf16>, vector<2x120xf32> -> vector<2x120xf32>
    %285 = arith.addf %279, %284 : vector<2x120xf32>
    %286 = vector.extract_strided_slice %159 {offsets = [4, 0], sizes = [1, 80], strides = [1, 1]} : vector<5x80xf32> to vector<1x80xf32>
    %287 = vector.extract_strided_slice %262 {offsets = [4, 0], sizes = [1, 80], strides = [1, 1]} : vector<5x80xf32> to vector<1x80xf32>
    %288 = tpu.concatenate %286, %287 in 0 : vector<1x80xf32>, vector<1x80xf32> -> vector<2x80xf32>
    %289 = arith.truncf %288 : vector<2x80xf32> to vector<2x80xbf16>
    %cst_159 = arith.constant dense<0.000000e+00> : vector<2x120xf32>
    %290 = tpu.matmul %289, %51, %cst_159 {dimension_numbers = #tpu.dot_dimension_numbers<[1], [0], [0], [1], [0, 0, 1, 1], [], []>} : vector<2x80xbf16>, vector<80x120xbf16>, vector<2x120xf32> -> vector<2x120xf32>
    %291 = arith.addf %285, %290 : vector<2x120xf32>
    %292 = vector.broadcast %52 : vector<1x120xf32> to vector<2x120xf32>
    %293 = arith.addf %291, %292 : vector<2x120xf32>
    %cst_160 = arith.constant 0.000000e+00 : f32
    %294 = vector.broadcast %cst_160 : f32 to vector<2x120xf32>
    %295 = arith.maximumf %293, %294 : vector<2x120xf32>
    %296 = arith.truncf %295 : vector<2x120xf32> to vector<2x120xbf16>
    %cst_161 = arith.constant dense<0.000000e+00> : vector<2x84xf32>
    %297 = tpu.matmul %296, %53, %cst_161 {dimension_numbers = #tpu.dot_dimension_numbers<[1], [0], [0], [1], [0, 0, 1, 1], [], []>} : vector<2x120xbf16>, vector<120x84xbf16>, vector<2x84xf32> -> vector<2x84xf32>
    %298 = vector.broadcast %54 : vector<1x84xf32> to vector<2x84xf32>
    %299 = arith.addf %297, %298 : vector<2x84xf32>
    %cst_162 = arith.constant 0.000000e+00 : f32
    %300 = vector.broadcast %cst_162 : f32 to vector<2x84xf32>
    %301 = arith.maximumf %299, %300 : vector<2x84xf32>
    %302 = arith.truncf %301 : vector<2x84xf32> to vector<2x84xbf16>
    %cst_163 = arith.constant dense<0.000000e+00> : vector<2x128xf32>
    %303 = tpu.matmul %302, %55, %cst_163 {dimension_numbers = #tpu.dot_dimension_numbers<[1], [0], [0], [1], [0, 0, 1, 1], [], []>} : vector<2x84xbf16>, vector<84x128xbf16>, vector<2x128xf32> -> vector<2x128xf32>
    %304 = vector.broadcast %56 : vector<1x128xf32> to vector<2x128xf32>
    %305 = arith.addf %303, %304 : vector<2x128xf32>
    %c0_164 = arith.constant 0 : index
    %c0_165 = arith.constant 0 : index
    %c0_166 = arith.constant 0 : index
    %306 = vector.load %arg20[%c0_164, %c0_165, %c0_166] : memref<1x2x128xf32, #tpu.memory_space<vmem>>, vector<1x2x128xf32>
    %307 = vector.shape_cast %306 : vector<1x2x128xf32> to vector<2x128xf32>
    %308 = vector.shape_cast %305 : vector<2x128xf32> to vector<1x2x128xf32>
    tpu.vector_store %arg20[%c0_164, %c0_165, %c0_166], %308 {strides = array<i32>} : memref<1x2x128xf32, #tpu.memory_space<vmem>>, vector<1x2x128xf32>,
    return
  }
  func.func @transform_0(%arg0: i32) -> (i32, i32, i32) {
    %c0_i32 = arith.constant 0 : i32
    %c0_i32_0 = arith.constant 0 : i32
    %c0_i32_1 = arith.constant 0 : i32
    return %arg0, %c0_i32, %c0_i32_0 : i32, i32, i32
  }
  func.func @transform_1(%arg0: i32) -> (i32, i32, i32) {
    %c0_i32 = arith.constant 0 : i32
    %c0_i32_0 = arith.constant 0 : i32
    %c0_i32_1 = arith.constant 0 : i32
    %c0_i32_2 = arith.constant 0 : i32
    return %c0_i32, %c0_i32_0, %c0_i32_1 : i32, i32, i32
  }
  func.func @transform_2(%arg0: i32) -> (i32, i32) {
    %c0_i32 = arith.constant 0 : i32
    %c0_i32_0 = arith.constant 0 : i32
    %c0_i32_1 = arith.constant 0 : i32
    return %c0_i32, %c0_i32_0 : i32, i32
  }
  func.func @transform_3(%arg0: i32) -> (i32, i32) {
    %c0_i32 = arith.constant 0 : i32
    %c0_i32_0 = arith.constant 0 : i32
    %c0_i32_1 = arith.constant 0 : i32
    return %c0_i32, %c0_i32_0 : i32, i32
  }
  func.func @transform_4(%arg0: i32) -> (i32, i32) {
    %c0_i32 = arith.constant 0 : i32
    %c0_i32_0 = arith.constant 0 : i32
    %c0_i32_1 = arith.constant 0 : i32
    return %c0_i32, %c0_i32_0 : i32, i32
  }
  func.func @transform_5(%arg0: i32) -> (i32, i32, i32) {
    %c0_i32 = arith.constant 0 : i32
    %c0_i32_0 = arith.constant 0 : i32
    %c0_i32_1 = arith.constant 0 : i32
    %c0_i32_2 = arith.constant 0 : i32
    return %c0_i32, %c0_i32_0, %c0_i32_1 : i32, i32, i32
  }
  func.func @transform_6(%arg0: i32) -> (i32, i32, i32) {
    %c0_i32 = arith.constant 0 : i32
    %c0_i32_0 = arith.constant 0 : i32
    %c0_i32_1 = arith.constant 0 : i32
    %c0_i32_2 = arith.constant 0 : i32
    return %c0_i32, %c0_i32_0, %c0_i32_1 : i32, i32, i32
  }
  func.func @transform_7(%arg0: i32) -> (i32, i32, i32) {
    %c0_i32 = arith.constant 0 : i32
    %c0_i32_0 = arith.constant 0 : i32
    %c0_i32_1 = arith.constant 0 : i32
    %c0_i32_2 = arith.constant 0 : i32
    return %c0_i32, %c0_i32_0, %c0_i32_1 : i32, i32, i32
  }
  func.func @transform_8(%arg0: i32) -> (i32, i32) {
    %c0_i32 = arith.constant 0 : i32
    %c0_i32_0 = arith.constant 0 : i32
    %c0_i32_1 = arith.constant 0 : i32
    return %c0_i32, %c0_i32_0 : i32, i32
  }
  func.func @transform_9(%arg0: i32) -> (i32, i32) {
    %c0_i32 = arith.constant 0 : i32
    %c0_i32_0 = arith.constant 0 : i32
    %c0_i32_1 = arith.constant 0 : i32
    return %c0_i32, %c0_i32_0 : i32, i32
  }
  func.func @transform_10(%arg0: i32) -> (i32, i32) {
    %c0_i32 = arith.constant 0 : i32
    %c0_i32_0 = arith.constant 0 : i32
    %c0_i32_1 = arith.constant 0 : i32
    return %c0_i32, %c0_i32_0 : i32, i32
  }
  func.func @transform_11(%arg0: i32) -> (i32, i32, i32) {
    %c0_i32 = arith.constant 0 : i32
    %c0_i32_0 = arith.constant 0 : i32
    %c0_i32_1 = arith.constant 0 : i32
    %c0_i32_2 = arith.constant 0 : i32
    return %c0_i32, %c0_i32_0, %c0_i32_1 : i32, i32, i32
  }
  func.func @transform_12(%arg0: i32) -> (i32, i32, i32) {
    %c0_i32 = arith.constant 0 : i32
    %c0_i32_0 = arith.constant 0 : i32
    %c0_i32_1 = arith.constant 0 : i32
    %c0_i32_2 = arith.constant 0 : i32
    return %c0_i32, %c0_i32_0, %c0_i32_1 : i32, i32, i32
  }
  func.func @transform_13(%arg0: i32) -> (i32, i32, i32) {
    %c0_i32 = arith.constant 0 : i32
    %c0_i32_0 = arith.constant 0 : i32
    %c0_i32_1 = arith.constant 0 : i32
    %c0_i32_2 = arith.constant 0 : i32
    return %c0_i32, %c0_i32_0, %c0_i32_1 : i32, i32, i32
  }
  func.func @transform_14(%arg0: i32) -> (i32, i32) {
    %c0_i32 = arith.constant 0 : i32
    %c0_i32_0 = arith.constant 0 : i32
    %c0_i32_1 = arith.constant 0 : i32
    return %c0_i32, %c0_i32_0 : i32, i32
  }
  func.func @transform_15(%arg0: i32) -> (i32, i32) {
    %c0_i32 = arith.constant 0 : i32
    %c0_i32_0 = arith.constant 0 : i32
    %c0_i32_1 = arith.constant 0 : i32
    return %c0_i32, %c0_i32_0 : i32, i32
  }
  func.func @transform_16(%arg0: i32) -> (i32, i32) {
    %c0_i32 = arith.constant 0 : i32
    %c0_i32_0 = arith.constant 0 : i32
    %c0_i32_1 = arith.constant 0 : i32
    return %c0_i32, %c0_i32_0 : i32, i32
  }
  func.func @transform_17(%arg0: i32) -> (i32, i32) {
    %c0_i32 = arith.constant 0 : i32
    %c0_i32_0 = arith.constant 0 : i32
    %c0_i32_1 = arith.constant 0 : i32
    return %c0_i32, %c0_i32_0 : i32, i32
  }
  func.func @transform_18(%arg0: i32) -> (i32, i32) {
    %c0_i32 = arith.constant 0 : i32
    %c0_i32_0 = arith.constant 0 : i32
    %c0_i32_1 = arith.constant 0 : i32
    return %c0_i32, %c0_i32_0 : i32, i32
  }
  func.func @transform_19(%arg0: i32) -> (i32, i32, i32) {
    %c0_i32 = arith.constant 0 : i32
    %c0_i32_0 = arith.constant 0 : i32
    %c0_i32_1 = arith.constant 0 : i32
    return %arg0, %c0_i32, %c0_i32_0 : i32, i32, i32
  }
}

</mosaic_0001>

<bundles_post_ra>
// kernel: tpu_custom_call.1
= control target key start
LH: loop header
LB: loop body
LE: loop exit
PB: predicated region body
PF: predicated region fallthrough
CT: control target
= control target key end

     0   :  { %s8344_s0 = inlined_call_operand.vmem [shape: bf16[2,32,96], index: 0, kind: input, shape index: {}]   ;;  %s8345_s1 = inlined_call_operand.vmem [shape: bf16[5,96,168], index: 1, kind: input, shape index: {}]   ;;  %s8346_s2 = inlined_call_operand.vmem [shape: f32[1,168], index: 2, kind: input, shape index: {}]   ;;  %s8347_s3 = inlined_call_operand.vmem [shape: f32[168,6], index: 3, kind: input, shape index: {}]   ;;  %s8348_s4 = inlined_call_operand.vmem [shape: f32[6,168], index: 4, kind: input, shape index: {}]   ;;  %s8349_s5 = inlined_call_operand.vmem [shape: bf16[2,14,28], index: 5, kind: input, shape index: {}]   ;;  %s8350_s6 = inlined_call_operand.vmem [shape: bf16[2,168,84], index: 6, kind: input, shape index: {}]   ;;  %s8351_s7 = inlined_call_operand.vmem [shape: bf16[5,84,160], index: 7, kind: input, shape index: {}]   ;;  %s8352_s8 = inlined_call_operand.vmem [shape: f32[1,160], index: 8, kind: input, shape index: {}]   ;;  %s8353_s9 = inlined_call_operand.vmem [shape: f32[160,16], index: 9, kind: input, shape index: {}]   ;;  %s8354_s10 = inlined_call_operand.vmem [shape: f32[16,160], index: 10, kind: input, shape index: {}]   ;;  %s8355_s11 = inlined_call_operand.vmem [shape: bf16[2,5,10], index: 11, kind: input, shape index: {}]   ;;  %s8356_s12 = inlined_call_operand.vmem [shape: bf16[2,160,80], index: 12, kind: input, shape index: {}]   ;;  %s8357_s13 = inlined_call_operand.vmem [shape: bf16[5,80,120], index: 13, kind: input, shape index: {}]   ;;  %s8358_s14 = inlined_call_operand.vmem [shape: f32[1,120], index: 14, kind: input, shape index: {}]   ;;  %s8359_s15 = inlined_call_operand.vmem [shape: bf16[120,84], index: 15, kind: input, shape index: {}]   ;;  %s8360_s16 = inlined_call_operand.vmem [shape: f32[1,84], index: 16, kind: input, shape index: {}]   ;;  %s8361_s17 = inlined_call_operand.vmem [shape: bf16[84,128], index: 17, kind: input, shape index: {}]   ;;  %s8362_s18 = inlined_call_operand.vmem [shape: f32[1,128], index: 18, kind: input, shape index: {}]   ;;  %s8363_s19 = inlined_call_operand.hbm [shape: f32[1,2,128], index: 19, kind: output, shape index: {}]  }
   0x1   :  { %8385 = sst [smem:[#allocation12_spill]] %s8344_s0 }
   0x2   :  { %8386 = sst [smem:[#allocation13_spill]] %s8345_s1 }
   0x3   :  { %8387 = sst [smem:[#allocation14_spill]] %s8346_s2 }
   0x4   :  { %8388 = sst [smem:[#allocation15_spill]] %s8347_s3 }
   0x5   :  { %s8389_s20 = sld [smem:[#allocation13_spill]]  ;;  %v8369_v2 = vmov 0   ;;  %v8367_v6 = vmov 0.0|0.0   ;;  %s8390_s22 = sld [smem:[#allocation12_spill]]  ;;  %vm809_vm0 = vsmask.f32 6400 }
   0x6   :  { %540 = vmatprep.mubr.bf16.mxu0 %v8369_v2  ;;  %5507 = vmatprep.subr.bf16.mxu1 %v8367_v6  ;;  %vm944_vm1 = vcmask 1045504   ;;  %vm425_vm2 = vsmask.f32 7424  ;;  %vm501_vm3 = vcmask 785408   ;;  %s8391_s30 = sld [smem:[#allocation15_spill]]  ;;  %vm678_vm4 = vcmask 1046528  }
   0xb   :  { %v5736_v0 = vld [vmem:[%s8389_s20 + $0x64] ss:$8 sps:$4 sm:$0xff]   ;;  %v5738_v1 = vld [vmem:[%s8389_s20 + $0x60] ss:$8 sps:$4 sm:$0xff]   ;;  %v5739_v3 = vld [vmem:[%s8389_s20 + $0x74] ss:$8 sps:$4 sm:$0xff]  }
   0xc   :  { %508 = vmatprep.subr.bf16.mxu0 %v5736_v0  ;;  %v5741_v4 = vld [vmem:[%s8389_s20 + $0x70] ss:$8 sps:$4 sm:$0xff]   ;;  %v5742_v5 = vld [vmem:[%s8389_s20 + $0x84] ss:$8 sps:$4 sm:$0xff]   ;;  %v5744_v7 = vld [vmem:[%s8389_s20 + $0x80] ss:$8 sps:$4 sm:$0xff]  }
   0xd   :  { %509 = vmatpush1.bf16.msra.mxu0 %v5738_v1  ;;  %v5745_v8 = vld [vmem:[%s8389_s20 + $0x94] ss:$8 sps:$4 sm:$0xff]   ;;  %v5747_v9 = vld [vmem:[%s8389_s20 + $0x90] ss:$8 sps:$4 sm:$0xff]   ;;  %v6317_v10 = vld [vmem:[%s8390_s22] sm:$0xff]  }
   0xe   :  { %510 = vmatprep.subr.bf16.mxu0 %v5739_v3  ;;  %v6322_v11 = vld [vmem:[%s8390_s22 + $0x8] sm:$0xff]   ;;  %v427_v13 = vshrl.u32 %v6317_v10, 16  ;;  %v429_v14 = vshll.u32 %v6317_v10, 16  ;;  %v5751_v22 = vld [vmem:[%s8389_s20 + $0xb4] ss:$8 sps:$4 sm:$0xff]   ;;  %v945_v26 = vrot.slane %v6317_v10, 2 }
   0xf   :  { %v5748_v12 = vld [vmem:[%s8389_s20 + $0xa4] ss:$8 sps:$4 sm:$0xff]   ;;  %v434_v15 = vshll.u32 %v6322_v11, 16  ;;  %v438_v18 = vshrl.u32 %v6322_v11, 16  ;;  %v5750_v19 = vld [vmem:[%s8389_s20 + $0xa0] ss:$8 sps:$4 sm:$0xff]  }
  0x10   :  { %v810_v16 = vrot.slane %v427_v13, 1  ;;  %v811_v17 = vrot.slane %v429_v14, 2  ;;  %v431_v20 = vrot.slane %v429_v14, 1  ;;  %v5753_v27 = vld [vmem:[%s8389_s20 + $0xb0] ss:$8 sps:$4 sm:$0xff]   ;;  %v946_v30 = vrot.slane %v6322_v11, 2 }
  0x11   :  { %511 = vmatpush1.bf16.msra.mxu0 %v5741_v4  ;;  %v814_v21 = vrot.slane %v434_v15, 2  ;;  %v813_v23 = vrot.slane %v438_v18, 1  ;;  %v436_v29 = vrot.slane %v434_v15, 1  ;;  %v5756_v31 = vld [vmem:[%s8389_s20 + $0x4] ss:$8 sps:$4 sm:$0xff]   ;;  %v131_v49 = vld [vmem:[%s8391_s30 + $0x10] sm:$0xff] }
  0x12   :  { %512 = vmatprep.subr.bf16.mxu0 %v5742_v5  ;;  %v812_v24 = vor.u32 %v811_v17, %v810_v16  ;;  %v432_v28 = vor.u32 %v431_v20, %v427_v13  ;;  %v6354_v33 = vsel %vm944_vm1, %v945_v26, %v946_v30  ;;  %v5754_v34 = vld [vmem:[%s8389_s20] ss:$8 sps:$4 sm:$0xff]   ;;  %v5761_v36 = vld [vmem:[%s8389_s20 + $0x14] ss:$8 sps:$4 sm:$0xff]   ;;  %v5759_v37 = vld [vmem:[%s8389_s20 + $0x10] ss:$8 sps:$4 sm:$0xff]  }
  0x13   :  { %v6337_v25 = vor.u32 %v814_v21, %v813_v23  ;;  %v5764_v38 = vld [vmem:[%s8389_s20 + $0x24] ss:$8 sps:$4 sm:$0xff]   ;;  %v440_v39 = vor.u32 %v438_v18, %v436_v29  ;;  %v5762_v40 = vld [vmem:[%s8389_s20 + $0x20] ss:$8 sps:$4 sm:$0xff]   ;;  %v5767_v41 = vld [vmem:[%s8389_s20 + $0x34] ss:$8 sps:$4 sm:$0xff]  }
  0x14   :  { %v437_v35 = vsel %vm425_vm2, %v432_v28, %v436_v29  ;;  %v5765_v42 = vld [vmem:[%s8389_s20 + $0x30] ss:$8 sps:$4 sm:$0xff]   ;;  %v5770_v43 = vld [vmem:[%s8389_s20 + $0x44] ss:$8 sps:$4 sm:$0xff]   ;;  %v5768_v44 = vld [vmem:[%s8389_s20 + $0x40] ss:$8 sps:$4 sm:$0xff]  }
  0x15   :  { %513 = vmatpush1.bf16.msra.mxu0 %v5744_v7  ;;  %v6349_v32 = vsel %vm809_vm0, %v812_v24, %v6337_v25  ;;  %v5773_v45 = vld [vmem:[%s8389_s20 + $0x54] ss:$8 sps:$4 sm:$0xff]   ;;  %v5771_v46 = vld [vmem:[%s8389_s20 + $0x50] ss:$8 sps:$4 sm:$0xff]   ;;  %v129_v47 = vld [vmem:[%s8391_s30] sm:$0xff]  ;;  %v679_v3 = vrot.slane %v6317_v10, 1 }
  0x16   :  { %514 = vmatprep.subr.bf16.mxu0 %v5745_v8  ;;  %v130_v48 = vld [vmem:[%s8391_s30 + $0x8] sm:$0xff]  ;;  %v132_v50 = vld [vmem:[%s8391_s30 + $0x18] sm:$0xff]  ;;  %v680_v4 = vrot.slane %v6322_v11, 1 }
  0x17   :  { %v5776_v51 = vld [vmem:[%s8389_s20 + $0xc4] ss:$8 sps:$4 sm:$0xff]   ;;  %v6409_v52 = vpack.c.bf16 %v130_v48, %v129_v47  ;;  %v5774_v53 = vld [vmem:[%s8389_s20 + $0xc0] ss:$8 sps:$4 sm:$0xff]   ;;  %v5779_v54 = vld [vmem:[%s8389_s20 + $0xd4] ss:$8 sps:$4 sm:$0xff]   ;;  %v6418_v55 = vpack.c.bf16 %v132_v50, %v131_v49 }
  0x18   :  { %v5777_v56 = vld [vmem:[%s8389_s20 + $0xd0] ss:$8 sps:$4 sm:$0xff]   ;;  %v5782_v57 = vld [vmem:[%s8389_s20 + $0xe4] ss:$8 sps:$4 sm:$0xff]   ;;  %v5780_v58 = vld [vmem:[%s8389_s20 + $0xe0] ss:$8 sps:$4 sm:$0xff]   ;;  %v681_v8 = vsel %vm678_vm4, %v679_v3, %v680_v4 }
  0x19   :  { %515 = vmatpush1.bf16.msra.mxu0 %v5747_v9  ;;  %5509 = vmatpush1.bf16.msra.mxu1 %v6409_v52  ;;  %v5785_v59 = vld [vmem:[%s8389_s20 + $0xf4] ss:$8 sps:$4 sm:$0xff]   ;;  %v5783_v60 = vld [vmem:[%s8389_s20 + $0xf0] ss:$8 sps:$4 sm:$0xff]   ;;  %v5788_v61 = vld [vmem:[%s8389_s20 + $0x104] ss:$8 sps:$4 sm:$0xff]  }
  0x1a   :  { %516 = vmatprep.subr.bf16.mxu0 %v5748_v12  ;;  %5510 = vmatprep.subr.bf16.mxu1 %v8367_v6  ;;  %v5786_v62 = vld [vmem:[%s8389_s20 + $0x100] ss:$8 sps:$4 sm:$0xff]   ;;  %v5791_v63 = vld [vmem:[%s8389_s20 + $0x114] ss:$8 sps:$4 sm:$0xff]   ;;  %v5789_v0 = vld [vmem:[%s8389_s20 + $0x110] ss:$8 sps:$4 sm:$0xff]  }
  0x1b   :  { %v5794_v1 = vld [vmem:[%s8389_s20 + $0x124] ss:$8 sps:$4 sm:$0xff]   ;;  %v5792_v5 = vld [vmem:[%s8389_s20 + $0x120] ss:$8 sps:$4 sm:$0xff]   ;;  %v5797_v7 = vld [vmem:[%s8389_s20 + $0x134] ss:$8 sps:$4 sm:$0xff]  }
  0x1c   :  { %v5795_v9 = vld [vmem:[%s8389_s20 + $0x130] ss:$8 sps:$4 sm:$0xff]   ;;  %v5798_v12 = vld [vmem:[%s8389_s20 + $0x140] ss:$8 sps:$4 sm:$0xff]   ;;  %v5803_v13 = vld [vmem:[%s8389_s20 + $0x154] ss:$8 sps:$4 sm:$0xff]  }
  0x1d   :  { %517 = vmatpush1.bf16.msra.mxu0 %v5750_v19  ;;  %5512 = vmatpush1.bf16.msra.mxu1 %v6418_v55  ;;  %v5801_v14 = vld [vmem:[%s8389_s20 + $0x150] ss:$8 sps:$4 sm:$0xff]   ;;  %v5806_v15 = vld [vmem:[%s8389_s20 + $0x164] ss:$8 sps:$4 sm:$0xff]   ;;  %v5804_v16 = vld [vmem:[%s8389_s20 + $0x160] ss:$8 sps:$4 sm:$0xff]  }
  0x1e   :  { %518 = vmatprep.subr.bf16.mxu0 %v5751_v22  ;;  %5513 = vmatprep.subr.bf16.mxu1 %v8367_v6  ;;  %v5809_v17 = vld [vmem:[%s8389_s20 + $0x174] ss:$8 sps:$4 sm:$0xff]   ;;  %v5807_v18 = vld [vmem:[%s8389_s20 + $0x170] ss:$8 sps:$4 sm:$0xff]   ;;  %v5812_v19 = vld [vmem:[%s8389_s20 + $0x184] ss:$8 sps:$4 sm:$0xff]  }
  0x1f   :  { %v5810_v20 = vld [vmem:[%s8389_s20 + $0x180] ss:$8 sps:$4 sm:$0xff]   ;;  %v5815_v21 = vld [vmem:[%s8389_s20 + $0x194] ss:$8 sps:$4 sm:$0xff]   ;;  %v5813_v22 = vld [vmem:[%s8389_s20 + $0x190] ss:$8 sps:$4 sm:$0xff]  }
  0x20   :  { %v5818_v23 = vld [vmem:[%s8389_s20 + $0x1a4] ss:$8 sps:$4 sm:$0xff]   ;;  %v5816_v24 = vld [vmem:[%s8389_s20 + $0x1a0] ss:$8 sps:$4 sm:$0xff]   ;;  %v5821_v26 = vld [vmem:[%s8389_s20 + $0x1b4] ss:$8 sps:$4 sm:$0xff]  }
  0x21   :  { %519 = vmatpush1.bf16.msra.mxu0 %v5753_v27  ;;  %v5819_v27 = vld [vmem:[%s8389_s20 + $0x1b0] ss:$8 sps:$4 sm:$0xff]   ;;  %v5824_v28 = vld [vmem:[%s8389_s20 + $0x1c4] ss:$8 sps:$4 sm:$0xff]   ;;  %v5822_v29 = vld [vmem:[%s8389_s20 + $0x1c0] ss:$8 sps:$4 sm:$0xff]  }
  0x22   :  { %625 = vmatprep.subr.bf16.mxu0 %v5756_v31  ;;  %v5827_v31 = vld [vmem:[%s8389_s20 + $0x1d4] ss:$8 sps:$4 sm:$0xff]  }
  0x24   :  { %5072 = vmatmul.mubr.msk.bf16.vlgmr.msra.gmra.mrb[0].mxu0 %vm501_vm3, %v437_v35 }
  0x25   :  { %626 = vmatpush1.bf16.msra.mxu0 %v5754_v34  ;;  %550 = vmatprep.mubr.bf16.mxu0 %v8369_v2 }
  0x26   :  { %627 = vmatprep.subr.bf16.mxu0 %v5761_v36 }
  0x29   :  { %628 = vmatpush1.bf16.msra.mxu0 %v5759_v37 }
  0x2a   :  { %629 = vmatprep.subr.bf16.mxu0 %v5764_v38 }
  0x2c   :  { %5073 = vmatmul.mubr.msk.bf16.gmra.mrb[4].mxu0 %vm501_vm3, %v440_v39 }
  0x2d   :  { %630 = vmatpush1.bf16.msra.mxu0 %v5762_v40  ;;  %657 = vmatprep.mubr.bf16.mxu0 %v8369_v2 }
  0x2e   :  { %631 = vmatprep.subr.bf16.mxu0 %v5767_v41 }
  0x31   :  { %632 = vmatpush1.bf16.msra.mxu0 %v5765_v42 }
  0x32   :  { %633 = vmatprep.subr.bf16.mxu0 %v5770_v43 }
  0x35   :  { %634 = vmatpush1.bf16.msra.mxu0 %v5768_v44 }
  0x36   :  { %635 = vmatprep.subr.bf16.mxu0 %v5773_v45 }
  0x39   :  { %636 = vmatpush1.bf16.msra.mxu0 %v5771_v46 }
  0x3a   :  { %748 = vmatprep.subr.bf16.mxu0 %v5776_v51 }
  0x3c   :  { %5086 = vmatmul.mubr.msk.bf16.vlgmr.msra.gmra.mrb[0].mxu0 %vm501_vm3, %v6317_v10  ;;  %v5800_v10 = vld [vmem:[%s8389_s20 + $0x144] ss:$8 sps:$4 sm:$0xff]  }
  0x3d   :  { %749 = vmatpush1.bf16.msra.mxu0 %v5774_v53  ;;  %667 = vmatprep.mubr.bf16.mxu0 %v8369_v2 }
  0x3e   :  { %750 = vmatprep.subr.bf16.mxu0 %v5779_v54 }
  0x41   :  { %751 = vmatpush1.bf16.msra.mxu0 %v5777_v56 }
  0x42   :  { %752 = vmatprep.subr.bf16.mxu0 %v5782_v57 }
  0x44   :  { %5087 = vmatmul.mubr.msk.bf16.gmra.mrb[4].mxu0 %vm501_vm3, %v6322_v11 }
  0x45   :  { %753 = vmatpush1.bf16.msra.mxu0 %v5780_v58  ;;  %780 = vmatprep.mubr.bf16.mxu0 %v8369_v2 }
  0x46   :  { %754 = vmatprep.subr.bf16.mxu0 %v5785_v59 }
  0x49   :  { %755 = vmatpush1.bf16.msra.mxu0 %v5783_v60 }
  0x4a   :  { %756 = vmatprep.subr.bf16.mxu0 %v5788_v61 }
  0x4d   :  { %757 = vmatpush1.bf16.msra.mxu0 %v5786_v62 }
  0x4e   :  { %758 = vmatprep.subr.bf16.mxu0 %v5791_v63 }
  0x51   :  { %759 = vmatpush1.bf16.msra.mxu0 %v5789_v0 }
  0x52   :  { %883 = vmatprep.subr.bf16.mxu0 %v5794_v1 }
  0x54   :  { %5100 = vmatmul.mubr.msk.bf16.vlgmr.msra.gmra.mrb[0].mxu0 %vm501_vm3, %v681_v8 }
  0x55   :  { %884 = vmatpush1.bf16.msra.mxu0 %v5792_v5  ;;  %790 = vmatprep.mubr.bf16.mxu0 %v8369_v2 }
  0x56   :  { %885 = vmatprep.subr.bf16.mxu0 %v5797_v7 }
  0x59   :  { %886 = vmatpush1.bf16.msra.mxu0 %v5795_v9 }
  0x5a   :  { %887 = vmatprep.subr.bf16.mxu0 %v5800_v10 }
  0x5c   :  { %5101 = vmatmul.mubr.msk.bf16.gmra.mrb[4].mxu0 %vm501_vm3, %v680_v4 }
  0x5d   :  { %888 = vmatpush1.bf16.msra.mxu0 %v5798_v12  ;;  %915 = vmatprep.mubr.bf16.mxu0 %v8369_v2 }
  0x5e   :  { %889 = vmatprep.subr.bf16.mxu0 %v5803_v13 }
  0x61   :  { %890 = vmatpush1.bf16.msra.mxu0 %v5801_v14 }
  0x62   :  { %891 = vmatprep.subr.bf16.mxu0 %v5806_v15 }
  0x65   :  { %892 = vmatpush1.bf16.msra.mxu0 %v5804_v16 }
  0x66   :  { %893 = vmatprep.subr.bf16.mxu0 %v5809_v17 }
  0x69   :  { %894 = vmatpush1.bf16.msra.mxu0 %v5807_v18 }
  0x6a   :  { %1014 = vmatprep.subr.bf16.mxu0 %v5812_v19 }
  0x6c   :  { %5114 = vmatmul.mubr.msk.bf16.vlgmr.msra.gmra.mrb[0].mxu0 %vm501_vm3, %v6349_v32 }
  0x6d   :  { %1015 = vmatpush1.bf16.msra.mxu0 %v5810_v20  ;;  %925 = vmatprep.mubr.bf16.mxu0 %v8369_v2 }
  0x6e   :  { %1016 = vmatprep.subr.bf16.mxu0 %v5815_v21 }
  0x71   :  { %1017 = vmatpush1.bf16.msra.mxu0 %v5813_v22 }
  0x72   :  { %1018 = vmatprep.subr.bf16.mxu0 %v5818_v23 }
  0x74   :  { %5115 = vmatmul.mubr.msk.bf16.gmra.mrb[4].mxu0 %vm501_vm3, %v6337_v25  ;;  %v5825_v25 = vld [vmem:[%s8389_s20 + $0x1d0] ss:$8 sps:$4 sm:$0xff]  }
  0x75   :  { %1019 = vmatpush1.bf16.msra.mxu0 %v5816_v24  ;;  %1046 = vmatprep.mubr.bf16.mxu0 %v8369_v2 }
  0x76   :  { %1020 = vmatprep.subr.bf16.mxu0 %v5821_v26 }
  0x79   :  { %1021 = vmatpush1.bf16.msra.mxu0 %v5819_v27 }
  0x7a   :  { %1022 = vmatprep.subr.bf16.mxu0 %v5824_v28 }
  0x7d   :  { %1023 = vmatpush1.bf16.msra.mxu0 %v5822_v29 }
  0x7e   :  { %1024 = vmatprep.subr.bf16.mxu0 %v5827_v31 }
  0x7f   :  { %24 = vsyncpa [#allocation3], 0  ;;  %v133_v32 = vld [vmem:[%s8391_s30 + $0x20] sm:$0xff]  ;;  %v134_v34 = vld [vmem:[%s8391_s30 + $0x28] sm:$0xff]  ;;  %v8371_v56 = vmov 0.0   ;;  %v1076_v58 = vlaneseq  ;;  %s8392_s3 = sld [smem:[#allocation14_spill]] }
  0x80   :  { %v6554_v35 = vpack.c.bf16 %v134_v34, %v133_v32  ;;  %v135_v11 = vld [vmem:[%s8391_s30 + $0x30] sm:$0xff]  ;;  %v137_v36 = vld [vmem:[%s8391_s30 + $0x40] sm:$0xff]  ;;  %v138_v37 = vld [vmem:[%s8391_s30 + $0x48] sm:$0xff]  ;;  %vm1105_vm5 = vcmask 326656   ;;  %vm1096_vm6 = vcmask 1043456   ;;  %vm1111_vm7 = vcmask 322560  }
  0x81   :  { %1025 = vmatpush1.bf16.msra.mxu0 %v5825_v25  ;;  %v6574_v38 = vpack.c.bf16 %v138_v37, %v137_v36  ;;  %v139_v39 = vld [vmem:[%s8391_s30 + $0x50] sm:$0xff]  ;;  %v140_v40 = vld [vmem:[%s8391_s30 + $0x58] sm:$0xff]  ;;  %v141_v42 = vld [vmem:[%s8391_s30 + $0x60] sm:$0xff]  ;;  %v1077_v59 = vshrl.u32 %v1076_v58, 7  ;;  %vm1151_vm8 = vcmask 1040384   ;;  %vm1236_vm9 = vcmask 48128  }
  0x82   :  { %5515 = vmatpush1.bf16.msra.mxu1 %v6554_v35  ;;  %v6584_v41 = vpack.c.bf16 %v140_v40, %v139_v39  ;;  %v142_v43 = vld [vmem:[%s8391_s30 + $0x68] sm:$0xff]  ;;  %v143_v45 = vld [vmem:[%s8391_s30 + $0x70] sm:$0xff]  ;;  %v144_v46 = vld [vmem:[%s8391_s30 + $0x78] sm:$0xff]  ;;  %vm1367_vm10 = vcmask 228352   ;;  %vm1763_vm11 = vcmask 1041408   ;;  %vm1759_vm12 = vcmask 687104  }
  0x83   :  { %5516 = vmatprep.subr.bf16.mxu1 %v8367_v6  ;;  %v6594_v44 = vpack.c.bf16 %v142_v43, %v141_v42  ;;  %v6604_v47 = vpack.c.bf16 %v144_v46, %v143_v45  ;;  %v145_v48 = vld [vmem:[%s8391_s30 + $0x80] sm:$0xff]  ;;  %v146_v49 = vld [vmem:[%s8391_s30 + $0x88] sm:$0xff]  ;;  %v147_v51 = vld [vmem:[%s8391_s30 + $0x90] sm:$0xff]  ;;  %v6631_v60 = vsub.s32 1, %v1077_v59  ;;  %v6636_v62 = vsub.s32 0, %v1077_v59 }
  0x84   :  { %5128 = vmatmul.mubr.msk.bf16.vlgmr.msra.gmra.mrb[0].mxu0 %vm501_vm3, %v6354_v33  ;;  %v6614_v50 = vpack.c.bf16 %v146_v49, %v145_v48  ;;  %v148_v53 = vld [vmem:[%s8391_s30 + $0x98] sm:$0xff]  ;;  %v149_v57 = vld [vmem:[%s8391_s30 + $0xa0] sm:$0xff]  ;;  %vm2281_vm13 = vcmask 261120   ;;  %vm8381_vm14 = vcmask 254976   ;;  %vm8380_vm15 = vcmask 130048  }
  0x85   :  { %1056 = vmatprep.mubr.bf16.mxu0 %v8369_v2  ;;  %v6623_v54 = vpack.c.bf16 %v148_v53, %v147_v51  ;;  %v128_v61 = vld [vmem:[%s8392_s3] sm:$0x3] }
  0x86   :  { %v6639_v63 = vrot.slane %v128_v61, %v6631_v60  ;;  %v6642_v1 = vrot.slane %v128_v61, %v6636_v62 }
  0x8c   :  { %5129 = vmatmul.mubr.msk.bf16.gmra.mrb[4].mxu0 %vm501_vm3, %v946_v30  ;;  %v136_v30 = vld [vmem:[%s8391_s30 + $0x38] sm:$0xff] }
  0x8d   :  { %1802 = vmatprep.mubr.bf16.mxu0 %v8369_v2  ;;  %v6564_v33 = vpack.c.bf16 %v136_v30, %v135_v11 }
  0x8f   :  { %5518 = vmatpush1.bf16.msra.mxu1 %v6564_v33 }
  0x90   :  { %5519 = vmatprep.subr.bf16.mxu1 %v8367_v6 }
  0x93   :  { %5521 = vmatpush1.bf16.msra.mxu1 %v6574_v38 }
  0x94   :  { %5522 = vmatprep.subr.bf16.mxu1 %v8367_v6 }
  0x97   :  { %5524 = vmatpush1.bf16.msra.mxu1 %v6584_v41 }
  0x98   :  { %5525 = vmatprep.subr.bf16.mxu1 %v8367_v6 }
  0x9b   :  { %5527 = vmatpush1.bf16.msra.mxu1 %v6594_v44 }
  0x9c   :  { %5528 = vmatprep.subr.bf16.mxu1 %v8367_v6 }
  0x9f   :  { %5530 = vmatpush1.bf16.msra.mxu1 %v6604_v47 }
  0xa0   :  { %5531 = vmatprep.subr.bf16.mxu1 %v8367_v6 }
  0xa3   :  { %5533 = vmatpush1.bf16.msra.mxu1 %v6614_v50 }
  0xa4   :  { %5534 = vmatprep.subr.bf16.mxu1 %v8367_v6 }
  0xa7   :  { %5536 = vmatpush1.bf16.msra.mxu1 %v6623_v54 }
  0xa8   :  { %1197 = vmatprep.subr.mxu1 %v8371_v56 }
  0xab   :  { %1198 = vmatpush1.msra.mxu1 %v149_v57 }
 0x157   :  { %v1048_v0 = vpop.f32.mrb[0].mxu0 }
 0x158   :  { %v1050_v3 = vpop.f32.mrb[1].mxu0  ;;  %v6651_v9 = vadd.f32 %v6642_v1, %v1048_v0 }
 0x159   :  { %v6645_v4 = vadd.f32 %v6639_v63, %v1050_v3  ;;  %v1052_v5 = vpop.f32.mrb[2].mxu0 }
 0x15a   :  { %v6648_v7 = vadd.f32 %v6642_v1, %v1052_v5  ;;  %v1054_v8 = vpop.f32.mrb[3].mxu0  ;;  %v1120_v15 = vmul.f32 %v6651_v9, %v6651_v9 }
 0x15b   :  { %v6654_v10 = vadd.f32 %v6639_v63, %v1054_v8  ;;  %v1121_v12 = vmul.f32 %v6645_v4, %v6645_v4  ;;  %v1106_v22 = vsel %vm1105_vm5, %v6645_v4, 0.0 }
 0x15c   :  { %v1122_v13 = vmul.f32 %v6648_v7, %v6648_v7  ;;  %v1094_v18 = vadd.f32 %v6648_v7, %v6651_v9 }
 0x15d   :  { %v1123_v14 = vmul.f32 %v6654_v10, %v6654_v10  ;;  %v1107_v16 = vsel %vm1105_vm5, %v6654_v10, 0.0  ;;  %v1138_v23 = vsel %vm1105_vm5, %v1121_v12, 0.0 }
 0x15e   :  { %v1128_v24 = vadd.f32 %v1122_v13, %v1120_v15  ;;  %v1108_v28 = vadd.f32 %v1107_v16, %v1106_v22 }
 0x15f   :  { %v1058_v17 = vpop.f32.mrb[4].mxu0  ;;  %v1139_v19 = vsel %vm1105_vm5, %v1123_v14, 0.0 }
 0x160   :  { %v6670_v20 = vadd.f32 %v6642_v1, %v1058_v17  ;;  %v1060_v21 = vpop.f32.mrb[5].mxu0  ;;  %v1140_v34 = vadd.f32 %v1139_v19, %v1138_v23 }
 0x161   :  { %v6676_v26 = vadd.f32 %v6639_v63, %v1060_v21  ;;  %v1062_v27 = vpop.f32.mrb[6].mxu0 }
 0x162   :  { %v1095_v29 = vadd.f32 %v1094_v18, %v6670_v20  ;;  %v1124_v31 = vmul.f32 %v6670_v20, %v6670_v20  ;;  %v6682_v25 = vadd.f32 %v6642_v1, %v1062_v27  ;;  %v1064_v32 = vpop.f32.mrb[7].mxu0 }
 0x163   :  { %v1109_v11 = vsel %vm1105_vm5, %v6676_v26, 0.0  ;;  %v1125_v30 = vmul.f32 %v6676_v26, %v6676_v26  ;;  %v6689_v36 = vadd.f32 %v6639_v63, %v1064_v32 }
 0x164   :  { %v1129_v37 = vadd.f32 %v1128_v24, %v1124_v31  ;;  %v1110_v39 = vadd.f32 %v1109_v11, %v1108_v28  ;;  %v1097_v40 = vsel %vm1096_vm6, %v6682_v25, 0.0  ;;  %v1126_v42 = vmul.f32 %v6682_v25, %v6682_v25 }
 0x165   :  { %v1141_v43 = vsel %vm1105_vm5, %v1125_v30, 0.0  ;;  %v1098_v45 = vadd.f32 %v1097_v40, %v1095_v29  ;;  %v1112_v46 = vsel %vm1111_vm7, %v6689_v36, 0.0  ;;  %v1127_v48 = vmul.f32 %v6689_v36, %v6689_v36  ;;  %v150_v40 = vld [vmem:[%s8348_s4] sm:$0x3f] }
 0x166   :  { %v1142_v49 = vadd.f32 %v1141_v43, %v1140_v34  ;;  %v1130_v51 = vsel %vm1096_vm6, %v1126_v42, 0.0  ;;  %v1113_v53 = vadd.f32 %v1112_v46, %v1110_v39  ;;  %v151_v39 = vld [vmem:[%s8348_s4 + $0x8] sm:$0x3f] }
 0x167   :  { %v1099_v57 = vrot.slane %v1098_v45, 4  ;;  %v1131_v58 = vadd.f32 %v1130_v51, %v1129_v37  ;;  %v1143_v59 = vsel %vm1111_vm7, %v1127_v48, 0.0  ;;  %5131 = vmatprep.subr.msk.mxu1 %vm944_vm1, %v151_v39  ;;  %v5829_v39 = vld [vmem:[%s8349_s5 + $0x8] sm:$0x7f]  }
 0x168   :  { %v1114_v61 = vrot.slane %v1113_v53, 4  ;;  %v1144_v0 = vadd.f32 %v1143_v59, %v1142_v49 }
 0x169   :  { %v1100_v3 = vadd.f32 %v1099_v57, %v1098_v45  ;;  %v1132_v5 = vrot.slane %v1131_v58, 4 }
 0x16a   :  { %v1115_v8 = vadd.f32 %v1114_v61, %v1113_v53  ;;  %v1145_v12 = vrot.slane %v1144_v0, 4 }
 0x16b   :  { %v1101_v13 = vrot.slane %v1100_v3, 2  ;;  %v1133_v14 = vadd.f32 %v1132_v5, %v1131_v58 }
 0x16c   :  { %v1116_v15 = vrot.slane %v1115_v8, 2  ;;  %v1146_v16 = vadd.f32 %v1145_v12, %v1144_v0 }
 0x16d   :  { %v1102_v17 = vadd.f32 %v1101_v13, %v1100_v3  ;;  %v1134_v18 = vrot.slane %v1133_v14, 2 }
 0x16e   :  { %v1117_v19 = vadd.f32 %v1116_v15, %v1115_v8  ;;  %v1147_v21 = vrot.slane %v1146_v16, 2 }
 0x16f   :  { %v1135_v22 = vadd.f32 %v1134_v18, %v1133_v14  ;;  %v1103_v27 = vrot.slane %v1102_v17, 1 }
 0x170   :  { %v1118_v23 = vrot.slane %v1117_v19, 1  ;;  %v1148_v24 = vadd.f32 %v1147_v21, %v1146_v16 }
 0x171   :  { %v1136_v28 = vrot.slane %v1135_v22, 1  ;;  %v1104_v11 = vadd.f32 %v1103_v27, %v1102_v17 }
 0x172   :  { %v1149_v29 = vrot.slane %v1148_v24, 1  ;;  %v1119_v32 = vadd.f32 %v1118_v23, %v1117_v19 }
 0x173   :  { %v1137_v31 = vadd.f32 %v1136_v28, %v1135_v22 }
 0x174   :  { %v1150_v34 = vadd.f32 %v1149_v29, %v1148_v24 }
 0x175   :  { %v1152_v37 = vsel %vm1151_vm8, %v1104_v11, %v1137_v31 }
 0x176   :  { %v1153_v30 = vsel %vm1151_vm8, %v1119_v32, %v1150_v34 }
 0x177   :  { %5130 = vmatprep.mubr.msk.f32.mxu1 %vm1105_vm5, %v1153_v30 }
 0x178   :  { %1222 = vmatmul.mubr.f32.vlgmr.msra.gmra.mrb[0].mxu1 %v1152_v37  ;;  %v5828_v37 = vld [vmem:[%s8349_s5] sm:$0x7f]  }
 0x179   :  { %1311 = vmatprep.mubr.f32.mxu1 %v8371_v56  ;;  %5132 = vmatpush1.msk.msra.mxu1 %vm944_vm1, %v150_v40  ;;  %v5830_v40 = vld [vmem:[%s8350_s6] sm:$0xff]  }
 0x24b   :  { %v1223_v42 = vpop.f32.mrb[0].mxu1 }
 0x24c   :  { %v1227_v43 = vmul.f32 0.0012755102, %v1223_v42  ;;  %v1225_v45 = vpop.f32.mrb[1].mxu1  ;;  %v5831_v42 = vld [vmem:[%s8350_s6 + $0x8] sm:$0xff]  }
 0x24d   :  { %v5833_v45 = vld [vmem:[%s8350_s6 + $0x18] sm:$0xff]  }
 0x24e   :  { %v1228_v46 = vmul.f32 %v1227_v43, %v1227_v43 }
 0x250   :  { %v1230_v48 = vrot.slane %v1228_v46, 7  ;;  %v5834_v46 = vld [vmem:[%s8350_s6 + $0x20] sm:$0xff]  }
 0x252   :  { %v1232_v49 = vsub.f32 %v1227_v43, %v1230_v48  ;;  %v5835_v48 = vld [vmem:[%s8350_s6 + $0x28] sm:$0xff]  }
 0x254   :  { %v1233_v51 = vadd.f32 1e-05, %v1232_v49  ;;  %v5836_v49 = vld [vmem:[%s8350_s6 + $0x30] sm:$0xff]  }
 0x256   :  { %5998 = vrsqrt.f32 %v1233_v51  ;;  %v5837_v51 = vld [vmem:[%s8350_s6 + $0x38] sm:$0xff]  }
 0x260   :  { %v5999_v53 = vpop.eup %5998 }
 0x261   :  { %v1235_v57 = vsel %vm1151_vm8, %v1227_v43, %v5999_v53  ;;  %v5832_v43 = vld [vmem:[%s8350_s6 + $0x10] sm:$0xff]   ;;  %v5838_v53 = vld [vmem:[%s8350_s6 + $0x40] sm:$0xff]  }
 0x262   :  { %5133 = vmatmul.mubr.msk.f32.vlgmr.msra.gmra.mrb[2].mxu1 %vm1236_vm9, %v1235_v57  ;;  %v5839_v57 = vld [vmem:[%s8350_s6 + $0x48] sm:$0xff]  }
 0x263   :  { %1409 = vmatprep.mubr.bf16.mxu1 %v8369_v2 }
 0x335   :  { %v1313_v58 = vpop.f32.mrb[2].mxu1 }
 0x336   :  { %v1321_v59 = vrot.slane %v1313_v58, %v6636_v62  ;;  %v1315_v61 = vpop.f32.mrb[3].mxu1  ;;  %v1337_v0 = vrot.slane %v1313_v58, %v6631_v60  ;;  %v5840_v58 = vld [vmem:[%s8350_s6 + $0x50] ss:$0 sps:$4 sm:$0xff]  }
 0x337   :  { %v1325_v3 = vrot.slane %v1315_v61, %v6636_v62  ;;  %v1341_v5 = vrot.slane %v1315_v61, %v6631_v60 }
 0x338   :  { %v1326_v8 = vsub.f32 %v6651_v9, %v1321_v59  ;;  %v1328_v12 = vsub.f32 %v6648_v7, %v1321_v59  ;;  %v1330_v13 = vsub.f32 %v6670_v20, %v1321_v59  ;;  %v1332_v14 = vsub.f32 %v6682_v25, %v1321_v59 }
 0x339   :  { %v1331_v15 = vsub.f32 %v6676_v26, %v1325_v3  ;;  %v1333_v16 = vsub.f32 %v6689_v36, %v1325_v3  ;;  %v1327_v17 = vsub.f32 %v6645_v4, %v1325_v3  ;;  %v1329_v18 = vsub.f32 %v6654_v10, %v1325_v3 }
 0x33a   :  { %v1342_v19 = vmul.f32 %v1337_v0, %v1326_v8  ;;  %v1344_v21 = vmul.f32 %v1337_v0, %v1328_v12  ;;  %v1346_v22 = vmul.f32 %v1337_v0, %v1330_v13  ;;  %v1348_v23 = vmul.f32 %v1337_v0, %v1332_v14 }
 0x33b   :  { %v1347_v24 = vmul.f32 %v1341_v5, %v1331_v15  ;;  %v1349_v9 = vmul.f32 %v1341_v5, %v1333_v16  ;;  %v1343_v27 = vmul.f32 %v1341_v5, %v1327_v17  ;;  %v1345_v7 = vmul.f32 %v1341_v5, %v1329_v18 }
 0x33c   :  { %v1350_v28 = vmax.f32 %v1342_v19, 0.0  ;;  %v1352_v20 = vmax.f32 %v1344_v21, 0.0  ;;  %v1354_v29 = vmax.f32 %v1346_v22, 0.0  ;;  %v1356_v25 = vmax.f32 %v1348_v23, 0.0  ;;  %v5841_v22 = vld [vmem:[%s8350_s6 + $0x54] sm:$0xff]   ;;  %v5842_v23 = vld [vmem:[%s8350_s6 + $0x5c] sm:$0xff]  }
 0x33d   :  { %v1351_v31 = vmax.f32 %v1343_v27, 0.0  ;;  %v1353_v26 = vmax.f32 %v1345_v7, 0.0  ;;  %v1355_v32 = vmax.f32 %v1347_v24, 0.0  ;;  %v1357_v36 = vmax.f32 %v1349_v9, 0.0  ;;  %v5843_v24 = vld [vmem:[%s8350_s6 + $0x64] sm:$0xff]   ;;  %v5844_v9 = vld [vmem:[%s8350_s6 + $0x6c] sm:$0xff]  }
 0x33e   :  { %v1358_v4 = vpack.c.bf16 %v1352_v20, %v1350_v28  ;;  %v1360_v11 = vpack.c.bf16 %v1356_v25, %v1354_v29  ;;  %v6786_v59 = vsel %vm1096_vm6, %v5840_v58, 0  ;;  %v5845_v27 = vld [vmem:[%s8350_s6 + $0x74] sm:$0xff]   ;;  %v5846_v7 = vld [vmem:[%s8350_s6 + $0x7c] sm:$0xff]   ;;  %v5847_v28 = vld [vmem:[%s8350_s6 + $0x84] sm:$0xff]  }
 0x33f   :  { %v1359_v34 = vpack.c.bf16 %v1353_v26, %v1351_v31  ;;  %v1361_v10 = vpack.c.bf16 %v1357_v36, %v1355_v32  ;;  %v5848_v20 = vld [vmem:[%s8350_s6 + $0x8c] sm:$0xff]   ;;  %v5849_v29 = vld [vmem:[%s8350_s6 + $0x94] sm:$0xff]   ;;  %v5850_v25 = vld [vmem:[%s8350_s6 + $0x9c] sm:$0xff]  }
 0x340   :  { %v1372_v30 = vsel %vm944_vm1, %v1360_v11, 0  ;;  %v5851_v31 = vld [vmem:[%s8350_s6 + $0xa4] ss:$0 sps:$4 sm:$0xff]   ;;  %v5852_v32 = vld [vmem:[%s8351_s7 + $0x58] ss:$8 sps:$4 sm:$0xff]  }
 0x341   :  { %1377 = vmatprep.subr.bf16.mxu1 %v1359_v34  ;;  %v6836_v26 = vsel %vm1096_vm6, %v5851_v31, 0  ;;  %v5854_v36 = vld [vmem:[%s8351_s7 + $0x5c] ss:$8 sps:$4 sm:$0xff]   ;;  %v5858_v11 = vld [vmem:[%s8351_s7 + $0x78] ss:$8 sps:$4 sm:$0xff]  }
 0x342   :  { %1378 = vmatpush1.bf16.msra.mxu1 %v1358_v4  ;;  %1770 = vmatprep.subr.bf16.mxu0 %v5854_v36  ;;  %v260_v58 = vld [vmem:[%s8353_s9] sm:$0xff] }
 0x343   :  { %5135 = vmatprep.subr.msk.bf16.mxu1 %vm944_vm1, %v1361_v10  ;;  %1771 = vmatpush1.bf16.msra.mxu0 %v5852_v32  ;;  %v5874_v32 = vld [vmem:[%s8351_s7 + $0x14] ss:$8 sps:$4 sm:$0xff]  }
 0x346   :  { %1380 = vmatpush1.bf16.msra.mxu1 %v1372_v30 }
 0x347   :  { %1428 = vmatprep.subr.bf16.mxu1 %v1359_v34  ;;  %v5857_v34 = vld [vmem:[%s8351_s7 + $0x6c] ss:$8 sps:$4 sm:$0xff]  }
 0x348   :  { %1772 = vmatprep.subr.bf16.mxu0 %v5857_v34  ;;  %v5872_v34 = vld [vmem:[%s8351_s7 + $0x10] ss:$8 sps:$4 sm:$0xff]  }
 0x349   :  { %5136 = vmatmul.mubr.msk.bf16.vlgmr.msra.gmra.mrb[4].mxu1 %vm1367_vm10, %v5828_v37  ;;  %v5861_v37 = vld [vmem:[%s8351_s7 + $0x88] ss:$8 sps:$4 sm:$0xff]  }
 0x34a   :  { %1429 = vmatpush1.bf16.msra.mxu1 %v1358_v4  ;;  %1460 = vmatprep.mubr.bf16.mxu1 %v8369_v2  ;;  %v5855_v4 = vld [vmem:[%s8351_s7 + $0x68] ss:$8 sps:$4 sm:$0xff]  }
 0x34b   :  { %5138 = vmatprep.subr.msk.bf16.mxu1 %vm944_vm1, %v1361_v10  ;;  %v5860_v10 = vld [vmem:[%s8351_s7 + $0x7c] ss:$8 sps:$4 sm:$0xff]   ;;  %1773 = vmatpush1.bf16.msra.mxu0 %v5855_v4 }
 0x34c   :  { %1774 = vmatprep.subr.bf16.mxu0 %v5860_v10  ;;  %v5877_v4 = vld [vmem:[%s8351_s7 + $0x24] ss:$8 sps:$4 sm:$0xff]   ;;  %v5875_v10 = vld [vmem:[%s8351_s7 + $0x20] ss:$8 sps:$4 sm:$0xff]  }
 0x34e   :  { %1431 = vmatpush1.bf16.msra.mxu1 %v1372_v30  ;;  %v5863_v30 = vld [vmem:[%s8351_s7 + $0x8c] ss:$8 sps:$4 sm:$0xff]  }
 0x34f   :  { %1546 = vmatprep.subr.bf16.mxu1 %v8369_v2  ;;  %1775 = vmatpush1.bf16.msra.mxu0 %v5858_v11  ;;  %v5880_v11 = vld [vmem:[%s8351_s7 + $0x34] ss:$8 sps:$4 sm:$0xff]  }
 0x350   :  { %1776 = vmatprep.subr.bf16.mxu0 %v5863_v30  ;;  %v5878_v30 = vld [vmem:[%s8351_s7 + $0x30] ss:$8 sps:$4 sm:$0xff]  }
 0x351   :  { %5139 = vmatmul.mubr.msk.bf16.vlgmr.msra.gmra.mrb[8].mxu1 %vm1367_vm10, %v5829_v39  ;;  %v5866_v39 = vld [vmem:[%s8351_s7 + $0x9c] ss:$8 sps:$4 sm:$0xff]  }
 0x352   :  { %1547 = vmatpush1.bf16.msra.mxu1 %v5830_v40  ;;  %v5864_v40 = vld [vmem:[%s8351_s7 + $0x98] ss:$8 sps:$4 sm:$0xff]  }
 0x353   :  { %1548 = vmatprep.subr.bf16.mxu1 %v8369_v2  ;;  %1777 = vmatpush1.bf16.msra.mxu0 %v5861_v37  ;;  %v5883_v37 = vld [vmem:[%s8351_s7 + $0x44] ss:$8 sps:$4 sm:$0xff]  }
 0x354   :  { %1778 = vmatprep.subr.bf16.mxu0 %v5866_v39  ;;  %v210_v39 = vld [vmem:[%s8351_s7 + $0x50] sm:$0x33] }
 0x356   :  { %1549 = vmatpush1.bf16.msra.mxu1 %v5831_v42  ;;  %v4963_v42 = vld [vmem:[%s8351_s7 + $0xa8] sm:$0x33] }
 0x357   :  { %1550 = vmatprep.subr.bf16.mxu1 %v8369_v2  ;;  %1779 = vmatpush1.bf16.msra.mxu0 %v5864_v40  ;;  %v5881_v40 = vld [vmem:[%s8351_s7 + $0x40] ss:$8 sps:$4 sm:$0xff]  }
 0x35a   :  { %1551 = vmatpush1.bf16.msra.mxu1 %v5832_v43  ;;  %v6873_v43 = vcombine.high %v4963_v42, %v4963_v42 }
 0x35b   :  { %1552 = vmatprep.subr.bf16.mxu1 %v8369_v2 }
 0x35c   :  { %5176 = vmatprep.subr.msk.bf16.mxu0 %vm1763_vm11, %v6873_v43 }
 0x35e   :  { %1553 = vmatpush1.bf16.msra.mxu1 %v5833_v45  ;;  %v5174_v45 = vcombine.low %v4963_v42, %v4963_v42  ;;  %v6966_v42 = vcombine.high %v210_v39, %v210_v39 }
 0x35f   :  { %1554 = vmatprep.subr.bf16.mxu1 %v8369_v2 }
 0x362   :  { %1555 = vmatpush1.bf16.msra.mxu1 %v5834_v46  ;;  %v6878_v46 = vsel %vm1763_vm11, %v5174_v45, 0  ;;  %v5188_v45 = vcombine.low %v210_v39, %v210_v39  ;;  %v5920_v39 = vld [vmem:[%s8351_s7 + $0x160] ss:$8 sps:$4 sm:$0xff]  }
 0x363   :  { %1556 = vmatprep.subr.bf16.mxu1 %v8369_v2  ;;  %1781 = vmatpush1.bf16.msra.mxu0 %v6878_v46 }
 0x366   :  { %1557 = vmatpush1.bf16.msra.mxu1 %v5835_v48  ;;  %v5871_v48 = vld [vmem:[%s8351_s7 + $0x4] ss:$8 sps:$4 sm:$0xff]  }
 0x367   :  { %1558 = vmatprep.subr.bf16.mxu1 %v8369_v2  ;;  %1876 = vmatprep.subr.bf16.mxu0 %v5871_v48  ;;  %v6971_v48 = vsel %vm1763_vm11, %v5188_v45, 0  ;;  %v5923_v45 = vld [vmem:[%s8351_s7 + $0x170] ss:$8 sps:$4 sm:$0xff]  }
 0x36a   :  { %1559 = vmatpush1.bf16.msra.mxu1 %v5836_v49 }
 0x36b   :  { %1560 = vmatprep.subr.bf16.mxu1 %v8369_v2 }
 0x36e   :  { %1561 = vmatpush1.bf16.msra.mxu1 %v5837_v51 }
 0x36f   :  { %1562 = vmatprep.subr.bf16.mxu1 %v8369_v2 }
 0x372   :  { %1563 = vmatpush1.bf16.msra.mxu1 %v5838_v53 }
 0x373   :  { %1564 = vmatprep.subr.bf16.mxu1 %v8369_v2 }
 0x376   :  { %1565 = vmatpush1.bf16.msra.mxu1 %v5839_v57 }
 0x377   :  { %1566 = vmatprep.subr.bf16.mxu1 %v8369_v2 }
 0x37a   :  { %1567 = vmatpush1.bf16.msra.mxu1 %v6786_v59 }
 0x37b   :  { %1653 = vmatprep.subr.bf16.mxu1 %v8369_v2 }
 0x41c   :  { %v1411_v61 = vpop.f32.mrb[4].mxu1 }
 0x41d   :  { %v1413_v0 = vpop.f32.mrb[5].mxu1 }
 0x41e   :  { %v1415_v3 = vpop.f32.mrb[6].mxu1 }
 0x41f   :  { %v1417_v5 = vpop.f32.mrb[7].mxu1 }
 0x424   :  { %v1462_v8 = vpop.f32.mrb[8].mxu1 }
 0x425   :  { %v1471_v12 = vmax.f32 %v1411_v61, %v1462_v8  ;;  %v1464_v13 = vpop.f32.mrb[9].mxu1  ;;  %v261_v61 = vld [vmem:[%s8353_s9 + $0x8] sm:$0xff] }
 0x426   :  { %v1472_v14 = vmax.f32 %v1413_v0, %v1464_v13  ;;  %v1466_v15 = vpop.f32.mrb[10].mxu1  ;;  %v262_v0 = vld [vmem:[%s8353_s9 + $0x10] sm:$0xff]  ;;  %v265_v13 = vld [vmem:[%s8353_s9 + $0x28] sm:$0xff] }
 0x427   :  { %v1473_v16 = vmax.f32 %v1415_v3, %v1466_v15  ;;  %v1468_v17 = vpop.f32.mrb[11].mxu1  ;;  %v6893_v3 = vpack.c.bf16 %v261_v61, %v260_v58  ;;  %v266_v15 = vld [vmem:[%s8353_s9 + $0x30] sm:$0xff] }
 0x428   :  { %v1474_v18 = vmax.f32 %v1417_v5, %v1468_v17  ;;  %v263_v5 = vld [vmem:[%s8353_s9 + $0x18] sm:$0xff] }
 0x429   :  { %v1475_v19 = vpack.c.bf16 %v1473_v16, %v1471_v12  ;;  %v6899_v8 = vpack.c.bf16 %v263_v5, %v262_v0  ;;  %v264_v12 = vld [vmem:[%s8353_s9 + $0x20] sm:$0xff]  ;;  %v267_v16 = vld [vmem:[%s8353_s9 + $0x38] sm:$0xff] }
 0x42a   :  { %v1476_v21 = vpack.c.bf16 %v1474_v18, %v1472_v14  ;;  %v6909_v14 = vpack.c.bf16 %v265_v13, %v264_v12  ;;  %v6919_v17 = vpack.c.bf16 %v267_v16, %v266_v15  ;;  %v5894_v58 = vld [vmem:[%s8351_s7 + $0xd4] ss:$8 sps:$4 sm:$0xff]   ;;  %v5892_v61 = vld [vmem:[%s8351_s7 + $0xd0] ss:$8 sps:$4 sm:$0xff]   ;;  %v5897_v0 = vld [vmem:[%s8351_s7 + $0xe4] ss:$8 sps:$4 sm:$0xff]  }
 0x42b   :  { %v5895_v5 = vld [vmem:[%s8351_s7 + $0xe0] ss:$8 sps:$4 sm:$0xff]   ;;  %v5900_v12 = vld [vmem:[%s8351_s7 + $0xf4] ss:$8 sps:$4 sm:$0xff]   ;;  %v5898_v15 = vld [vmem:[%s8351_s7 + $0xf0] ss:$8 sps:$4 sm:$0xff]  }
 0x42c   :  { %5151 = vmatprep.mubr.msk.bf16.mxu1 %vm1105_vm5, %v1476_v21  ;;  %v4974_v13 = vld [vmem:[%s8351_s7 + $0x100] sm:$0x33] }
 0x42d   :  { %1579 = vmatmul.mubr.bf16.vlgmr.msra.gmra.mrb[12].mxu1 %v1475_v19  ;;  %v7010_v16 = vcombine.high %v4974_v13, %v4974_v13 }
 0x42e   :  { %1654 = vmatpush1.bf16.msra.mxu1 %v5841_v22  ;;  %5163 = vmatprep.mubr.msk.bf16.mxu1 %vm1105_vm5, %v1476_v21 }
 0x42f   :  { %1655 = vmatprep.subr.bf16.mxu1 %v8369_v2 }
 0x432   :  { %1656 = vmatpush1.bf16.msra.mxu1 %v5842_v23 }
 0x433   :  { %1657 = vmatprep.subr.bf16.mxu1 %v8369_v2 }
 0x436   :  { %1658 = vmatpush1.bf16.msra.mxu1 %v5843_v24 }
 0x437   :  { %1659 = vmatprep.subr.bf16.mxu1 %v8369_v2 }
 0x43a   :  { %1660 = vmatpush1.bf16.msra.mxu1 %v5844_v9 }
 0x43b   :  { %1661 = vmatprep.subr.bf16.mxu1 %v8369_v2 }
 0x43e   :  { %1662 = vmatpush1.bf16.msra.mxu1 %v5845_v27 }
 0x43f   :  { %1663 = vmatprep.subr.bf16.mxu1 %v8369_v2 }
 0x442   :  { %1664 = vmatpush1.bf16.msra.mxu1 %v5846_v7 }
 0x443   :  { %1665 = vmatprep.subr.bf16.mxu1 %v8369_v2 }
 0x446   :  { %1666 = vmatpush1.bf16.msra.mxu1 %v5847_v28 }
 0x447   :  { %1667 = vmatprep.subr.bf16.mxu1 %v8369_v2 }
 0x44a   :  { %1668 = vmatpush1.bf16.msra.mxu1 %v5848_v20 }
 0x44b   :  { %1669 = vmatprep.subr.bf16.mxu1 %v8369_v2 }
 0x44e   :  { %1670 = vmatpush1.bf16.msra.mxu1 %v5849_v29 }
 0x44f   :  { %1671 = vmatprep.subr.bf16.mxu1 %v8369_v2 }
 0x452   :  { %1672 = vmatpush1.bf16.msra.mxu1 %v5850_v25  ;;  %v5869_v25 = vld [vmem:[%s8351_s7] ss:$8 sps:$4 sm:$0xff]  }
 0x453   :  { %1673 = vmatprep.subr.bf16.mxu1 %v8369_v2 }
 0x456   :  { %1674 = vmatpush1.bf16.msra.mxu1 %v6836_v26 }
 0x457   :  { %5537 = vmatprep.subr.bf16.mxu1 %v8367_v6 }
 0x459   :  { %1686 = vmatmul.mubr.bf16.vlgmr.msra.gmra.mrb[16].mxu1 %v1475_v19 }
 0x45a   :  { %5539 = vmatpush1.bf16.msra.mxu1 %v6893_v3 }
 0x45b   :  { %5540 = vmatprep.subr.bf16.mxu1 %v8367_v6 }
 0x45e   :  { %5542 = vmatpush1.bf16.msra.mxu1 %v6899_v8 }
 0x45f   :  { %5543 = vmatprep.subr.bf16.mxu1 %v8367_v6 }
 0x462   :  { %5545 = vmatpush1.bf16.msra.mxu1 %v6909_v14 }
 0x463   :  { %5546 = vmatprep.subr.bf16.mxu1 %v8367_v6 }
 0x466   :  { %5548 = vmatpush1.bf16.msra.mxu1 %v6919_v17 }
 0x467   :  { %5549 = vmatprep.subr.bf16.mxu1 %v8367_v6 }
 0x500   :  { %v1580_v49 = vpop.f32.mrb[12].mxu1 }
 0x501   :  { %v1582_v51 = vpop.f32.mrb[13].mxu1 }
 0x502   :  { %v1583_v53 = vpop.f32.mrb[14].mxu1  ;;  %v5886_v51 = vld [vmem:[%s8351_s7 + $0xb0] ss:$8 sps:$4 sm:$0xff]  }
 0x503   :  { %v1585_v57 = vpop.f32.mrb[15].mxu1 }
 0x504   :  { %v5889_v57 = vld [vmem:[%s8351_s7 + $0xc0] ss:$8 sps:$4 sm:$0xff]  }
 0x52c   :  { %v1687_v18 = vpop.f32.mrb[16].mxu1 }
 0x52d   :  { %v1694_v19 = vmax.f32 %v1580_v49, %v1687_v18  ;;  %v1689_v21 = vpop.f32.mrb[17].mxu1  ;;  %v5888_v49 = vld [vmem:[%s8351_s7 + $0xb4] ss:$8 sps:$4 sm:$0xff]   ;;  %v5202_v18 = vcombine.low %v4974_v13, %v4974_v13  ;;  %v269_v13 = vld [vmem:[%s8353_s9 + $0x48] sm:$0xff] }
 0x52e   :  { %v1690_v22 = vpop.f32.mrb[18].mxu1  ;;  %v5905_v21 = vld [vmem:[%s8351_s7 + $0x10c] ss:$8 sps:$4 sm:$0xff]  }
 0x52f   :  { %v1695_v23 = vmax.f32 %v1583_v53, %v1690_v22  ;;  %v1692_v24 = vpop.f32.mrb[19].mxu1  ;;  %v5891_v53 = vld [vmem:[%s8351_s7 + $0xc4] ss:$8 sps:$4 sm:$0xff]   ;;  %v5903_v22 = vld [vmem:[%s8351_s7 + $0x108] ss:$8 sps:$4 sm:$0xff]  }
 0x530   :  { %v5908_v24 = vld [vmem:[%s8351_s7 + $0x11c] ss:$8 sps:$4 sm:$0xff]  }
 0x531   :  { %v6924_v9 = vpack.c.bf16 %v1695_v23, %v1694_v19  ;;  %v7015_v19 = vsel %vm1763_vm11, %v5202_v18, 0  ;;  %v271_v18 = vld [vmem:[%s8353_s9 + $0x58] sm:$0xff] }
 0x533   :  { %v1698_v27 = vshrl.u32 %v6924_v9, 16  ;;  %v1700_v7 = vshll.u32 %v6924_v9, 16  ;;  %v1920_v23 = vrot.slane %v6924_v9, 1 }
 0x535   :  { %v1702_v28 = vrot.slane %v1700_v7, 1  ;;  %v6928_v20 = vrot.slane %v1698_v27, 1  ;;  %v6930_v29 = vrot.slane %v1700_v7, 2  ;;  %v5911_v7 = vld [vmem:[%s8351_s7 + $0x12c] ss:$8 sps:$4 sm:$0xff]  }
 0x537   :  { %v1703_v31 = vor.u32 %v1702_v28, %v1698_v27  ;;  %v2034_v36 = vor.u32 %v6930_v29, %v6928_v20  ;;  %v5906_v27 = vld [vmem:[%s8351_s7 + $0x118] ss:$8 sps:$4 sm:$0xff]   ;;  %v5909_v28 = vld [vmem:[%s8351_s7 + $0x128] ss:$8 sps:$4 sm:$0xff]   ;;  %v5931_v20 = vld [vmem:[%s8351_s7 + $0x194] ss:$8 sps:$4 sm:$0xff]  }
 0x538   :  { %v5929_v29 = vld [vmem:[%s8351_s7 + $0x190] ss:$8 sps:$4 sm:$0xff]  }
 0x539   :  { %5177 = vmatmul.mubr.msk.bf16.vlgmr.msra.gmra.mrb[8].mxu0 %vm1759_vm12, %v1703_v31  ;;  %v5912_v31 = vld [vmem:[%s8351_s7 + $0x138] ss:$8 sps:$4 sm:$0xff]  }
 0x53a   :  { %1877 = vmatpush1.bf16.msra.mxu0 %v5869_v25  ;;  %1908 = vmatprep.mubr.bf16.mxu0 %v8369_v2  ;;  %v5914_v25 = vld [vmem:[%s8351_s7 + $0x13c] ss:$8 sps:$4 sm:$0xff]  }
 0x53b   :  { %1878 = vmatprep.subr.bf16.mxu0 %v5874_v32  ;;  %v5917_v32 = vld [vmem:[%s8351_s7 + $0x14c] ss:$8 sps:$4 sm:$0xff]  }
 0x53e   :  { %1879 = vmatpush1.bf16.msra.mxu0 %v5872_v34  ;;  %v4985_v34 = vld [vmem:[%s8351_s7 + $0x158] sm:$0x33] }
 0x53f   :  { %1880 = vmatprep.subr.bf16.mxu0 %v5877_v4  ;;  %v5915_v4 = vld [vmem:[%s8351_s7 + $0x148] ss:$8 sps:$4 sm:$0xff]  }
 0x542   :  { %1881 = vmatpush1.bf16.msra.mxu0 %v5875_v10  ;;  %v7054_v10 = vcombine.high %v4985_v34, %v4985_v34 }
 0x543   :  { %1882 = vmatprep.subr.bf16.mxu0 %v5880_v11  ;;  %v5216_v11 = vcombine.low %v4985_v34, %v4985_v34  ;;  %v278_v34 = vld [vmem:[%s8353_s9 + $0x90] sm:$0xff] }
 0x546   :  { %1883 = vmatpush1.bf16.msra.mxu0 %v5878_v30  ;;  %v7059_v30 = vsel %vm1763_vm11, %v5216_v11, 0 }
 0x547   :  { %1884 = vmatprep.subr.bf16.mxu0 %v5883_v37  ;;  %8393 = vst [vmem:[#allocation5_spill] sm:$0xff] %v7059_v30  ;;  %v5922_v37 = vld [vmem:[%s8351_s7 + $0x164] ss:$8 sps:$4 sm:$0xff]  }
 0x54a   :  { %1885 = vmatpush1.bf16.msra.mxu0 %v5881_v40  ;;  %v5925_v40 = vld [vmem:[%s8351_s7 + $0x174] ss:$8 sps:$4 sm:$0xff]  }
 0x54b   :  { %5190 = vmatprep.subr.msk.bf16.mxu0 %vm1763_vm11, %v6966_v42 }
 0x54e   :  { %1887 = vmatpush1.bf16.msra.mxu0 %v6971_v48 }
 0x54f   :  { %1985 = vmatprep.subr.bf16.mxu0 %v5888_v49  ;;  %v5928_v49 = vld [vmem:[%s8351_s7 + $0x184] ss:$8 sps:$4 sm:$0xff]  }
 0x551   :  { %5191 = vmatmul.mubr.msk.bf16.vlgmr.msra.gmra.mrb[8].mxu0 %vm1759_vm12, %v6924_v9 }
 0x552   :  { %1986 = vmatpush1.bf16.msra.mxu0 %v5886_v51  ;;  %2017 = vmatprep.mubr.bf16.mxu0 %v8369_v2  ;;  %v5926_v51 = vld [vmem:[%s8351_s7 + $0x180] ss:$8 sps:$4 sm:$0xff]  }
 0x553   :  { %1987 = vmatprep.subr.bf16.mxu0 %v5891_v53  ;;  %v4996_v53 = vld [vmem:[%s8351_s7 + $0x1b0] sm:$0x33] }
 0x556   :  { %1988 = vmatpush1.bf16.msra.mxu0 %v5889_v57  ;;  %v5932_v57 = vld [vmem:[%s8351_s7 + $0x1a0] ss:$8 sps:$4 sm:$0xff]  }
 0x557   :  { %1989 = vmatprep.subr.bf16.mxu0 %v5894_v58  ;;  %v7100_v58 = vcombine.high %v4996_v53, %v4996_v53 }
 0x559   :  { %8394 = vst [vmem:[#allocation6_spill] sm:$0xff] %v7100_v58 }
 0x55a   :  { %1990 = vmatpush1.bf16.msra.mxu0 %v5892_v61  ;;  %v5230_v61 = vcombine.low %v4996_v53, %v4996_v53 }
 0x55b   :  { %1991 = vmatprep.subr.bf16.mxu0 %v5897_v0 }
 0x55c   :  { %v7105_v0 = vsel %vm1763_vm11, %v5230_v61, 0 }
 0x55d   :  { %8395 = vst [vmem:[#allocation7_spill] sm:$0xff] %v7105_v0 }
 0x55e   :  { %1992 = vmatpush1.bf16.msra.mxu0 %v5895_v5  ;;  %v2146_v5 = vrot.slane %v6924_v9, 2  ;;  %v270_v9 = vld [vmem:[%s8353_s9 + $0x50] sm:$0xff] }
 0x55f   :  { %1993 = vmatprep.subr.bf16.mxu0 %v5900_v12  ;;  %v268_v12 = vld [vmem:[%s8353_s9 + $0x40] sm:$0xff] }
 0x562   :  { %1994 = vmatpush1.bf16.msra.mxu0 %v5898_v15  ;;  %v7117_v15 = vpack.c.bf16 %v269_v13, %v268_v12 }
 0x563   :  { %5204 = vmatprep.subr.msk.bf16.mxu0 %vm1763_vm11, %v7010_v16 }
 0x564   :  { %5551 = vmatpush1.bf16.msra.mxu1 %v7117_v15 }
 0x565   :  { %5552 = vmatprep.subr.bf16.mxu1 %v8367_v6 }
 0x566   :  { %1996 = vmatpush1.bf16.msra.mxu0 %v7015_v19 }
 0x567   :  { %2099 = vmatprep.subr.bf16.mxu0 %v5905_v21  ;;  %v7127_v21 = vpack.c.bf16 %v271_v18, %v270_v9 }
 0x569   :  { %5205 = vmatmul.mubr.msk.bf16.vlgmr.msra.gmra.mrb[8].mxu0 %vm1759_vm12, %v1920_v23  ;;  %5554 = vmatpush1.bf16.msra.mxu1 %v7127_v21  ;;  %v273_v23 = vld [vmem:[%s8353_s9 + $0x68] sm:$0xff] }
 0x56a   :  { %2100 = vmatpush1.bf16.msra.mxu0 %v5903_v22  ;;  %2131 = vmatprep.mubr.bf16.mxu0 %v8369_v2  ;;  %v272_v22 = vld [vmem:[%s8353_s9 + $0x60] sm:$0xff] }
 0x56b   :  { %2101 = vmatprep.subr.bf16.mxu0 %v5908_v24  ;;  %5555 = vmatprep.subr.bf16.mxu1 %v8367_v6  ;;  %v7137_v24 = vpack.c.bf16 %v273_v23, %v272_v22 }
 0x56d   :  { %5557 = vmatpush1.bf16.msra.mxu1 %v7137_v24 }
 0x56e   :  { %2102 = vmatpush1.bf16.msra.mxu0 %v5906_v27  ;;  %5558 = vmatprep.subr.bf16.mxu1 %v8367_v6  ;;  %v274_v27 = vld [vmem:[%s8353_s9 + $0x70] sm:$0xff] }
 0x56f   :  { %2103 = vmatprep.subr.bf16.mxu0 %v5911_v7  ;;  %v275_v7 = vld [vmem:[%s8353_s9 + $0x78] sm:$0xff] }
 0x572   :  { %2104 = vmatpush1.bf16.msra.mxu0 %v5909_v28  ;;  %v7147_v28 = vpack.c.bf16 %v275_v7, %v274_v27 }
 0x573   :  { %2105 = vmatprep.subr.bf16.mxu0 %v5914_v25  ;;  %v276_v25 = vld [vmem:[%s8353_s9 + $0x80] sm:$0xff] }
 0x574   :  { %5560 = vmatpush1.bf16.msra.mxu1 %v7147_v28 }
 0x575   :  { %5561 = vmatprep.subr.bf16.mxu1 %v8367_v6 }
 0x576   :  { %2106 = vmatpush1.bf16.msra.mxu0 %v5912_v31  ;;  %v277_v31 = vld [vmem:[%s8353_s9 + $0x88] sm:$0xff] }
 0x577   :  { %2107 = vmatprep.subr.bf16.mxu0 %v5917_v32  ;;  %v7156_v32 = vpack.c.bf16 %v277_v31, %v276_v25 }
 0x579   :  { %5563 = vmatpush1.bf16.msra.mxu1 %v7156_v32 }
 0x57a   :  { %2108 = vmatpush1.bf16.msra.mxu0 %v5915_v4  ;;  %v279_v4 = vld [vmem:[%s8353_s9 + $0x98] sm:$0xff]  ;;  %5564 = vmatprep.subr.bf16.mxu1 %v8367_v6 }
 0x57b   :  { %5218 = vmatprep.subr.msk.bf16.mxu0 %vm1763_vm11, %v7054_v10  ;;  %v7166_v11 = vpack.c.bf16 %v279_v4, %v278_v34 }
 0x57d   :  { %5566 = vmatpush1.bf16.msra.mxu1 %v7166_v11 }
 0x57e   :  { %2110 = vmatpush1.bf16.msra.mxu0 %v7059_v30 }
 0x57f   :  { %2211 = vmatprep.subr.bf16.mxu0 %v5922_v37  ;;  %v259_v37 = vld [vmem:[%s8352_s8] sm:$0x3] }
 0x581   :  { %5219 = vmatmul.mubr.msk.bf16.vlgmr.msra.gmra.mrb[8].mxu0 %vm1759_vm12, %v2034_v36  ;;  %v5934_v36 = vld [vmem:[%s8351_s7 + $0x1a4] ss:$8 sps:$4 sm:$0xff]  }
 0x582   :  { %2212 = vmatpush1.bf16.msra.mxu0 %v5920_v39  ;;  %2243 = vmatprep.mubr.bf16.mxu0 %v8369_v2  ;;  %v7174_v39 = vrot.slane %v259_v37, %v6636_v62 }
 0x583   :  { %2213 = vmatprep.subr.bf16.mxu0 %v5925_v40  ;;  %v7177_v40 = vrot.slane %v259_v37, %v6631_v60 }
 0x584   :  { %8396 = vst [vmem:[#allocation8_spill] sm:$0xff] %v7174_v39 }
 0x585   :  { %8397 = vst [vmem:[#allocation9_spill] sm:$0xff] %v7177_v40 }
 0x586   :  { %2214 = vmatpush1.bf16.msra.mxu0 %v5923_v45 }
 0x587   :  { %2215 = vmatprep.subr.bf16.mxu0 %v5928_v49 }
 0x58a   :  { %2216 = vmatpush1.bf16.msra.mxu0 %v5926_v51 }
 0x58b   :  { %2217 = vmatprep.subr.bf16.mxu0 %v5931_v20 }
 0x58e   :  { %2218 = vmatpush1.bf16.msra.mxu0 %v5929_v29 }
 0x58f   :  { %2219 = vmatprep.subr.bf16.mxu0 %v5934_v36 }
 0x592   :  { %2220 = vmatpush1.bf16.msra.mxu0 %v5932_v57 }
 0x593   :  { %5232 = vmatprep.subr.msk.bf16.mxu0 %vm1763_vm11, %v7100_v58 }
 0x596   :  { %2222 = vmatpush1.bf16.msra.mxu0 %v7105_v0 }
 0x597   :  { %2765 = vmatprep.subr.bf16.mxu0 %v8369_v2 }
 0x599   :  { %5233 = vmatmul.mubr.msk.bf16.vlgmr.msra.gmra.mrb[8].mxu0 %vm1759_vm12, %v2146_v5 }
 0x66c   :  { %v2245_v45 = vpop.f32.mrb[8].mxu0 }
 0x66d   :  { %v7180_v49 = vadd.f32 %v7174_v39, %v2245_v45  ;;  %v2247_v51 = vpop.f32.mrb[9].mxu0 }
 0x66e   :  { %v7183_v20 = vadd.f32 %v7177_v40, %v2247_v51  ;;  %v2249_v29 = vpop.f32.mrb[10].mxu0 }
 0x66f   :  { %v7186_v36 = vadd.f32 %v7174_v39, %v2249_v29  ;;  %v2251_v53 = vpop.f32.mrb[11].mxu0  ;;  %v2292_v5 = vmul.f32 %v7180_v49, %v7180_v49 }
 0x670   :  { %v2293_v57 = vmul.f32 %v7183_v20, %v7183_v20  ;;  %v7191_v61 = vadd.f32 %v7177_v40, %v2251_v53  ;;  %v2282_v9 = vsel %vm2281_vm13, %v7183_v20, 0.0 }
 0x671   :  { %v2273_v12 = vsel %vm1763_vm11, %v7186_v36, 0.0  ;;  %v2294_v13 = vmul.f32 %v7186_v36, %v7186_v36 }
 0x672   :  { %v2274_v18 = vadd.f32 %v2273_v12, %v7180_v49  ;;  %v2284_v22 = vsel %vm8381_vm14, %v7191_v61, 0.0  ;;  %v2295_v23 = vmul.f32 %v7191_v61, %v7191_v61  ;;  %v2304_v25 = vsel %vm2281_vm13, %v2293_v57, 0.0 }
 0x673   :  { %v2296_v27 = vsel %vm1763_vm11, %v2294_v13, 0.0  ;;  %v2285_v7 = vadd.f32 %v2284_v22, %v2282_v9 }
 0x674   :  { %v2275_v31 = vrot.slane %v2274_v18, 4  ;;  %v2297_v34 = vadd.f32 %v2296_v27, %v2292_v5  ;;  %v2305_v4 = vsel %vm8381_vm14, %v2295_v23, 0.0  ;;  %vm2502_vm14 = vcmask 80896  }
 0x675   :  { %v2286_v37 = vrot.slane %v2285_v7, 4  ;;  %v2306_v45 = vadd.f32 %v2305_v4, %v2304_v25 }
 0x676   :  { %v2276_v51 = vadd.f32 %v2275_v31, %v2274_v18  ;;  %v2298_v29 = vrot.slane %v2297_v34, 4 }
 0x677   :  { %v2287_v53 = vadd.f32 %v2286_v37, %v2285_v7  ;;  %v2307_v12 = vrot.slane %v2306_v45, 4 }
 0x678   :  { %v2277_v6 = vrot.slane %v2276_v51, 2  ;;  %v2299_v2 = vadd.f32 %v2298_v29, %v2297_v34 }
 0x679   :  { %v2288_v56 = vrot.slane %v2287_v53, 2  ;;  %v2308_v40 = vadd.f32 %v2307_v12, %v2306_v45 }
 0x67a   :  { %v2278_v39 = vadd.f32 %v2277_v6, %v2276_v51  ;;  %v2300_v0 = vrot.slane %v2299_v2, 2  ;;  %v8398_v6 = vmov 0.0  }
 0x67b   :  { %v2289_v13 = vadd.f32 %v2288_v56, %v2287_v53  ;;  %v2309_v9 = vrot.slane %v2308_v40, 2  ;;  %v283_v56 = vld [vmem:[%s8354_s10 + $0x18] sm:$0xff] }
 0x67c   :  { %v2301_v22 = vadd.f32 %v2300_v0, %v2299_v2  ;;  %v2279_v5 = vrot.slane %v2278_v39, 1  ;;  %v281_v2 = vld [vmem:[%s8354_s10 + $0x8] sm:$0xff] }
 0x67d   :  { %v2290_v57 = vrot.slane %v2289_v13, 1  ;;  %v2310_v58 = vadd.f32 %v2309_v9, %v2308_v40  ;;  %v7219_v0 = vpack.c.bf16 %v283_v56, %v281_v2  ;;  %v8400_v9 = vmov 0  }
 0x67e   :  { %v2302_v27 = vrot.slane %v2301_v22, 1  ;;  %v2280_v31 = vadd.f32 %v2279_v5, %v2278_v39  ;;  %v5942_v5 = vld [vmem:[%s8356_s12 + $0x60] sm:$0xff]  }
 0x67f   :  { %v2311_v23 = vrot.slane %v2310_v58, 1  ;;  %v2291_v25 = vadd.f32 %v2290_v57, %v2289_v13  ;;  %5568 = vmatprep.subr.bf16.mxu1 %v7219_v0  ;;  %v5940_v57 = vld [vmem:[%s8356_s12 + $0x58] sm:$0xff]  }
 0x680   :  { %v2303_v30 = vadd.f32 %v2302_v27, %v2301_v22  ;;  %v5938_v22 = vld [vmem:[%s8356_s12 + $0x50] sm:$0xff]   ;;  %v5944_v27 = vld [vmem:[%s8356_s12 + $0x68] sm:$0xff]  }
 0x681   :  { %v2312_v18 = vadd.f32 %v2311_v23, %v2310_v58  ;;  %v280_v58 = vld [vmem:[%s8354_s10] sm:$0xff]  ;;  %2766 = vmatpush1.bf16.msra.mxu0 %v5938_v22  ;;  %v5946_v23 = vld [vmem:[%s8356_s12 + $0x70] sm:$0xff]  }
 0x682   :  { %v2313_v34 = vsel %vm1151_vm8, %v2280_v31, %v2303_v30  ;;  %v282_v30 = vld [vmem:[%s8354_s10 + $0x10] sm:$0xff]  ;;  %2767 = vmatprep.subr.bf16.mxu0 %v8400_v9 }
 0x683   :  { %v2314_v7 = vsel %vm1151_vm8, %v2291_v25, %v2312_v18  ;;  %v7227_v39 = vpack.c.bf16 %v282_v30, %v280_v58  ;;  %v5948_v25 = vld [vmem:[%s8356_s12 + $0x78] sm:$0xff]  }
 0x684   :  { %5234 = vmatprep.mubr.msk.f32.mxu1 %vm2281_vm13, %v2314_v7 }
 0x685   :  { %2383 = vmatmul.mubr.f32.vlgmr.msra.gmra.mrb[20].mxu1 %v2313_v34  ;;  %8399 = vst [vmem:[#allocation10_spill] sm:$0xff] %v7227_v39  ;;  %2768 = vmatpush1.bf16.msra.mxu0 %v5940_v57 }
 0x686   :  { %2465 = vmatprep.mubr.f32.mxu1 %v8398_v6  ;;  %5570 = vmatpush1.bf16.msra.mxu1 %v7227_v39 }
 0x687   :  { %2769 = vmatprep.subr.bf16.mxu0 %v8400_v9 }
 0x689   :  { %2770 = vmatpush1.bf16.msra.mxu0 %v5942_v5  ;;  %v5937_v5 = vld [vmem:[%s8356_s12] sm:$0xff]  }
 0x68a   :  { %2771 = vmatprep.subr.bf16.mxu0 %v8400_v9 }
 0x68d   :  { %2772 = vmatpush1.bf16.msra.mxu0 %v5944_v27  ;;  %v5939_v27 = vld [vmem:[%s8356_s12 + $0x8] sm:$0xff]  }
 0x68e   :  { %2773 = vmatprep.subr.bf16.mxu0 %v8400_v9 }
 0x691   :  { %2774 = vmatpush1.bf16.msra.mxu0 %v5946_v23  ;;  %v5941_v23 = vld [vmem:[%s8356_s12 + $0x10] sm:$0xff]  }
 0x692   :  { %2775 = vmatprep.subr.bf16.mxu0 %v8400_v9 }
 0x695   :  { %2776 = vmatpush1.bf16.msra.mxu0 %v5948_v25  ;;  %v5943_v25 = vld [vmem:[%s8356_s12 + $0x18] sm:$0xff]  }
 0x696   :  { %2777 = vmatprep.subr.bf16.mxu0 %v8400_v9 }
 0x758   :  { %v2384_v40 = vpop.f32.mrb[20].mxu1 }
 0x759   :  { %v2388_v4 = vmul.f32 0.01, %v2384_v40  ;;  %v2386_v37 = vpop.f32.mrb[21].mxu1 }
 0x75b   :  { %v2389_v45 = vmul.f32 %v2388_v4, %v2388_v4 }
 0x75d   :  { %v2391_v51 = vrot.slane %v2389_v45, 7 }
 0x75f   :  { %v2393_v29 = vsub.f32 %v2388_v4, %v2391_v51 }
 0x761   :  { %v2394_v53 = vadd.f32 1e-05, %v2393_v29 }
 0x763   :  { %6000 = vrsqrt.f32 %v2394_v53 }
 0x76d   :  { %v6001_v12 = vpop.eup %6000 }
 0x76e   :  { %v2396_v13 = vsel %vm1151_vm8, %v2388_v4, %v6001_v12 }
 0x76f   :  { %5235 = vmatmul.mubr.msk.f32.vlgmr.msra.gmra.mrb[22].mxu1 %vm8380_vm15, %v2396_v13  ;;  %vm2506_vm15 = vcmask 1044480  }
 0x770   :  { %2545 = vmatprep.mubr.bf16.mxu1 %v8400_v9 }
 0x842   :  { %v2467_v18 = vpop.f32.mrb[22].mxu1 }
 0x843   :  { %v2475_v31 = vrot.slane %v2467_v18, %v6636_v62  ;;  %v2469_v7 = vpop.f32.mrb[23].mxu1  ;;  %v2487_v58 = vrot.slane %v2467_v18, %v6631_v60  ;;  %v5945_v18 = vld [vmem:[%s8356_s12 + $0x20] sm:$0xff]  }
 0x844   :  { %v2479_v34 = vrot.slane %v2469_v7, %v6636_v62  ;;  %v2491_v4 = vrot.slane %v2469_v7, %v6631_v60  ;;  %v5949_v7 = vld [vmem:[%s8356_s12 + $0x30] sm:$0xff]  }
 0x845   :  { %v2480_v2 = vsub.f32 %v7180_v49, %v2475_v31  ;;  %v2482_v56 = vsub.f32 %v7186_v36, %v2475_v31  ;;  %v5947_v31 = vld [vmem:[%s8356_s12 + $0x28] sm:$0xff]  }
 0x846   :  { %v2481_v30 = vsub.f32 %v7183_v20, %v2479_v34  ;;  %v2483_v40 = vsub.f32 %v7191_v61, %v2479_v34  ;;  %v284_v20 = vld [vmem:[%s8355_s11] sm:$0x7]  ;;  %v4997_v61 = vld [vmem:[%s8355_s11 + $0x4] sm:$0x7] }
 0x847   :  { %v2492_v37 = vmul.f32 %v2487_v58, %v2480_v2  ;;  %v2494_v45 = vmul.f32 %v2487_v58, %v2482_v56  ;;  %v7310_v34 = vld [vmem:[%s8356_s12 + $0x80] sm:$0xff]   ;;  %v5951_v2 = vld [vmem:[%s8356_s12 + $0x38] sm:$0xff]   ;;  %v7320_v56 = vld [vmem:[%s8356_s12 + $0x88] sm:$0xff]  }
 0x848   :  { %v2493_v51 = vmul.f32 %v2491_v4, %v2481_v30  ;;  %v2495_v29 = vmul.f32 %v2491_v4, %v2483_v40  ;;  %2778 = vmatpush1.bf16.msra.mxu0 %v7310_v34  ;;  %v5953_v58 = vld [vmem:[%s8356_s12 + $0x40] sm:$0xff]   ;;  %v7331_v30 = vld [vmem:[%s8356_s12 + $0x90] sm:$0xff]   ;;  %v5955_v40 = vld [vmem:[%s8356_s12 + $0x48] sm:$0xff]  }
 0x849   :  { %v2496_v53 = vmax.f32 %v2492_v37, 0.0  ;;  %v2498_v12 = vmax.f32 %v2494_v45, 0.0  ;;  %2779 = vmatprep.subr.bf16.mxu0 %v8400_v9  ;;  %v7342_v4 = vld [vmem:[%s8356_s12 + $0x98] sm:$0xff]   ;;  %v6006_v37 = vld [vmem:[%s8389_s20 + $0x64] ss:$8 sps:$4 sm:$0xff]   ;;  %v8402_v45 = vmov 0.0|0.0  }
 0x84a   :  { %v2497_v13 = vmax.f32 %v2493_v51, 0.0  ;;  %v2499_v22 = vmax.f32 %v2495_v29, 0.0  ;;  %8401 = vst [vmem:[#allocation11_spill] sm:$0xff] %v7342_v4  ;;  %v7352_v51 = vld [vmem:[%s8390_s22 + $0x18] sm:$0xff]   ;;  %v7357_v29 = vld [vmem:[%s8390_s22 + $0x10] sm:$0xff]  }
 0x84b   :  { %v2500_v49 = vpack.c.bf16 %v2498_v12, %v2496_v53  ;;  %v2822_v53 = vshrl.u32 %v7357_v29, 16  ;;  %v2829_v12 = vshll.u32 %v7352_v51, 16 }
 0x84c   :  { %v2501_v57 = vpack.c.bf16 %v2499_v22, %v2497_v13  ;;  %2780 = vmatpush1.bf16.msra.mxu0 %v7320_v56  ;;  %v8384_v13 = vshrl.u32 %v7352_v51, 16  ;;  %v2824_v22 = vshll.u32 %v7357_v29, 16 }
 0x84d   :  { %v2508_v36 = vsel %vm2506_vm15, %v2500_v49, 0  ;;  %2781 = vmatprep.subr.bf16.mxu0 %v8400_v9  ;;  %v3022_v49 = vrot.slane %v2822_v53, 1 }
 0x84e   :  { %5236 = vmatprep.subr.msk.bf16.mxu1 %vm2506_vm15, %v2501_v57 }
 0x84f   :  { %2514 = vmatpush1.bf16.msra.mxu1 %v2508_v36 }
 0x850   :  { %5238 = vmatprep.subr.msk.bf16.mxu1 %vm2506_vm15, %v2501_v57  ;;  %2782 = vmatpush1.bf16.msra.mxu0 %v7331_v30  ;;  %v3026_v57 = vrot.slane %v2829_v12, 2 }
 0x851   :  { %2783 = vmatprep.subr.bf16.mxu0 %v8400_v9 }
 0x852   :  { %5237 = vmatmul.mubr.msk.bf16.vlgmr.msra.gmra.mrb[24].mxu1 %vm2502_vm14, %v284_v20  ;;  %v3023_v20 = vrot.slane %v2824_v22, 2 }
 0x853   :  { %2558 = vmatpush1.bf16.msra.mxu1 %v2508_v36  ;;  %2589 = vmatprep.mubr.bf16.mxu1 %v8400_v9  ;;  %v3025_v36 = vrot.slane %v8384_v13, 1 }
 0x854   :  { %2665 = vmatprep.subr.bf16.mxu1 %v8400_v9  ;;  %2784 = vmatpush1.bf16.msra.mxu0 %v7342_v4 }
 0x855   :  { %5571 = vmatprep.subr.bf16.mxu0 %v8402_v45 }
 0x85a   :  { %5239 = vmatmul.mubr.msk.bf16.vlgmr.msra.gmra.mrb[28].mxu1 %vm2502_vm14, %v4997_v61  ;;  %v3024_v61 = vor.u32 %v3023_v20, %v3022_v49  ;;  %v6007_v49 = vld [vmem:[%s8389_s20 + $0x60] ss:$8 sps:$4 sm:$0xff]   ;;  %v6014_v20 = vld [vmem:[%s8389_s20 + $0xa4] ss:$8 sps:$4 sm:$0xff]  }
 0x85b   :  { %2666 = vmatpush1.bf16.msra.mxu1 %v5937_v5  ;;  %v7365_v5 = vor.u32 %v3026_v57, %v3025_v36  ;;  %v6008_v57 = vld [vmem:[%s8389_s20 + $0x74] ss:$8 sps:$4 sm:$0xff]   ;;  %v2826_v36 = vrot.slane %v2824_v22, 1 }
 0x85c   :  { %2667 = vmatprep.subr.bf16.mxu1 %v8400_v9  ;;  %v6016_v22 = vld [vmem:[%s8389_s20 + $0xb4] ss:$8 sps:$4 sm:$0xff]  }
 0x85f   :  { %2668 = vmatpush1.bf16.msra.mxu1 %v5939_v27  ;;  %v7369_v27 = vsel %vm809_vm0, %v3024_v61, %v7365_v5  ;;  %v2827_v61 = vor.u32 %v2826_v36, %v2822_v53  ;;  %v6018_v53 = vld [vmem:[%s8389_s20 + $0x4] ss:$8 sps:$4 sm:$0xff]   ;;  %v6038_v36 = vld [vmem:[%s8389_s20 + $0xf4] ss:$8 sps:$4 sm:$0xff]   ;;  %vm8410_vm0 = vcmask 254976  }
 0x860   :  { %2669 = vmatprep.subr.bf16.mxu1 %v8400_v9 }
 0x863   :  { %2670 = vmatpush1.bf16.msra.mxu1 %v5941_v23 }
 0x864   :  { %2671 = vmatprep.subr.bf16.mxu1 %v8400_v9 }
 0x867   :  { %2672 = vmatpush1.bf16.msra.mxu1 %v5943_v25 }
 0x868   :  { %2673 = vmatprep.subr.bf16.mxu1 %v8400_v9 }
 0x86b   :  { %2674 = vmatpush1.bf16.msra.mxu1 %v5945_v18 }
 0x86c   :  { %2675 = vmatprep.subr.bf16.mxu1 %v8400_v9 }
 0x86f   :  { %2676 = vmatpush1.bf16.msra.mxu1 %v5947_v31 }
 0x870   :  { %2677 = vmatprep.subr.bf16.mxu1 %v8400_v9 }
 0x873   :  { %2678 = vmatpush1.bf16.msra.mxu1 %v5949_v7 }
 0x874   :  { %2679 = vmatprep.subr.bf16.mxu1 %v8400_v9 }
 0x877   :  { %2680 = vmatpush1.bf16.msra.mxu1 %v5951_v2 }
 0x878   :  { %2681 = vmatprep.subr.bf16.mxu1 %v8400_v9 }
 0x87b   :  { %2682 = vmatpush1.bf16.msra.mxu1 %v5953_v58 }
 0x87c   :  { %2683 = vmatprep.subr.bf16.mxu1 %v8400_v9 }
 0x87f   :  { %2684 = vmatpush1.bf16.msra.mxu1 %v5955_v40 }
 0x880   :  { %2842 = vmatprep.subr.bf16.mxu1 %v6006_v37 }
 0x925   :  { %v2547_v23 = vpop.f32.mrb[24].mxu1 }
 0x926   :  { %v2549_v25 = vpop.f32.mrb[25].mxu1 }
 0x927   :  { %v2551_v18 = vpop.f32.mrb[26].mxu1 }
 0x928   :  { %v2552_v31 = vpop.f32.mrb[27].mxu1 }
 0x929   :  { %v6021_v31 = vld [vmem:[%s8389_s20 + $0x10] ss:$8 sps:$4 sm:$0xff]  }
 0x92d   :  { %v2591_v7 = vpop.f32.mrb[28].mxu1 }
 0x92e   :  { %v2598_v2 = vmax.f32 %v2547_v23, %v2591_v7  ;;  %v2593_v58 = vpop.f32.mrb[29].mxu1  ;;  %v2831_v23 = vrot.slane %v2829_v12, 1  ;;  %v6020_v12 = vld [vmem:[%s8389_s20 + $0x14] ss:$8 sps:$4 sm:$0xff]   ;;  %v6022_v7 = vld [vmem:[%s8389_s20 + $0x24] ss:$8 sps:$4 sm:$0xff]  }
 0x92f   :  { %v2599_v40 = vmax.f32 %v2549_v25, %v2593_v58  ;;  %v2595_v37 = vpop.f32.mrb[30].mxu1  ;;  %v6026_v58 = vld [vmem:[%s8389_s20 + $0x44] ss:$8 sps:$4 sm:$0xff]  }
 0x930   :  { %v2596_v39 = vpop.f32.mrb[31].mxu1  ;;  %v2600_v13 = vpack.c.bf16 %v2598_v2, %v2598_v2  ;;  %v2832_v25 = vsel %vm425_vm2, %v2827_v61, %v2831_v23  ;;  %v6024_v2 = vld [vmem:[%s8389_s20 + $0x34] ss:$8 sps:$4 sm:$0xff]   ;;  %v6029_v37 = vld [vmem:[%s8391_s30 + $0xa0] sm:$0xff]  ;;  %vm8413_vm2 = vcmask 130048  }
 0x931   :  { %v2601_v4 = vpack.c.bf16 %v2599_v40, %v2599_v40  ;;  %v6009_v39 = vld [vmem:[%s8389_s20 + $0x70] ss:$8 sps:$4 sm:$0xff]   ;;  %v6028_v40 = vld [vmem:[%s8389_s20 + $0x54] ss:$8 sps:$4 sm:$0xff]   ;;  %v6041_v61 = vld [vmem:[%s8389_s20 + $0x100] ss:$8 sps:$4 sm:$0xff]  }
 0x933   :  { %5250 = vmatprep.mubr.msk.bf16.mxu1 %vm2281_vm13, %v2601_v4  ;;  %5261 = vmatprep.mubr.msk.bf16.mxu0 %vm2281_vm13, %v2601_v4  ;;  %v6010_v4 = vld [vmem:[%s8389_s20 + $0x84] ss:$8 sps:$4 sm:$0xff]  }
 0x934   :  { %2698 = vmatmul.mubr.bf16.vlgmr.msra.gmra.mrb[32].mxu1 %v2600_v13  ;;  %2798 = vmatmul.mubr.bf16.vlgmr.msra.gmra.mrb[12].mxu0 %v2600_v13  ;;  %v6012_v13 = vld [vmem:[%s8389_s20 + $0x94] ss:$8 sps:$4 sm:$0xff]  }
 0x935   :  { %2843 = vmatpush1.bf16.msra.mxu1 %v6007_v49  ;;  %2874 = vmatprep.mubr.bf16.mxu1 %v8400_v9  ;;  %v6031_v49 = vld [vmem:[%s8389_s20 + $0x50] ss:$8 sps:$4 sm:$0xff]  }
 0x936   :  { %2844 = vmatprep.subr.bf16.mxu1 %v6008_v57  ;;  %5573 = vmatpush1.bf16.msra.mxu0 %v6409_v52  ;;  %v6011_v52 = vld [vmem:[%s8389_s20 + $0x80] ss:$8 sps:$4 sm:$0xff]   ;;  %v6032_v57 = vld [vmem:[%s8389_s20 + $0xc4] ss:$8 sps:$4 sm:$0xff]  }
 0x937   :  { %5574 = vmatprep.subr.bf16.mxu0 %v8402_v45 }
 0x939   :  { %2845 = vmatpush1.bf16.msra.mxu1 %v6009_v39  ;;  %v6033_v39 = vld [vmem:[%s8389_s20 + $0xc0] ss:$8 sps:$4 sm:$0xff]  }
 0x93a   :  { %2846 = vmatprep.subr.bf16.mxu1 %v6010_v4  ;;  %5576 = vmatpush1.bf16.msra.mxu0 %v6418_v55  ;;  %v6013_v55 = vld [vmem:[%s8389_s20 + $0x90] ss:$8 sps:$4 sm:$0xff]   ;;  %v6034_v4 = vld [vmem:[%s8389_s20 + $0xd4] ss:$8 sps:$4 sm:$0xff]  }
 0x93b   :  { %5577 = vmatprep.subr.bf16.mxu0 %v8402_v45 }
 0x93d   :  { %2847 = vmatpush1.bf16.msra.mxu1 %v6011_v52  ;;  %v6035_v52 = vld [vmem:[%s8389_s20 + $0xd0] ss:$8 sps:$4 sm:$0xff]  }
 0x93e   :  { %2848 = vmatprep.subr.bf16.mxu1 %v6012_v13  ;;  %5579 = vmatpush1.bf16.msra.mxu0 %v6554_v35  ;;  %v6015_v35 = vld [vmem:[%s8389_s20 + $0xa0] ss:$8 sps:$4 sm:$0xff]   ;;  %v6036_v13 = vld [vmem:[%s8389_s20 + $0xe4] ss:$8 sps:$4 sm:$0xff]  }
 0x93f   :  { %5580 = vmatprep.subr.bf16.mxu0 %v8402_v45 }
 0x941   :  { %2849 = vmatpush1.bf16.msra.mxu1 %v6013_v55  ;;  %v6037_v55 = vld [vmem:[%s8389_s20 + $0xe0] ss:$8 sps:$4 sm:$0xff]  }
 0x942   :  { %2850 = vmatprep.subr.bf16.mxu1 %v6014_v20  ;;  %5582 = vmatpush1.bf16.msra.mxu0 %v6564_v33  ;;  %v6017_v33 = vld [vmem:[%s8389_s20 + $0xb0] ss:$8 sps:$4 sm:$0xff]  }
 0x943   :  { %5583 = vmatprep.subr.bf16.mxu0 %v8402_v45  ;;  %v6039_v20 = vld [vmem:[%s8389_s20 + $0xf0] ss:$8 sps:$4 sm:$0xff]  }
 0x945   :  { %2851 = vmatpush1.bf16.msra.mxu1 %v6015_v35  ;;  %v6040_v35 = vld [vmem:[%s8389_s20 + $0x104] ss:$8 sps:$4 sm:$0xff]  }
 0x946   :  { %2852 = vmatprep.subr.bf16.mxu1 %v6016_v22  ;;  %5585 = vmatpush1.bf16.msra.mxu0 %v6574_v38  ;;  %v6019_v38 = vld [vmem:[%s8389_s20] ss:$8 sps:$4 sm:$0xff]   ;;  %v2953_v22 = vrot.slane %v7352_v51, 1 }
 0x947   :  { %5586 = vmatprep.subr.bf16.mxu0 %v8402_v45 }
 0x949   :  { %2853 = vmatpush1.bf16.msra.mxu1 %v6017_v33  ;;  %v6042_v33 = vld [vmem:[%s8389_s20 + $0x114] ss:$8 sps:$4 sm:$0xff]  }
 0x94a   :  { %2899 = vmatprep.subr.bf16.mxu1 %v6018_v53  ;;  %5588 = vmatpush1.bf16.msra.mxu0 %v6584_v41  ;;  %v8403_v41 = vshrl.u32 %v7352_v51, 16 }
 0x94b   :  { %5589 = vmatprep.subr.bf16.mxu0 %v8402_v45 }
 0x94c   :  { %5268 = vmatmul.mubr.msk.bf16.vlgmr.msra.gmra.mrb[36].mxu1 %vm501_vm3, %v2832_v25  ;;  %v2835_v18 = vor.u32 %v8403_v41, %v2831_v23  ;;  %v2952_v23 = vrot.slane %v7357_v29, 1  ;;  %v6043_v25 = vld [vmem:[%s8389_s20 + $0x110] ss:$8 sps:$4 sm:$0xff]   ;;  %v6046_v41 = vld [vmem:[%s8389_s20 + $0x134] ss:$8 sps:$4 sm:$0xff]  }
 0x94d   :  { %2900 = vmatpush1.bf16.msra.mxu1 %v6019_v38  ;;  %2884 = vmatprep.mubr.bf16.mxu1 %v8400_v9  ;;  %v6044_v38 = vld [vmem:[%s8389_s20 + $0x124] ss:$8 sps:$4 sm:$0xff]  }
 0x94e   :  { %2901 = vmatprep.subr.bf16.mxu1 %v6020_v12  ;;  %5591 = vmatpush1.bf16.msra.mxu0 %v6594_v44  ;;  %v6023_v44 = vld [vmem:[%s8389_s20 + $0x20] ss:$8 sps:$4 sm:$0xff]   ;;  %v2954_v53 = vsel %vm678_vm4, %v2952_v23, %v2953_v22  ;;  %vm4316_vm4 = vcmask 654336  }
 0x94f   :  { %5592 = vmatprep.subr.bf16.mxu0 %v8402_v45  ;;  %v6045_v12 = vld [vmem:[%s8389_s20 + $0x120] ss:$8 sps:$4 sm:$0xff]  }
 0x950   :  { %v6070_v23 = vld [vmem:[%s8350_s6 + $0x64] sm:$0xff]  }
 0x951   :  { %2902 = vmatpush1.bf16.msra.mxu1 %v6021_v31  ;;  %v6048_v31 = vld [vmem:[%s8389_s20 + $0x144] ss:$8 sps:$4 sm:$0xff]  }
 0x952   :  { %2903 = vmatprep.subr.bf16.mxu1 %v6022_v7  ;;  %5594 = vmatpush1.bf16.msra.mxu0 %v6604_v47  ;;  %v6025_v47 = vld [vmem:[%s8389_s20 + $0x30] ss:$8 sps:$4 sm:$0xff]   ;;  %v6049_v7 = vld [vmem:[%s8389_s20 + $0x140] ss:$8 sps:$4 sm:$0xff]  }
 0x953   :  { %5595 = vmatprep.subr.bf16.mxu0 %v8402_v45 }
 0x954   :  { %5269 = vmatmul.mubr.msk.bf16.gmra.mrb[40].mxu1 %vm501_vm3, %v2835_v18  ;;  %v6047_v18 = vld [vmem:[%s8389_s20 + $0x130] ss:$8 sps:$4 sm:$0xff]  }
 0x955   :  { %2904 = vmatpush1.bf16.msra.mxu1 %v6023_v44  ;;  %2931 = vmatprep.mubr.bf16.mxu1 %v8400_v9  ;;  %v6050_v44 = vld [vmem:[%s8389_s20 + $0x154] ss:$8 sps:$4 sm:$0xff]  }
 0x956   :  { %2905 = vmatprep.subr.bf16.mxu1 %v6024_v2  ;;  %5597 = vmatpush1.bf16.msra.mxu0 %v6614_v50  ;;  %v6027_v50 = vld [vmem:[%s8389_s20 + $0x40] ss:$8 sps:$4 sm:$0xff]   ;;  %v6051_v2 = vld [vmem:[%s8389_s20 + $0x150] ss:$8 sps:$4 sm:$0xff]  }
 0x957   :  { %5598 = vmatprep.subr.bf16.mxu0 %v8402_v45 }
 0x959   :  { %2906 = vmatpush1.bf16.msra.mxu1 %v6025_v47  ;;  %v6052_v47 = vld [vmem:[%s8389_s20 + $0x164] ss:$8 sps:$4 sm:$0xff]  }
 0x95a   :  { %2907 = vmatprep.subr.bf16.mxu1 %v6026_v58  ;;  %5600 = vmatpush1.bf16.msra.mxu0 %v6623_v54  ;;  %v6030_v54 = vld [vmem:[%s8348_s4 + $0x8] sm:$0x3f] }
 0x95b   :  { %3273 = vmatprep.subr.mxu0 %v8398_v6  ;;  %v6053_v58 = vld [vmem:[%s8389_s20 + $0x160] ss:$8 sps:$4 sm:$0xff]  }
 0x95d   :  { %2908 = vmatpush1.bf16.msra.mxu1 %v6027_v50  ;;  %v6054_v50 = vld [vmem:[%s8389_s20 + $0x174] ss:$8 sps:$4 sm:$0xff]  }
 0x95e   :  { %2909 = vmatprep.subr.bf16.mxu1 %v6028_v40  ;;  %3274 = vmatpush1.msra.mxu0 %v6029_v37  ;;  %v6055_v40 = vld [vmem:[%s8389_s20 + $0x170] ss:$8 sps:$4 sm:$0xff]   ;;  %v6056_v37 = vld [vmem:[%s8389_s20 + $0x184] ss:$8 sps:$4 sm:$0xff]  }
 0x95f   :  { %5279 = vmatprep.subr.msk.mxu0 %vm944_vm1, %v6030_v54  ;;  %v6057_v54 = vld [vmem:[%s8389_s20 + $0x180] ss:$8 sps:$4 sm:$0xff]  }
 0x961   :  { %2910 = vmatpush1.bf16.msra.mxu1 %v6031_v49  ;;  %v6058_v49 = vld [vmem:[%s8389_s20 + $0x194] ss:$8 sps:$4 sm:$0xff]  }
 0x962   :  { %2961 = vmatprep.subr.bf16.mxu1 %v6032_v57  ;;  %v6059_v57 = vld [vmem:[%s8389_s20 + $0x190] ss:$8 sps:$4 sm:$0xff]  }
 0x964   :  { %5270 = vmatmul.mubr.msk.bf16.vlgmr.msra.gmra.mrb[36].mxu1 %vm501_vm3, %v7357_v29 }
 0x965   :  { %2962 = vmatpush1.bf16.msra.mxu1 %v6033_v39  ;;  %2941 = vmatprep.mubr.bf16.mxu1 %v8400_v9  ;;  %v6061_v39 = vld [vmem:[%s8389_s20 + $0x1a0] ss:$8 sps:$4 sm:$0xff]  }
 0x966   :  { %2963 = vmatprep.subr.bf16.mxu1 %v6034_v4  ;;  %v6062_v4 = vld [vmem:[%s8389_s20 + $0x1b4] ss:$8 sps:$4 sm:$0xff]  }
 0x969   :  { %2964 = vmatpush1.bf16.msra.mxu1 %v6035_v52  ;;  %v6063_v52 = vld [vmem:[%s8389_s20 + $0x1b0] ss:$8 sps:$4 sm:$0xff]  }
 0x96a   :  { %2965 = vmatprep.subr.bf16.mxu1 %v6036_v13  ;;  %v6065_v13 = vld [vmem:[%s8389_s20 + $0x1c0] ss:$8 sps:$4 sm:$0xff]  }
 0x96c   :  { %5271 = vmatmul.mubr.msk.bf16.gmra.mrb[40].mxu1 %vm501_vm3, %v7352_v51 }
 0x96d   :  { %2966 = vmatpush1.bf16.msra.mxu1 %v6037_v55  ;;  %2993 = vmatprep.mubr.bf16.mxu1 %v8400_v9  ;;  %v3096_v55 = vrot.slane %v7357_v29, 2  ;;  %v6069_v29 = vld [vmem:[%s8350_s6 + $0x5c] sm:$0xff]  }
 0x96e   :  { %2967 = vmatprep.subr.bf16.mxu1 %v6038_v36  ;;  %v3097_v36 = vrot.slane %v7352_v51, 2  ;;  %v6068_v51 = vld [vmem:[%s8350_s6 + $0x54] sm:$0xff]  }
 0x971   :  { %2968 = vmatpush1.bf16.msra.mxu1 %v6039_v20  ;;  %v6066_v20 = vld [vmem:[%s8389_s20 + $0x1d4] ss:$8 sps:$4 sm:$0xff]  }
 0x972   :  { %2969 = vmatprep.subr.bf16.mxu1 %v6040_v35  ;;  %v6067_v35 = vld [vmem:[%s8389_s20 + $0x1d0] ss:$8 sps:$4 sm:$0xff]  }
 0x975   :  { %2970 = vmatpush1.bf16.msra.mxu1 %v6041_v61  ;;  %v3098_v61 = vsel %vm944_vm1, %v3096_v55, %v3097_v36 }
 0x976   :  { %2971 = vmatprep.subr.bf16.mxu1 %v6042_v33  ;;  %v6072_v33 = vld [vmem:[%s8350_s6 + $0x74] sm:$0xff]  }
 0x979   :  { %2972 = vmatpush1.bf16.msra.mxu1 %v6043_v25  ;;  %v6073_v25 = vld [vmem:[%s8350_s6 + $0x7c] sm:$0xff]  }
 0x97a   :  { %3035 = vmatprep.subr.bf16.mxu1 %v6044_v38  ;;  %v6075_v38 = vld [vmem:[%s8350_s6 + $0x8c] sm:$0xff]  }
 0x97c   :  { %5272 = vmatmul.mubr.msk.bf16.vlgmr.msra.gmra.mrb[36].mxu1 %vm501_vm3, %v2954_v53  ;;  %v6074_v53 = vld [vmem:[%s8350_s6 + $0x84] sm:$0xff]  }
 0x97d   :  { %3036 = vmatpush1.bf16.msra.mxu1 %v6045_v12  ;;  %3003 = vmatprep.mubr.bf16.mxu1 %v8400_v9  ;;  %v6076_v12 = vld [vmem:[%s8350_s6 + $0x94] sm:$0xff]  }
 0x97e   :  { %3037 = vmatprep.subr.bf16.mxu1 %v6046_v41  ;;  %v6077_v41 = vld [vmem:[%s8350_s6 + $0x9c] sm:$0xff]  }
 0x981   :  { %3038 = vmatpush1.bf16.msra.mxu1 %v6047_v18 }
 0x982   :  { %3039 = vmatprep.subr.bf16.mxu1 %v6048_v31 }
 0x984   :  { %5273 = vmatmul.mubr.msk.bf16.gmra.mrb[40].mxu1 %vm501_vm3, %v2953_v22  ;;  %v6071_v22 = vld [vmem:[%s8350_s6 + $0x6c] sm:$0xff]  }
 0x985   :  { %3040 = vmatpush1.bf16.msra.mxu1 %v6049_v7  ;;  %3067 = vmatprep.mubr.bf16.mxu1 %v8400_v9 }
 0x986   :  { %3041 = vmatprep.subr.bf16.mxu1 %v6050_v44 }
 0x989   :  { %3042 = vmatpush1.bf16.msra.mxu1 %v6051_v2 }
 0x98a   :  { %3043 = vmatprep.subr.bf16.mxu1 %v6052_v47 }
 0x98d   :  { %3044 = vmatpush1.bf16.msra.mxu1 %v6053_v58 }
 0x98e   :  { %3045 = vmatprep.subr.bf16.mxu1 %v6054_v50 }
 0x991   :  { %3046 = vmatpush1.bf16.msra.mxu1 %v6055_v40 }
 0x992   :  { %3105 = vmatprep.subr.bf16.mxu1 %v6056_v37 }
 0x994   :  { %5274 = vmatmul.mubr.msk.bf16.vlgmr.msra.gmra.mrb[36].mxu1 %vm501_vm3, %v7369_v27  ;;  %v6060_v27 = vld [vmem:[%s8389_s20 + $0x1a4] ss:$8 sps:$4 sm:$0xff]  }
 0x995   :  { %3106 = vmatpush1.bf16.msra.mxu1 %v6057_v54  ;;  %3077 = vmatprep.mubr.bf16.mxu1 %v8400_v9 }
 0x996   :  { %3107 = vmatprep.subr.bf16.mxu1 %v6058_v49 }
 0x999   :  { %3108 = vmatpush1.bf16.msra.mxu1 %v6059_v57 }
 0x99a   :  { %3109 = vmatprep.subr.bf16.mxu1 %v6060_v27 }
 0x99c   :  { %5275 = vmatmul.mubr.msk.bf16.gmra.mrb[40].mxu1 %vm501_vm3, %v7365_v5  ;;  %v6064_v5 = vld [vmem:[%s8389_s20 + $0x1c4] ss:$8 sps:$4 sm:$0xff]  }
 0x99d   :  { %3110 = vmatpush1.bf16.msra.mxu1 %v6061_v39  ;;  %3137 = vmatprep.mubr.bf16.mxu1 %v8400_v9 }
 0x99e   :  { %3111 = vmatprep.subr.bf16.mxu1 %v6062_v4 }
 0x9a1   :  { %3112 = vmatpush1.bf16.msra.mxu1 %v6063_v52 }
 0x9a2   :  { %3113 = vmatprep.subr.bf16.mxu1 %v6064_v5 }
 0x9a5   :  { %3114 = vmatpush1.bf16.msra.mxu1 %v6065_v13 }
 0x9a6   :  { %3115 = vmatprep.subr.bf16.mxu1 %v6066_v20 }
 0x9a9   :  { %3116 = vmatpush1.bf16.msra.mxu1 %v6067_v35 }
 0x9aa   :  { %3572 = vmatprep.subr.bf16.mxu1 %v8400_v9 }
 0x9ac   :  { %5276 = vmatmul.mubr.msk.bf16.vlgmr.msra.gmra.mrb[36].mxu1 %vm501_vm3, %v3098_v61 }
 0x9ad   :  { %3147 = vmatprep.mubr.bf16.mxu1 %v8400_v9  ;;  %3573 = vmatpush1.bf16.msra.mxu1 %v6068_v51 }
 0x9ae   :  { %3574 = vmatprep.subr.bf16.mxu1 %v8400_v9 }
 0x9b1   :  { %3575 = vmatpush1.bf16.msra.mxu1 %v6069_v29 }
 0x9b2   :  { %3576 = vmatprep.subr.bf16.mxu1 %v8400_v9 }
 0x9b4   :  { %5277 = vmatmul.mubr.msk.bf16.gmra.mrb[40].mxu1 %vm501_vm3, %v3097_v36  ;;  %vm6186_vm3 = vmmov 0  }
 0x9b5   :  { %3577 = vmatpush1.bf16.msra.mxu1 %v6070_v23 }
 0x9b6   :  { %3578 = vmatprep.subr.bf16.mxu1 %v8400_v9 }
 0x9b9   :  { %3579 = vmatpush1.bf16.msra.mxu1 %v6071_v22 }
 0x9ba   :  { %3580 = vmatprep.subr.bf16.mxu1 %v8400_v9 }
 0x9bd   :  { %3581 = vmatpush1.bf16.msra.mxu1 %v6072_v33 }
 0x9be   :  { %3582 = vmatprep.subr.bf16.mxu1 %v8400_v9 }
 0x9c1   :  { %3583 = vmatpush1.bf16.msra.mxu1 %v6073_v25 }
 0x9c2   :  { %3584 = vmatprep.subr.bf16.mxu1 %v8400_v9 }
 0x9c5   :  { %3585 = vmatpush1.bf16.msra.mxu1 %v6074_v53 }
 0x9c6   :  { %3586 = vmatprep.subr.bf16.mxu1 %v8400_v9 }
 0x9c9   :  { %3587 = vmatpush1.bf16.msra.mxu1 %v6075_v38 }
 0x9ca   :  { %3588 = vmatprep.subr.bf16.mxu1 %v8400_v9 }
 0x9cd   :  { %3589 = vmatpush1.bf16.msra.mxu1 %v6076_v12 }
 0x9ce   :  { %3590 = vmatprep.subr.bf16.mxu1 %v8400_v9 }
 0x9d1   :  { %3591 = vmatpush1.bf16.msra.mxu1 %v6077_v41 }
 0x9d2   :  { %3592 = vmatprep.subr.bf16.mxu1 %v8400_v9 }
 0x9d5   :  { %3593 = vmatpush1.bf16.msra.mxu1 %v6836_v26 }
 0x9d6   :  { %5601 = vmatprep.subr.bf16.mxu1 %v8402_v45 }
 0xa07   :  { %v2699_v18 = vpop.f32.mrb[32].mxu1  ;;  %v2799_v31 = vpop.f32.mrb[12].mxu0 }
 0xa08   :  { %v7653_v7 = vmax.f32 %v2699_v18, %v2799_v31  ;;  %v2701_v44 = vpop.f32.mrb[33].mxu1  ;;  %v2801_v2 = vpop.f32.mrb[13].mxu0 }
 0xa09   :  { %v2702_v47 = vpop.f32.mrb[34].mxu1  ;;  %v2802_v58 = vpop.f32.mrb[14].mxu0 }
 0xa0a   :  { %v2703_v50 = vpop.f32.mrb[35].mxu1  ;;  %v2803_v40 = vpop.f32.mrb[15].mxu0 }
 0xa7f   :  { %v3139_v37 = vpop.f32.mrb[36].mxu1 }
 0xa80   :  { %v3141_v54 = vpop.f32.mrb[37].mxu1  ;;  %v7662_v39 = vadd.f32 %v3139_v37, %v6642_v1 }
 0xa81   :  { %v7656_v49 = vadd.f32 %v3141_v54, %v6639_v63  ;;  %v3143_v57 = vpop.f32.mrb[38].mxu1 }
 0xa82   :  { %v7659_v26 = vadd.f32 %v3143_v57, %v6642_v1  ;;  %v3145_v27 = vpop.f32.mrb[39].mxu1  ;;  %v3197_v55 = vmul.f32 %v7662_v39, %v7662_v39 }
 0xa83   :  { %v7665_v4 = vadd.f32 %v3145_v27, %v6639_v63  ;;  %v3198_v52 = vmul.f32 %v7656_v49, %v7656_v49  ;;  %v3184_v23 = vsel %vm1105_vm5, %v7656_v49, 0.0 }
 0xa84   :  { %v3199_v5 = vmul.f32 %v7659_v26, %v7659_v26  ;;  %v3174_v35 = vadd.f32 %v7659_v26, %v7662_v39 }
 0xa85   :  { %v3200_v13 = vmul.f32 %v7665_v4, %v7665_v4  ;;  %v3185_v36 = vsel %vm1105_vm5, %v7665_v4, 0.0  ;;  %v3215_v22 = vsel %vm1105_vm5, %v3198_v52, 0.0 }
 0xa86   :  { %v3205_v33 = vadd.f32 %v3199_v5, %v3197_v55  ;;  %v3186_v38 = vadd.f32 %v3185_v36, %v3184_v23 }
 0xa87   :  { %v3149_v20 = vpop.f32.mrb[40].mxu1  ;;  %v3216_v61 = vsel %vm1105_vm5, %v3200_v13, 0.0 }
 0xa88   :  { %v7681_v51 = vadd.f32 %v3149_v20, %v6642_v1  ;;  %v3151_v29 = vpop.f32.mrb[41].mxu1  ;;  %v3217_v44 = vadd.f32 %v3216_v61, %v3215_v22 }
 0xa89   :  { %v7687_v25 = vadd.f32 %v3151_v29, %v6639_v63  ;;  %v3153_v53 = vpop.f32.mrb[42].mxu1 }
 0xa8a   :  { %v3175_v12 = vadd.f32 %v3174_v35, %v7681_v51  ;;  %v3201_v41 = vmul.f32 %v7681_v51, %v7681_v51  ;;  %v7693_v18 = vadd.f32 %v3153_v53, %v6642_v1  ;;  %v3155_v31 = vpop.f32.mrb[43].mxu1 }
 0xa8b   :  { %v3187_v2 = vsel %vm1105_vm5, %v7687_v25, 0.0  ;;  %v3202_v47 = vmul.f32 %v7687_v25, %v7687_v25  ;;  %v7700_v58 = vadd.f32 %v3155_v31, %v6639_v63 }
 0xa8c   :  { %v3206_v50 = vadd.f32 %v3205_v33, %v3201_v41  ;;  %v3188_v40 = vadd.f32 %v3187_v2, %v3186_v38  ;;  %v3176_v37 = vsel %vm1096_vm6, %v7693_v18, 0.0  ;;  %v3203_v1 = vmul.f32 %v7693_v18, %v7693_v18 }
 0xa8d   :  { %v3218_v54 = vsel %vm1105_vm5, %v3202_v47, 0.0  ;;  %v3177_v57 = vadd.f32 %v3176_v37, %v3175_v12  ;;  %v3189_v27 = vsel %vm1111_vm7, %v7700_v58, 0.0  ;;  %v3204_v52 = vmul.f32 %v7700_v58, %v7700_v58 }
 0xa8e   :  { %v3219_v5 = vadd.f32 %v3218_v54, %v3217_v44  ;;  %v3207_v63 = vsel %vm1096_vm6, %v3203_v1, 0.0  ;;  %v3190_v13 = vadd.f32 %v3189_v27, %v3188_v40 }
 0xa8f   :  { %v3178_v55 = vrot.slane %v3177_v57, 4  ;;  %v3208_v36 = vadd.f32 %v3207_v63, %v3206_v50  ;;  %v3220_v20 = vsel %vm1111_vm7, %v3204_v52, 0.0 }
 0xa90   :  { %v3191_v35 = vrot.slane %v3190_v13, 4  ;;  %v3221_v61 = vadd.f32 %v3220_v20, %v3219_v5 }
 0xa91   :  { %v3179_v29 = vadd.f32 %v3178_v55, %v3177_v57  ;;  %v3209_v23 = vrot.slane %v3208_v36, 4 }
 0xa92   :  { %v3192_v22 = vadd.f32 %v3191_v35, %v3190_v13  ;;  %v3222_v33 = vrot.slane %v3221_v61, 4 }
 0xa93   :  { %v3180_v53 = vrot.slane %v3179_v29, 2  ;;  %v3210_v38 = vadd.f32 %v3209_v23, %v3208_v36  ;;  %v6078_v36 = vld [vmem:[%s8348_s4] sm:$0x3f] }
 0xa94   :  { %v3193_v12 = vrot.slane %v3192_v22, 2  ;;  %v3223_v41 = vadd.f32 %v3222_v33, %v3221_v61 }
 0xa95   :  { %v3181_v31 = vadd.f32 %v3180_v53, %v3179_v29  ;;  %v3211_v2 = vrot.slane %v3210_v38, 2 }
 0xa96   :  { %v3194_v44 = vadd.f32 %v3193_v12, %v3192_v22  ;;  %v3224_v47 = vrot.slane %v3223_v41, 2 }
 0xa97   :  { %v3212_v37 = vadd.f32 %v3211_v2, %v3210_v38  ;;  %v3182_v50 = vrot.slane %v3181_v31, 1 }
 0xa98   :  { %v3195_v40 = vrot.slane %v3194_v44, 1  ;;  %v3225_v1 = vadd.f32 %v3224_v47, %v3223_v41 }
 0xa99   :  { %v3213_v54 = vrot.slane %v3212_v37, 1  ;;  %v3183_v63 = vadd.f32 %v3182_v50, %v3181_v31 }
 0xa9a   :  { %v3226_v27 = vrot.slane %v3225_v1, 1  ;;  %v3196_v5 = vadd.f32 %v3195_v40, %v3194_v44 }
 0xa9b   :  { %v3214_v52 = vadd.f32 %v3213_v54, %v3212_v37 }
 0xa9c   :  { %v3227_v57 = vadd.f32 %v3226_v27, %v3225_v1 }
 0xa9d   :  { %v3228_v55 = vsel %vm1151_vm8, %v3183_v63, %v3214_v52 }
 0xa9e   :  { %v3229_v13 = vsel %vm1151_vm8, %v3196_v5, %v3227_v57 }
 0xa9f   :  { %5278 = vmatprep.mubr.msk.f32.mxu0 %vm1105_vm5, %v3229_v13 }
 0xaa0   :  { %3298 = vmatmul.mubr.f32.vlgmr.msra.gmra.mrb[16].mxu0 %v3228_v55 }
 0xaa1   :  { %5280 = vmatpush1.msk.msra.mxu0 %vm944_vm1, %v6078_v36  ;;  %3379 = vmatprep.mubr.f32.mxu0 %v8398_v6 }
 0xb73   :  { %v3299_v20 = vpop.f32.mrb[16].mxu0 }
 0xb74   :  { %v3303_v35 = vmul.f32 0.0012755102, %v3299_v20  ;;  %v3301_v61 = vpop.f32.mrb[17].mxu0 }
 0xb76   :  { %v3304_v29 = vmul.f32 %v3303_v35, %v3303_v35 }
 0xb78   :  { %v3306_v23 = vrot.slane %v3304_v29, 7 }
 0xb7a   :  { %v3308_v22 = vsub.f32 %v3303_v35, %v3306_v23 }
 0xb7c   :  { %v3309_v33 = vadd.f32 1e-05, %v3308_v22 }
 0xb7e   :  { %6002 = vrsqrt.f32 %v3309_v33 }
 0xb88   :  { %v6003_v53 = vpop.eup %6002 }
 0xb89   :  { %v3311_v38 = vsel %vm1151_vm8, %v3303_v35, %v6003_v53 }
 0xb8a   :  { %5281 = vmatmul.mubr.msk.f32.vlgmr.msra.gmra.mrb[18].mxu0 %vm1236_vm9, %v3311_v38  ;;  %v6079_v38 = vld [vmem:[%s8349_s5] sm:$0x7f]  }
 0xb8b   :  { %3468 = vmatprep.mubr.bf16.mxu0 %v8400_v9 }
 0xc5d   :  { %v3381_v12 = vpop.f32.mrb[18].mxu0 }
 0xc5e   :  { %v3389_v41 = vrot.slane %v3381_v12, %v6636_v62  ;;  %v3383_v31 = vpop.f32.mrb[19].mxu0  ;;  %v3405_v2 = vrot.slane %v3381_v12, %v6631_v60  ;;  %v6080_v12 = vld [vmem:[%s8349_s5 + $0x8] sm:$0x7f]  }
 0xc5f   :  { %v3393_v44 = vrot.slane %v3383_v31, %v6636_v62  ;;  %v3409_v47 = vrot.slane %v3383_v31, %v6631_v60  ;;  %v6082_v31 = vld [vmem:[%s8350_s6 + $0x8] sm:$0xff]  }
 0xc60   :  { %v3394_v37 = vsub.f32 %v7662_v39, %v3389_v41  ;;  %v3396_v40 = vsub.f32 %v7659_v26, %v3389_v41  ;;  %v3398_v1 = vsub.f32 %v7681_v51, %v3389_v41  ;;  %v3400_v50 = vsub.f32 %v7693_v18, %v3389_v41  ;;  %v6081_v41 = vld [vmem:[%s8350_s6] sm:$0xff]  }
 0xc61   :  { %v3399_v54 = vsub.f32 %v7687_v25, %v3393_v44  ;;  %v3401_v27 = vsub.f32 %v7700_v58, %v3393_v44  ;;  %v3395_v52 = vsub.f32 %v7656_v49, %v3393_v44  ;;  %v3397_v5 = vsub.f32 %v7665_v4, %v3393_v44  ;;  %v6084_v44 = vld [vmem:[%s8350_s6 + $0x18] sm:$0xff]  }
 0xc62   :  { %v3410_v57 = vmul.f32 %v3405_v2, %v3394_v37  ;;  %v3412_v63 = vmul.f32 %v3405_v2, %v3396_v40  ;;  %v3414_v13 = vmul.f32 %v3405_v2, %v3398_v1  ;;  %v3416_v55 = vmul.f32 %v3405_v2, %v3400_v50  ;;  %v6083_v2 = vld [vmem:[%s8350_s6 + $0x10] sm:$0xff]   ;;  %v6086_v37 = vld [vmem:[%s8350_s6 + $0x28] sm:$0xff]   ;;  %v6088_v1 = vld [vmem:[%s8350_s6 + $0x38] sm:$0xff]  }
 0xc63   :  { %v3415_v36 = vmul.f32 %v3409_v47, %v3399_v54  ;;  %v3417_v39 = vmul.f32 %v3409_v47, %v3401_v27  ;;  %v3411_v20 = vmul.f32 %v3409_v47, %v3395_v52  ;;  %v3413_v26 = vmul.f32 %v3409_v47, %v3397_v5  ;;  %v6085_v47 = vld [vmem:[%s8350_s6 + $0x20] sm:$0xff]   ;;  %v6087_v40 = vld [vmem:[%s8350_s6 + $0x30] sm:$0xff]   ;;  %v6090_v54 = vld [vmem:[%s8350_s6 + $0x48] sm:$0xff]  }
 0xc64   :  { %v3418_v35 = vmax.f32 %v3410_v57, 0.0  ;;  %v3420_v51 = vmax.f32 %v3412_v63, 0.0  ;;  %v3422_v61 = vmax.f32 %v3414_v13, 0.0  ;;  %v3424_v18 = vmax.f32 %v3416_v55, 0.0  ;;  %v6089_v50 = vld [vmem:[%s8350_s6 + $0x40] sm:$0xff]  }
 0xc65   :  { %v3419_v29 = vmax.f32 %v3411_v20, 0.0  ;;  %v3421_v25 = vmax.f32 %v3413_v26, 0.0  ;;  %v3423_v23 = vmax.f32 %v3415_v36, 0.0  ;;  %v3425_v58 = vmax.f32 %v3417_v39, 0.0  ;;  %v6091_v27 = vld [vmem:[%s8351_s7 + $0x5c] ss:$8 sps:$4 sm:$0xff]  }
 0xc66   :  { %v3426_v49 = vpack.c.bf16 %v3420_v51, %v3418_v35  ;;  %v3428_v33 = vpack.c.bf16 %v3424_v18, %v3422_v61 }
 0xc67   :  { %v3427_v22 = vpack.c.bf16 %v3421_v25, %v3419_v29  ;;  %v3429_v4 = vpack.c.bf16 %v3425_v58, %v3423_v23  ;;  %v6093_v29 = vld [vmem:[%s8351_s7 + $0x6c] ss:$8 sps:$4 sm:$0xff]   ;;  %v6094_v25 = vld [vmem:[%s8351_s7 + $0x68] ss:$8 sps:$4 sm:$0xff]   ;;  %v6095_v23 = vld [vmem:[%s8351_s7 + $0x7c] ss:$8 sps:$4 sm:$0xff]  }
 0xc68   :  { %v3431_v53 = vsel %vm944_vm1, %v3428_v33, 0  ;;  %v6097_v58 = vld [vmem:[%s8351_s7 + $0x8c] ss:$8 sps:$4 sm:$0xff]  }
 0xc69   :  { %3436 = vmatprep.subr.bf16.mxu0 %v3427_v22 }
 0xc6a   :  { %3437 = vmatpush1.bf16.msra.mxu0 %v3426_v49 }
 0xc6b   :  { %5282 = vmatprep.subr.msk.bf16.mxu0 %vm944_vm1, %v3429_v4 }
 0xc6e   :  { %3439 = vmatpush1.bf16.msra.mxu0 %v3431_v53 }
 0xc6f   :  { %3479 = vmatprep.subr.bf16.mxu0 %v3427_v22  ;;  %v6099_v22 = vld [vmem:[%s8351_s7 + $0x9c] ss:$8 sps:$4 sm:$0xff]  }
 0xc71   :  { %5283 = vmatmul.mubr.msk.bf16.vlgmr.msra.gmra.mrb[20].mxu0 %vm1367_vm10, %v6079_v38 }
 0xc72   :  { %3480 = vmatpush1.bf16.msra.mxu0 %v3426_v49  ;;  %3511 = vmatprep.mubr.bf16.mxu0 %v8400_v9 }
 0xc73   :  { %5284 = vmatprep.subr.msk.bf16.mxu0 %vm944_vm1, %v3429_v4  ;;  %vm8411_vm1 = vmmov %vm8410_vm0 }
 0xc76   :  { %3482 = vmatpush1.bf16.msra.mxu0 %v3431_v53 }
 0xc77   :  { %3531 = vmatprep.subr.bf16.mxu0 %v8400_v9 }
 0xc79   :  { %5285 = vmatmul.mubr.msk.bf16.vlgmr.msra.gmra.mrb[24].mxu0 %vm1367_vm10, %v6080_v12 }
 0xc7a   :  { %3532 = vmatpush1.bf16.msra.mxu0 %v6081_v41 }
 0xc7b   :  { %3533 = vmatprep.subr.bf16.mxu0 %v8400_v9 }
 0xc7e   :  { %3534 = vmatpush1.bf16.msra.mxu0 %v6082_v31 }
 0xc7f   :  { %3535 = vmatprep.subr.bf16.mxu0 %v8400_v9 }
 0xc82   :  { %3536 = vmatpush1.bf16.msra.mxu0 %v6083_v2  ;;  %v6102_v2 = vld [vmem:[%s8351_s7] ss:$8 sps:$4 sm:$0xff]  }
 0xc83   :  { %3537 = vmatprep.subr.bf16.mxu0 %v8400_v9 }
 0xc86   :  { %3538 = vmatpush1.bf16.msra.mxu0 %v6084_v44  ;;  %v6103_v44 = vld [vmem:[%s8351_s7 + $0x14] ss:$8 sps:$4 sm:$0xff]  }
 0xc87   :  { %3539 = vmatprep.subr.bf16.mxu0 %v8400_v9 }
 0xc8a   :  { %3540 = vmatpush1.bf16.msra.mxu0 %v6085_v47  ;;  %v6104_v47 = vld [vmem:[%s8351_s7 + $0x10] ss:$8 sps:$4 sm:$0xff]  }
 0xc8b   :  { %3541 = vmatprep.subr.bf16.mxu0 %v8400_v9 }
 0xc8e   :  { %3542 = vmatpush1.bf16.msra.mxu0 %v6086_v37  ;;  %v6105_v37 = vld [vmem:[%s8351_s7 + $0x24] ss:$8 sps:$4 sm:$0xff]  }
 0xc8f   :  { %3543 = vmatprep.subr.bf16.mxu0 %v8400_v9 }
 0xc92   :  { %3544 = vmatpush1.bf16.msra.mxu0 %v6087_v40  ;;  %v6106_v40 = vld [vmem:[%s8351_s7 + $0x20] ss:$8 sps:$4 sm:$0xff]  }
 0xc93   :  { %3545 = vmatprep.subr.bf16.mxu0 %v8400_v9 }
 0xc96   :  { %3546 = vmatpush1.bf16.msra.mxu0 %v6088_v1  ;;  %v6107_v1 = vld [vmem:[%s8351_s7 + $0x34] ss:$8 sps:$4 sm:$0xff]  }
 0xc97   :  { %3547 = vmatprep.subr.bf16.mxu0 %v8400_v9 }
 0xc9a   :  { %3548 = vmatpush1.bf16.msra.mxu0 %v6089_v50  ;;  %v6108_v50 = vld [vmem:[%s8351_s7 + $0x30] ss:$8 sps:$4 sm:$0xff]  }
 0xc9b   :  { %3549 = vmatprep.subr.bf16.mxu0 %v8400_v9 }
 0xc9e   :  { %3550 = vmatpush1.bf16.msra.mxu0 %v6090_v54  ;;  %v6109_v54 = vld [vmem:[%s8351_s7 + $0x44] ss:$8 sps:$4 sm:$0xff]  }
 0xc9f   :  { %3551 = vmatprep.subr.bf16.mxu0 %v8400_v9 }
 0xca2   :  { %3552 = vmatpush1.bf16.msra.mxu0 %v6786_v59  ;;  %v6092_v59 = vld [vmem:[%s8351_s7 + $0x58] ss:$8 sps:$4 sm:$0xff]  }
 0xca3   :  { %3626 = vmatprep.subr.bf16.mxu0 %v6091_v27  ;;  %v6110_v27 = vld [vmem:[%s8351_s7 + $0x40] ss:$8 sps:$4 sm:$0xff]  }
 0xd44   :  { %v3470_v52 = vpop.f32.mrb[20].mxu0 }
 0xd45   :  { %v3472_v5 = vpop.f32.mrb[21].mxu0 }
 0xd46   :  { %v3474_v57 = vpop.f32.mrb[22].mxu0 }
 0xd47   :  { %v3476_v63 = vpop.f32.mrb[23].mxu0 }
 0xd4c   :  { %v3513_v13 = vpop.f32.mrb[24].mxu0 }
 0xd4d   :  { %v3522_v55 = vmax.f32 %v3470_v52, %v3513_v13  ;;  %v3515_v36 = vpop.f32.mrb[25].mxu0  ;;  %v6111_v52 = vld [vmem:[%s8351_s7 + $0xb4] ss:$8 sps:$4 sm:$0xff]   ;;  %v6117_v13 = vld [vmem:[%s8351_s7 + $0xe4] ss:$8 sps:$4 sm:$0xff]  }
 0xd4e   :  { %v3523_v39 = vmax.f32 %v3472_v5, %v3515_v36  ;;  %v3517_v20 = vpop.f32.mrb[26].mxu0  ;;  %v6112_v5 = vld [vmem:[%s8351_s7 + $0xb0] ss:$8 sps:$4 sm:$0xff]   ;;  %v6119_v36 = vld [vmem:[%s8351_s7 + $0xf4] ss:$8 sps:$4 sm:$0xff]  }
 0xd4f   :  { %v3524_v26 = vmax.f32 %v3474_v57, %v3517_v20  ;;  %v3519_v35 = vpop.f32.mrb[27].mxu0  ;;  %v6115_v57 = vld [vmem:[%s8351_s7 + $0xd4] ss:$8 sps:$4 sm:$0xff]  }
 0xd50   :  { %v3525_v51 = vmax.f32 %v3476_v63, %v3519_v35  ;;  %v6116_v63 = vld [vmem:[%s8351_s7 + $0xd0] ss:$8 sps:$4 sm:$0xff]  }
 0xd51   :  { %v3526_v61 = vpack.c.bf16 %v3524_v26, %v3522_v55  ;;  %v6118_v55 = vld [vmem:[%s8351_s7 + $0xe0] ss:$8 sps:$4 sm:$0xff]   ;;  %v6121_v26 = vld [vmem:[%s8351_s7 + $0x10c] ss:$8 sps:$4 sm:$0xff]  }
 0xd52   :  { %v3527_v18 = vpack.c.bf16 %v3525_v51, %v3523_v39  ;;  %v6120_v39 = vld [vmem:[%s8351_s7 + $0xf0] ss:$8 sps:$4 sm:$0xff]   ;;  %v6125_v51 = vld [vmem:[%s8351_s7 + $0x12c] ss:$8 sps:$4 sm:$0xff]  }
 0xd53   :  { %v6122_v35 = vld [vmem:[%s8351_s7 + $0x108] ss:$8 sps:$4 sm:$0xff]  }
 0xd54   :  { %5286 = vmatprep.mubr.msk.bf16.mxu0 %vm1105_vm5, %v3527_v18  ;;  %5287 = vmatprep.mubr.msk.bf16.mxu1 %vm1105_vm5, %v3527_v18  ;;  %v6127_v18 = vld [vmem:[%s8351_s7 + $0x13c] ss:$8 sps:$4 sm:$0xff]   ;;  %vm4733_vm5 = vcmask 982016  }
 0xd55   :  { %3564 = vmatmul.mubr.bf16.vlgmr.msra.gmra.mrb[28].mxu0 %v3526_v61  ;;  %3605 = vmatmul.mubr.bf16.vlgmr.msra.gmra.mrb[44].mxu1 %v3526_v61  ;;  %v6126_v61 = vld [vmem:[%s8351_s7 + $0x128] ss:$8 sps:$4 sm:$0xff]  }
 0xd56   :  { %3627 = vmatpush1.bf16.msra.mxu0 %v6092_v59  ;;  %3658 = vmatprep.mubr.bf16.mxu0 %v8400_v9  ;;  %v6128_v59 = vld [vmem:[%s8351_s7 + $0x138] ss:$8 sps:$4 sm:$0xff]  }
 0xd57   :  { %3628 = vmatprep.subr.bf16.mxu0 %v6093_v29  ;;  %5603 = vmatpush1.bf16.msra.mxu1 %v6893_v3  ;;  %v6096_v3 = vld [vmem:[%s8351_s7 + $0x78] ss:$8 sps:$4 sm:$0xff]   ;;  %v6129_v29 = vld [vmem:[%s8351_s7 + $0x14c] ss:$8 sps:$4 sm:$0xff]  }
 0xd58   :  { %5604 = vmatprep.subr.bf16.mxu1 %v8402_v45 }
 0xd5a   :  { %3629 = vmatpush1.bf16.msra.mxu0 %v6094_v25  ;;  %v6130_v25 = vld [vmem:[%s8351_s7 + $0x148] ss:$8 sps:$4 sm:$0xff]  }
 0xd5b   :  { %3630 = vmatprep.subr.bf16.mxu0 %v6095_v23  ;;  %5606 = vmatpush1.bf16.msra.mxu1 %v6899_v8  ;;  %v6098_v8 = vld [vmem:[%s8351_s7 + $0x88] ss:$8 sps:$4 sm:$0xff]  }
 0xd5c   :  { %5607 = vmatprep.subr.bf16.mxu1 %v8402_v45  ;;  %v8404_v23 = vld [vmem:[#allocation5_spill] sm:$0xff] }
 0xd5e   :  { %3631 = vmatpush1.bf16.msra.mxu0 %v6096_v3  ;;  %v6131_v3 = vld [vmem:[%s8351_s7 + $0x164] ss:$8 sps:$4 sm:$0xff]  }
 0xd5f   :  { %3632 = vmatprep.subr.bf16.mxu0 %v6097_v58  ;;  %5609 = vmatpush1.bf16.msra.mxu1 %v6909_v14  ;;  %v6100_v14 = vld [vmem:[%s8351_s7 + $0x98] ss:$8 sps:$4 sm:$0xff]  }
 0xd60   :  { %5610 = vmatprep.subr.bf16.mxu1 %v8402_v45  ;;  %v6132_v58 = vld [vmem:[%s8351_s7 + $0x160] ss:$8 sps:$4 sm:$0xff]  }
 0xd62   :  { %3633 = vmatpush1.bf16.msra.mxu0 %v6098_v8  ;;  %v6134_v8 = vld [vmem:[%s8351_s7 + $0x170] ss:$8 sps:$4 sm:$0xff]  }
 0xd63   :  { %3634 = vmatprep.subr.bf16.mxu0 %v6099_v22  ;;  %5612 = vmatpush1.bf16.msra.mxu1 %v6919_v17  ;;  %v6101_v17 = vld [vmem:[%s8351_s7 + $0x4] ss:$8 sps:$4 sm:$0xff]  }
 0xd64   :  { %5613 = vmatprep.subr.bf16.mxu1 %v8402_v45  ;;  %v6135_v22 = vld [vmem:[%s8351_s7 + $0x184] ss:$8 sps:$4 sm:$0xff]  }
 0xd66   :  { %3635 = vmatpush1.bf16.msra.mxu0 %v6100_v14  ;;  %v6136_v14 = vld [vmem:[%s8351_s7 + $0x180] ss:$8 sps:$4 sm:$0xff]  }
 0xd67   :  { %5288 = vmatprep.subr.msk.bf16.mxu0 %vm1763_vm11, %v6873_v43  ;;  %5615 = vmatpush1.bf16.msra.mxu1 %v7117_v15 }
 0xd68   :  { %5616 = vmatprep.subr.bf16.mxu1 %v8402_v45 }
 0xd6a   :  { %3637 = vmatpush1.bf16.msra.mxu0 %v6878_v46 }
 0xd6b   :  { %3671 = vmatprep.subr.bf16.mxu0 %v6101_v17  ;;  %5618 = vmatpush1.bf16.msra.mxu1 %v7127_v21  ;;  %v6137_v17 = vld [vmem:[%s8351_s7 + $0x194] ss:$8 sps:$4 sm:$0xff]  }
 0xd6c   :  { %5619 = vmatprep.subr.bf16.mxu1 %v8402_v45 }
 0xd6f   :  { %5621 = vmatpush1.bf16.msra.mxu1 %v7137_v24 }
 0xd70   :  { %5622 = vmatprep.subr.bf16.mxu1 %v8402_v45 }
 0xd73   :  { %5624 = vmatpush1.bf16.msra.mxu1 %v7147_v28 }
 0xd74   :  { %5625 = vmatprep.subr.bf16.mxu1 %v8402_v45 }
 0xd77   :  { %5627 = vmatpush1.bf16.msra.mxu1 %v7156_v32 }
 0xd78   :  { %5628 = vmatprep.subr.bf16.mxu1 %v8402_v45 }
 0xd7b   :  { %5630 = vmatpush1.bf16.msra.mxu1 %v7166_v11 }
 0xd7c   :  { %5632 = vmatprep.subr.bf16.mxu1 %v7219_v0 }
 0xe28   :  { %v3565_v43 = vpop.f32.mrb[28].mxu0  ;;  %v3606_v46 = vpop.f32.mrb[44].mxu1 }
 0xe29   :  { %v3613_v15 = vmax.f32 %v3565_v43, %v3606_v46  ;;  %v3567_v21 = vpop.f32.mrb[29].mxu0  ;;  %v3608_v49 = vpop.f32.mrb[45].mxu1  ;;  %v6138_v43 = vld [vmem:[%s8351_s7 + $0x190] ss:$8 sps:$4 sm:$0xff]   ;;  %v6139_v46 = vld [vmem:[%s8351_s7 + $0x1a4] ss:$8 sps:$4 sm:$0xff]  }
 0xe2a   :  { %v3568_v24 = vpop.f32.mrb[30].mxu0  ;;  %v3609_v4 = vpop.f32.mrb[46].mxu1  ;;  %v8405_v21 = vld [vmem:[#allocation6_spill] sm:$0xff]  ;;  %v8406_v49 = vld [vmem:[#allocation7_spill] sm:$0xff] }
 0xe2b   :  { %v3614_v33 = vmax.f32 %v3568_v24, %v3609_v4  ;;  %v3570_v53 = vpop.f32.mrb[31].mxu0  ;;  %v3611_v28 = vpop.f32.mrb[47].mxu1  ;;  %v6141_v4 = vld [vmem:[%s8356_s12 + $0x50] sm:$0xff]  }
 0xe2c   :  { %v6143_v53 = vld [vmem:[%s8356_s12 + $0x60] sm:$0xff]   ;;  %v6144_v28 = vld [vmem:[%s8356_s12 + $0x68] sm:$0xff]  }
 0xe2d   :  { %v7849_v38 = vpack.c.bf16 %v3614_v33, %v3613_v15  ;;  %v6140_v15 = vld [vmem:[%s8351_s7 + $0x1a0] ss:$8 sps:$4 sm:$0xff]   ;;  %v6142_v33 = vld [vmem:[%s8356_s12 + $0x58] sm:$0xff]  }
 0xe2f   :  { %v3619_v32 = vshll.u32 %v7849_v38, 16  ;;  %v3617_v45 = vshrl.u32 %v7849_v38, 16  ;;  %v3715_v20 = vrot.slane %v7849_v38, 1  ;;  %v3819_v24 = vrot.slane %v7849_v38, 2 }
 0xe31   :  { %v3621_v12 = vrot.slane %v3619_v32, 1  ;;  %v7853_v11 = vrot.slane %v3617_v45, 1  ;;  %v7855_v0 = vrot.slane %v3619_v32, 2  ;;  %v6146_v32 = vld [vmem:[%s8356_s12 + $0x78] sm:$0xff]  }
 0xe33   :  { %v3622_v41 = vor.u32 %v3621_v12, %v3617_v45  ;;  %v3768_v31 = vor.u32 %v7855_v0, %v7853_v11  ;;  %v8407_v45 = vld [vmem:[#allocation11_spill] sm:$0xff]  ;;  %v8408_v11 = vld [vmem:[#allocation8_spill] sm:$0xff] }
 0xe35   :  { %5289 = vmatmul.mubr.msk.bf16.vlgmr.msra.gmra.mrb[32].mxu0 %vm1759_vm12, %v3622_v41 }
 0xe36   :  { %3672 = vmatpush1.bf16.msra.mxu0 %v6102_v2  ;;  %3703 = vmatprep.mubr.bf16.mxu0 %v8400_v9 }
 0xe37   :  { %3673 = vmatprep.subr.bf16.mxu0 %v6103_v44 }
 0xe3a   :  { %3674 = vmatpush1.bf16.msra.mxu0 %v6104_v47 }
 0xe3b   :  { %3675 = vmatprep.subr.bf16.mxu0 %v6105_v37 }
 0xe3e   :  { %3676 = vmatpush1.bf16.msra.mxu0 %v6106_v40 }
 0xe3f   :  { %3677 = vmatprep.subr.bf16.mxu0 %v6107_v1 }
 0xe42   :  { %3678 = vmatpush1.bf16.msra.mxu0 %v6108_v50 }
 0xe43   :  { %3679 = vmatprep.subr.bf16.mxu0 %v6109_v54 }
 0xe46   :  { %3680 = vmatpush1.bf16.msra.mxu0 %v6110_v27 }
 0xe47   :  { %5290 = vmatprep.subr.msk.bf16.mxu0 %vm1763_vm11, %v6966_v42  ;;  %v6113_v42 = vld [vmem:[%s8351_s7 + $0xc4] ss:$8 sps:$4 sm:$0xff]  }
 0xe4a   :  { %3682 = vmatpush1.bf16.msra.mxu0 %v6971_v48  ;;  %v6114_v48 = vld [vmem:[%s8351_s7 + $0xc0] ss:$8 sps:$4 sm:$0xff]  }
 0xe4b   :  { %3719 = vmatprep.subr.bf16.mxu0 %v6111_v52 }
 0xe4d   :  { %5291 = vmatmul.mubr.msk.bf16.vlgmr.msra.gmra.mrb[32].mxu0 %vm1759_vm12, %v7849_v38  ;;  %v6145_v38 = vld [vmem:[%s8356_s12 + $0x70] sm:$0xff]  }
 0xe4e   :  { %3720 = vmatpush1.bf16.msra.mxu0 %v6112_v5  ;;  %3751 = vmatprep.mubr.bf16.mxu0 %v8400_v9 }
 0xe4f   :  { %3721 = vmatprep.subr.bf16.mxu0 %v6113_v42 }
 0xe52   :  { %3722 = vmatpush1.bf16.msra.mxu0 %v6114_v48 }
 0xe53   :  { %3723 = vmatprep.subr.bf16.mxu0 %v6115_v57 }
 0xe56   :  { %3724 = vmatpush1.bf16.msra.mxu0 %v6116_v63 }
 0xe57   :  { %3725 = vmatprep.subr.bf16.mxu0 %v6117_v13 }
 0xe5a   :  { %3726 = vmatpush1.bf16.msra.mxu0 %v6118_v55 }
 0xe5b   :  { %3727 = vmatprep.subr.bf16.mxu0 %v6119_v36 }
 0xe5e   :  { %3728 = vmatpush1.bf16.msra.mxu0 %v6120_v39 }
 0xe5f   :  { %5292 = vmatprep.subr.msk.bf16.mxu0 %vm1763_vm11, %v7010_v16  ;;  %v6123_v16 = vld [vmem:[%s8351_s7 + $0x11c] ss:$8 sps:$4 sm:$0xff]  }
 0xe62   :  { %3730 = vmatpush1.bf16.msra.mxu0 %v7015_v19  ;;  %v6124_v19 = vld [vmem:[%s8351_s7 + $0x118] ss:$8 sps:$4 sm:$0xff]  }
 0xe63   :  { %3772 = vmatprep.subr.bf16.mxu0 %v6121_v26 }
 0xe65   :  { %5293 = vmatmul.mubr.msk.bf16.vlgmr.msra.gmra.mrb[32].mxu0 %vm1759_vm12, %v3715_v20 }
 0xe66   :  { %3773 = vmatpush1.bf16.msra.mxu0 %v6122_v35  ;;  %3804 = vmatprep.mubr.bf16.mxu0 %v8400_v9 }
 0xe67   :  { %3774 = vmatprep.subr.bf16.mxu0 %v6123_v16 }
 0xe6a   :  { %3775 = vmatpush1.bf16.msra.mxu0 %v6124_v19 }
 0xe6b   :  { %3776 = vmatprep.subr.bf16.mxu0 %v6125_v51 }
 0xe6e   :  { %3777 = vmatpush1.bf16.msra.mxu0 %v6126_v61 }
 0xe6f   :  { %3778 = vmatprep.subr.bf16.mxu0 %v6127_v18 }
 0xe72   :  { %3779 = vmatpush1.bf16.msra.mxu0 %v6128_v59 }
 0xe73   :  { %3780 = vmatprep.subr.bf16.mxu0 %v6129_v29 }
 0xe76   :  { %3781 = vmatpush1.bf16.msra.mxu0 %v6130_v25 }
 0xe77   :  { %5294 = vmatprep.subr.msk.bf16.mxu0 %vm1763_vm11, %v7054_v10  ;;  %v6133_v10 = vld [vmem:[%s8351_s7 + $0x174] ss:$8 sps:$4 sm:$0xff]  }
 0xe7a   :  { %3783 = vmatpush1.bf16.msra.mxu0 %v8404_v23 }
 0xe7b   :  { %3823 = vmatprep.subr.bf16.mxu0 %v6131_v3 }
 0xe7d   :  { %5295 = vmatmul.mubr.msk.bf16.vlgmr.msra.gmra.mrb[32].mxu0 %vm1759_vm12, %v3768_v31 }
 0xe7e   :  { %3824 = vmatpush1.bf16.msra.mxu0 %v6132_v58  ;;  %3855 = vmatprep.mubr.bf16.mxu0 %v8400_v9 }
 0xe7f   :  { %3825 = vmatprep.subr.bf16.mxu0 %v6133_v10 }
 0xe82   :  { %3826 = vmatpush1.bf16.msra.mxu0 %v6134_v8 }
 0xe83   :  { %3827 = vmatprep.subr.bf16.mxu0 %v6135_v22 }
 0xe86   :  { %3828 = vmatpush1.bf16.msra.mxu0 %v6136_v14 }
 0xe87   :  { %3829 = vmatprep.subr.bf16.mxu0 %v6137_v17 }
 0xe8a   :  { %3830 = vmatpush1.bf16.msra.mxu0 %v6138_v43 }
 0xe8b   :  { %3831 = vmatprep.subr.bf16.mxu0 %v6139_v46 }
 0xe8e   :  { %3832 = vmatpush1.bf16.msra.mxu0 %v6140_v15 }
 0xe8f   :  { %5296 = vmatprep.subr.msk.bf16.mxu0 %vm1763_vm11, %v8405_v21 }
 0xe92   :  { %3834 = vmatpush1.bf16.msra.mxu0 %v8406_v49  ;;  %v8412_v49 = vld [vmem:[#allocation10_spill] sm:$0xff] }
 0xe93   :  { %4235 = vmatprep.subr.bf16.mxu0 %v8400_v9 }
 0xe95   :  { %5297 = vmatmul.mubr.msk.bf16.vlgmr.msra.gmra.mrb[32].mxu0 %vm1759_vm12, %v3819_v24 }
 0xe96   :  { %4236 = vmatpush1.bf16.msra.mxu0 %v6141_v4 }
 0xe97   :  { %4237 = vmatprep.subr.bf16.mxu0 %v8400_v9 }
 0xe9a   :  { %4238 = vmatpush1.bf16.msra.mxu0 %v6142_v33 }
 0xe9b   :  { %4239 = vmatprep.subr.bf16.mxu0 %v8400_v9 }
 0xe9e   :  { %4240 = vmatpush1.bf16.msra.mxu0 %v6143_v53 }
 0xe9f   :  { %4241 = vmatprep.subr.bf16.mxu0 %v8400_v9 }
 0xea2   :  { %4242 = vmatpush1.bf16.msra.mxu0 %v6144_v28 }
 0xea3   :  { %4243 = vmatprep.subr.bf16.mxu0 %v8400_v9 }
 0xea6   :  { %4244 = vmatpush1.bf16.msra.mxu0 %v6145_v38 }
 0xea7   :  { %4245 = vmatprep.subr.bf16.mxu0 %v8400_v9 }
 0xeaa   :  { %4246 = vmatpush1.bf16.msra.mxu0 %v6146_v32 }
 0xeab   :  { %4247 = vmatprep.subr.bf16.mxu0 %v8400_v9 }
 0xeae   :  { %4248 = vmatpush1.bf16.msra.mxu0 %v7310_v34  ;;  %v8409_v34 = vld [vmem:[#allocation9_spill] sm:$0xff] }
 0xeaf   :  { %4249 = vmatprep.subr.bf16.mxu0 %v8400_v9 }
 0xeb2   :  { %4250 = vmatpush1.bf16.msra.mxu0 %v7320_v56 }
 0xeb3   :  { %4251 = vmatprep.subr.bf16.mxu0 %v8400_v9 }
 0xeb6   :  { %4252 = vmatpush1.bf16.msra.mxu0 %v7331_v30 }
 0xeb7   :  { %4253 = vmatprep.subr.bf16.mxu0 %v8400_v9 }
 0xeba   :  { %4254 = vmatpush1.bf16.msra.mxu0 %v8407_v45 }
 0xebb   :  { %5429 = vmatprep.subr.bf16.mxu0 %v8398_v6 }
 0xf68   :  { %v3857_v12 = vpop.f32.mrb[32].mxu0 }
 0xf69   :  { %v8037_v0 = vadd.f32 %v3857_v12, %v8408_v11  ;;  %v3859_v41 = vpop.f32.mrb[33].mxu0 }
 0xf6a   :  { %v8040_v31 = vadd.f32 %v3859_v41, %v8409_v34  ;;  %v3861_v2 = vpop.f32.mrb[34].mxu0 }
 0xf6b   :  { %v8043_v56 = vadd.f32 %v3861_v2, %v8408_v11  ;;  %v3863_v44 = vpop.f32.mrb[35].mxu0  ;;  %v3891_v37 = vmul.f32 %v8037_v0, %v8037_v0 }
 0xf6c   :  { %v3892_v30 = vmul.f32 %v8040_v31, %v8040_v31  ;;  %v8048_v47 = vadd.f32 %v3863_v44, %v8409_v34  ;;  %v3882_v50 = vsel %vm2281_vm13, %v8040_v31, 0.0 }
 0xf6d   :  { %v3874_v40 = vsel %vm1763_vm11, %v8043_v56, 0.0  ;;  %v3893_v1 = vmul.f32 %v8043_v56, %v8043_v56 }
 0xf6e   :  { %v3875_v54 = vadd.f32 %v3874_v40, %v8037_v0  ;;  %v3883_v27 = vsel %vm8410_vm0, %v8048_v47, 0.0  ;;  %v3894_v52 = vmul.f32 %v8048_v47, %v8048_v47  ;;  %v3903_v48 = vsel %vm2281_vm13, %v3892_v30, 0.0 }
 0xf6f   :  { %v3895_v5 = vsel %vm1763_vm11, %v3893_v1, 0.0  ;;  %v3884_v42 = vadd.f32 %v3883_v27, %v3882_v50 }
 0xf70   :  { %v3876_v57 = vrot.slane %v3875_v54, 4  ;;  %v3896_v63 = vadd.f32 %v3895_v5, %v3891_v37  ;;  %v3904_v13 = vsel %vm8411_vm1, %v3894_v52, 0.0 }
 0xf71   :  { %v3885_v55 = vrot.slane %v3884_v42, 4  ;;  %v3905_v36 = vadd.f32 %v3904_v13, %v3903_v48  ;;  %v6150_v13 = vld [vmem:[%s8356_s12 + $0x8] sm:$0xff]  }
 0xf72   :  { %v3877_v39 = vadd.f32 %v3876_v57, %v3875_v54  ;;  %v3897_v20 = vrot.slane %v3896_v63, 4 }
 0xf73   :  { %v3886_v26 = vadd.f32 %v3885_v55, %v3884_v42  ;;  %v3906_v35 = vrot.slane %v3905_v36, 4  ;;  %v6151_v55 = vld [vmem:[%s8356_s12 + $0x10] sm:$0xff]  }
 0xf74   :  { %v3878_v16 = vrot.slane %v3877_v39, 2  ;;  %v3898_v19 = vadd.f32 %v3897_v20, %v3896_v63  ;;  %v6154_v20 = vld [vmem:[%s8356_s12 + $0x28] sm:$0xff]  }
 0xf75   :  { %v3887_v51 = vrot.slane %v3886_v26, 2  ;;  %v3907_v61 = vadd.f32 %v3906_v35, %v3905_v36  ;;  %v6152_v36 = vld [vmem:[%s8356_s12 + $0x18] sm:$0xff]  }
 0xf76   :  { %v3879_v18 = vadd.f32 %v3878_v16, %v3877_v39  ;;  %v3899_v59 = vrot.slane %v3898_v19, 2  ;;  %v6153_v39 = vld [vmem:[%s8356_s12 + $0x20] sm:$0xff]   ;;  %v6156_v35 = vld [vmem:[%s8356_s12 + $0x38] sm:$0xff]  }
 0xf77   :  { %v3888_v29 = vadd.f32 %v3887_v51, %v3886_v26  ;;  %v3908_v25 = vrot.slane %v3907_v61, 2  ;;  %v6155_v26 = vld [vmem:[%s8356_s12 + $0x30] sm:$0xff]   ;;  %v6157_v16 = vld [vmem:[%s8356_s12 + $0x40] sm:$0xff]  }
 0xf78   :  { %v3900_v23 = vadd.f32 %v3899_v59, %v3898_v19  ;;  %v3880_v10 = vrot.slane %v3879_v18, 1  ;;  %v6158_v19 = vld [vmem:[%s8356_s12 + $0x48] sm:$0xff]  }
 0xf79   :  { %v3889_v3 = vrot.slane %v3888_v29, 1  ;;  %v3909_v58 = vadd.f32 %v3908_v25, %v3907_v61 }
 0xf7a   :  { %v3901_v8 = vrot.slane %v3900_v23, 1  ;;  %v3881_v46 = vadd.f32 %v3880_v10, %v3879_v18 }
 0xf7b   :  { %v3910_v22 = vrot.slane %v3909_v58, 1  ;;  %v3890_v17 = vadd.f32 %v3889_v3, %v3888_v29 }
 0xf7c   :  { %v3902_v14 = vadd.f32 %v3901_v8, %v3900_v23 }
 0xf7d   :  { %v3911_v43 = vadd.f32 %v3910_v22, %v3909_v58  ;;  %v5960_v22 = vld [vmem:[%s8357_s13 + $0x50] sm:$0xff]  }
 0xf7e   :  { %v3912_v21 = vsel %vm1151_vm8, %v3881_v46, %v3902_v14  ;;  %v5963_v46 = vld [vmem:[%s8357_s13 + $0x38] sm:$0xff]  }
 0xf7f   :  { %v3913_v15 = vsel %vm1151_vm8, %v3890_v17, %v3911_v43  ;;  %v5961_v17 = vld [vmem:[%s8357_s13 + $0x30] sm:$0xff]   ;;  %v5962_v43 = vld [vmem:[%s8357_s13 + $0x58] sm:$0xff]  }
 0xf80   :  { %5298 = vmatprep.mubr.msk.f32.mxu1 %vm2281_vm13, %v3913_v15  ;;  %v5964_v15 = vld [vmem:[%s8357_s13 + $0x60] sm:$0xff]  }
 0xf81   :  { %3982 = vmatmul.mubr.f32.vlgmr.msra.gmra.mrb[48].mxu1 %v3912_v21  ;;  %v5965_v21 = vld [vmem:[%s8357_s13 + $0x40] sm:$0xff]  }
 0xf82   :  { %5634 = vmatpush1.bf16.msra.mxu1 %v8412_v49  ;;  %4063 = vmatprep.mubr.f32.mxu1 %v8398_v6  ;;  %v5966_v49 = vld [vmem:[%s8357_s13 + $0x68] sm:$0xff]  }
0x1054   :  { %v3983_v24 = vpop.f32.mrb[48].mxu1 }
0x1055   :  { %v3987_v4 = vmul.f32 0.01, %v3983_v24  ;;  %v3985_v33 = vpop.f32.mrb[49].mxu1  ;;  %v5967_v24 = vld [vmem:[%s8357_s13 + $0x48] sm:$0xff]  }
0x1057   :  { %v3988_v53 = vmul.f32 %v3987_v4, %v3987_v4 }
0x1059   :  { %v3990_v28 = vrot.slane %v3988_v53, 7 }
0x105b   :  { %v3992_v38 = vsub.f32 %v3987_v4, %v3990_v28 }
0x105d   :  { %v3993_v32 = vadd.f32 1e-05, %v3992_v38 }
0x105f   :  { %6004 = vrsqrt.f32 %v3993_v32 }
0x1069   :  { %v6005_v45 = vpop.eup %6004 }
0x106a   :  { %v3995_v12 = vsel %vm1151_vm8, %v3987_v4, %v6005_v45  ;;  %v5968_v4 = vld [vmem:[%s8357_s13 + $0x70] sm:$0xff]   ;;  %v4282_v45 = vrot.slane %v7653_v7, 1 }
0x106b   :  { %5299 = vmatmul.mubr.msk.f32.vlgmr.msra.gmra.mrb[50].mxu1 %vm8413_vm2, %v3995_v12  ;;  %v4433_v12 = vrot.slane %v7653_v7, 2 }
0x106c   :  { %4138 = vmatprep.mubr.bf16.mxu1 %v8400_v9 }
0x113e   :  { %v4065_v11 = vpop.f32.mrb[50].mxu1 }
0x113f   :  { %v4073_v41 = vrot.slane %v4065_v11, %v6636_v62  ;;  %v4067_v34 = vpop.f32.mrb[51].mxu1  ;;  %v4085_v37 = vrot.slane %v4065_v11, %v6631_v60  ;;  %v4593_v11 = vrot.slane %v7653_v7, 4 }
0x1140   :  { %v4077_v2 = vrot.slane %v4067_v34, %v6636_v62  ;;  %v4089_v50 = vrot.slane %v4067_v34, %v6631_v60  ;;  %v6147_v60 = vld [vmem:[%s8355_s11] sm:$0x7] }
0x1141   :  { %v4078_v44 = vsub.f32 %v8037_v0, %v4073_v41  ;;  %v4080_v30 = vsub.f32 %v8043_v56, %v4073_v41 }
0x1142   :  { %v4079_v40 = vsub.f32 %v8040_v31, %v4077_v2  ;;  %v4081_v1 = vsub.f32 %v8048_v47, %v4077_v2  ;;  %v6148_v31 = vld [vmem:[%s8355_s11 + $0x4] sm:$0x7] }
0x1143   :  { %v4090_v54 = vmul.f32 %v4085_v37, %v4078_v44  ;;  %v4092_v27 = vmul.f32 %v4085_v37, %v4080_v30  ;;  %v6149_v47 = vld [vmem:[%s8356_s12] sm:$0xff]  }
0x1144   :  { %v4091_v52 = vmul.f32 %v4089_v50, %v4079_v40  ;;  %v4093_v5 = vmul.f32 %v4089_v50, %v4081_v1  ;;  %v4513_v50 = vrot.slane %v7653_v7, 3 }
0x1145   :  { %v4094_v42 = vmax.f32 %v4090_v54, 0.0  ;;  %v4096_v48 = vmax.f32 %v4092_v27, 0.0  ;;  %v5969_v27 = vld [vmem:[%s8357_s13] sm:$0xff]  }
0x1146   :  { %v4095_v57 = vmax.f32 %v4091_v52, 0.0  ;;  %v4097_v62 = vmax.f32 %v4093_v5, 0.0 }
0x1147   :  { %v4098_v63 = vpack.c.bf16 %v4096_v48, %v4094_v42  ;;  %v5970_v42 = vld [vmem:[%s8357_s13 + $0xa0] sm:$0xff]  }
0x1148   :  { %v4099_v0 = vpack.c.bf16 %v4097_v62, %v4095_v57 }
0x1149   :  { %v4101_v56 = vsel %vm2506_vm15, %v4098_v63, 0 }
0x114a   :  { %5300 = vmatprep.subr.msk.bf16.mxu1 %vm2506_vm15, %v4099_v0 }
0x114b   :  { %4107 = vmatpush1.bf16.msra.mxu1 %v4101_v56 }
0x114c   :  { %5302 = vmatprep.subr.msk.bf16.mxu1 %vm2506_vm15, %v4099_v0  ;;  %v5971_v0 = vld [vmem:[%s8357_s13 + $0x8] sm:$0xff]  }
0x114e   :  { %5301 = vmatmul.mubr.msk.bf16.vlgmr.msra.gmra.mrb[52].mxu1 %vm2502_vm14, %v6147_v60  ;;  %v5974_v60 = vld [vmem:[%s8357_s13 + $0xb0] sm:$0xff]  }
0x114f   :  { %4148 = vmatpush1.bf16.msra.mxu1 %v4101_v56  ;;  %4179 = vmatprep.mubr.bf16.mxu1 %v8400_v9  ;;  %v5973_v56 = vld [vmem:[%s8357_s13 + $0x10] sm:$0xff]  }
0x1150   :  { %4195 = vmatprep.subr.bf16.mxu1 %v8400_v9 }
0x1156   :  { %5303 = vmatmul.mubr.msk.bf16.vlgmr.msra.gmra.mrb[56].mxu1 %vm2502_vm14, %v6148_v31  ;;  %v5975_v31 = vld [vmem:[%s8357_s13 + $0x18] sm:$0xff]  }
0x1157   :  { %4196 = vmatpush1.bf16.msra.mxu1 %v6149_v47  ;;  %v5976_v47 = vld [vmem:[%s8357_s13 + $0xb8] sm:$0xff]  }
0x1158   :  { %4197 = vmatprep.subr.bf16.mxu1 %v8400_v9 }
0x115b   :  { %4198 = vmatpush1.bf16.msra.mxu1 %v6150_v13  ;;  %v5977_v13 = vld [vmem:[%s8357_s13 + $0x20] sm:$0xff]  }
0x115c   :  { %4199 = vmatprep.subr.bf16.mxu1 %v8400_v9 }
0x115f   :  { %4200 = vmatpush1.bf16.msra.mxu1 %v6151_v55  ;;  %v5978_v55 = vld [vmem:[%s8357_s13 + $0xc0] sm:$0xff]  }
0x1160   :  { %4201 = vmatprep.subr.bf16.mxu1 %v8400_v9 }
0x1163   :  { %4202 = vmatpush1.bf16.msra.mxu1 %v6152_v36  ;;  %v5979_v36 = vld [vmem:[%s8357_s13 + $0x78] sm:$0xff]  }
0x1164   :  { %4203 = vmatprep.subr.bf16.mxu1 %v8400_v9 }
0x1167   :  { %4204 = vmatpush1.bf16.msra.mxu1 %v6153_v39 }
0x1168   :  { %4205 = vmatprep.subr.bf16.mxu1 %v8400_v9 }
0x116b   :  { %4206 = vmatpush1.bf16.msra.mxu1 %v6154_v20 }
0x116c   :  { %4207 = vmatprep.subr.bf16.mxu1 %v8400_v9 }
0x116f   :  { %4208 = vmatpush1.bf16.msra.mxu1 %v6155_v26  ;;  %v5980_v26 = vld [vmem:[%s8357_s13 + $0x80] sm:$0xff]  }
0x1170   :  { %4209 = vmatprep.subr.bf16.mxu1 %v8400_v9 }
0x1173   :  { %4210 = vmatpush1.bf16.msra.mxu1 %v6156_v35  ;;  %v5981_v35 = vld [vmem:[%s8357_s13 + $0x88] sm:$0xff]  }
0x1174   :  { %4211 = vmatprep.subr.bf16.mxu1 %v8400_v9 }
0x1177   :  { %4212 = vmatpush1.bf16.msra.mxu1 %v6157_v16  ;;  %v5982_v16 = vld [vmem:[%s8357_s13 + $0x90] sm:$0xff]  }
0x1178   :  { %4213 = vmatprep.subr.bf16.mxu1 %v8400_v9  ;;  %v5959_v9 = vld [vmem:[%s8357_s13 + $0x28] sm:$0xff]  }
0x117b   :  { %4214 = vmatpush1.bf16.msra.mxu1 %v6158_v19  ;;  %v5983_v19 = vld [vmem:[%s8357_s13 + $0x98] sm:$0xff]  }
0x117c   :  { %5401 = vmatprep.subr.bf16.mxu1 %v8398_v6 }
0x1221   :  { %v4140_v51 = vpop.f32.mrb[52].mxu1 }
0x1222   :  { %v4142_v61 = vpop.f32.mrb[53].mxu1 }
0x1223   :  { %v4144_v18 = vpop.f32.mrb[54].mxu1 }
0x1224   :  { %v4145_v59 = vpop.f32.mrb[55].mxu1  ;;  %v5985_v18 = vld [vmem:[%s8359_s15 + $0x8] sm:$0xff]  }
0x1225   :  { %v5986_v59 = vld [vmem:[%s8359_s15 + $0x10] sm:$0xff]  }
0x1229   :  { %v4181_v29 = vpop.f32.mrb[56].mxu1 }
0x122a   :  { %v4188_v25 = vmax.f32 %v4140_v51, %v4181_v29  ;;  %v4183_v23 = vpop.f32.mrb[57].mxu1  ;;  %v5987_v29 = vld [vmem:[%s8359_s15 + $0x18] sm:$0xff]  }
0x122b   :  { %v4189_v3 = vmax.f32 %v4142_v61, %v4183_v23  ;;  %v4185_v58 = vpop.f32.mrb[58].mxu1  ;;  %v5984_v61 = vld [vmem:[%s8359_s15] sm:$0xff]   ;;  %v5989_v23 = vld [vmem:[%s8359_s15 + $0x28] sm:$0xff]  }
0x122c   :  { %v4186_v10 = vpop.f32.mrb[59].mxu1  ;;  %v4190_v14 = vpack.c.bf16 %v4188_v25, %v4188_v25  ;;  %v5988_v25 = vld [vmem:[%s8359_s15 + $0x20] sm:$0xff]   ;;  %v5991_v58 = vld [vmem:[%s8359_s15 + $0x38] ss:$0 sps:$4 sm:$0xff]  }
0x122d   :  { %v4191_v8 = vpack.c.bf16 %v4189_v3, %v4189_v3  ;;  %v5990_v3 = vld [vmem:[%s8359_s15 + $0x30] sm:$0xff]   ;;  %v4738_v10 = vsel %vm1096_vm6, %v5991_v58, 0 }
0x122f   :  { %5304 = vmatprep.mubr.msk.bf16.mxu1 %vm2281_vm13, %v4191_v8  ;;  %5305 = vmatprep.mubr.msk.bf16.mxu0 %vm2281_vm13, %v4191_v8  ;;  %v5992_v8 = vld [vmem:[%s8361_s17] sm:$0xff]  }
0x1230   :  { %4228 = vmatmul.mubr.bf16.vlgmr.msra.gmra.mrb[60].mxu1 %v4190_v14  ;;  %4268 = vmatmul.mubr.bf16.vlgmr.msra.gmra.mrb[36].mxu0 %v4190_v14  ;;  %v5995_v14 = vld [vmem:[%s8361_s17 + $0x18] sm:$0xff]  }
0x1231   :  { %5402 = vmatpush3.bf16.msra.mxu1 %v5959_v9  ;;  %5430 = vmatpush3.bf16.msra.mxu0 %v5960_v22  ;;  %v5993_v9 = vld [vmem:[%s8361_s17 + $0x8] sm:$0xff]   ;;  %v5994_v22 = vld [vmem:[%s8361_s17 + $0x10] sm:$0xff]  }
0x1232   :  { %5403 = vmatprep.subr.bf16.mxu1 %v8398_v6  ;;  %5431 = vmatprep.subr.bf16.mxu0 %v8398_v6 }
0x1233   :  { %5411 = vmatprep.mubr.msk.bf16.mxu1 %vm6186_vm3, %v8398_v6  ;;  %5439 = vmatprep.mubr.msk.bf16.mxu0 %vm6186_vm3, %v8398_v6 }
0x1235   :  { %5404 = vmatpush3.bf16.msra.mxu1 %v5961_v17  ;;  %5432 = vmatpush3.bf16.msra.mxu0 %v5962_v43 }
0x1236   :  { %5405 = vmatprep.subr.bf16.mxu1 %v8398_v6  ;;  %5433 = vmatprep.subr.bf16.mxu0 %v8398_v6 }
0x1239   :  { %5406 = vmatpush3.bf16.msra.mxu1 %v5963_v46  ;;  %5434 = vmatpush3.bf16.msra.mxu0 %v5964_v15 }
0x123a   :  { %5407 = vmatprep.subr.bf16.mxu1 %v8398_v6  ;;  %5435 = vmatprep.subr.bf16.mxu0 %v8398_v6 }
0x123d   :  { %5408 = vmatpush3.bf16.msra.mxu1 %v5965_v21  ;;  %5436 = vmatpush3.bf16.msra.mxu0 %v5966_v49 }
0x123e   :  { %5409 = vmatprep.subr.bf16.mxu1 %v8398_v6  ;;  %5437 = vmatprep.subr.bf16.mxu0 %v8398_v6 }
0x1241   :  { %5410 = vmatpush3.bf16.msra.mxu1 %v5967_v24  ;;  %5438 = vmatpush3.bf16.msra.mxu0 %v5968_v4 }
0x1242   :  { %5415 = vmatprep.subr.bf16.mxu1 %v8398_v6  ;;  %5457 = vmatprep.subr.bf16.mxu0 %v8398_v6 }
0x1303   :  { %v4229_v33 = vpop.f32.mrb[60].mxu1  ;;  %v4269_v53 = vpop.f32.mrb[36].mxu0 }
0x1304   :  { %v4275_v28 = vmax.f32 %v4229_v33, %v4269_v53  ;;  %v4231_v38 = vpop.f32.mrb[61].mxu1  ;;  %v4271_v32 = vpop.f32.mrb[37].mxu0 }
0x1305   :  { %v4232_v41 = vpop.f32.mrb[62].mxu1  ;;  %v4272_v34 = vpop.f32.mrb[38].mxu0 }
0x1306   :  { %v4277_v2 = vrot.slane %v4275_v28, 7  ;;  %v4435_v44 = vrot.slane %v4275_v28, 1  ;;  %v4515_v30 = vrot.slane %v4275_v28, 2  ;;  %v4595_v37 = vrot.slane %v4275_v28, 3  ;;  %v4233_v40 = vpop.f32.mrb[63].mxu1  ;;  %v4273_v1 = vpop.f32.mrb[39].mxu0 }
0x1307   :  { %v4284_v54 = vsel %vm1151_vm8, %v4282_v45, %v4275_v28 }
0x1308   :  { %v4285_v52 = vpack.c.bf16 %v4284_v54, %v4284_v54  ;;  %v4437_v5 = vsel %vm1151_vm8, %v4433_v12, %v4435_v44  ;;  %v4279_v48 = vsel %vm1151_vm8, %v7653_v7, %v4277_v2  ;;  %v4597_v57 = vsel %vm1151_vm8, %v4593_v11, %v4595_v37  ;;  %v5972_v7 = vld [vmem:[%s8357_s13 + $0xa8] sm:$0xff]   ;;  %v5336_v37 = vld [vmem:[%s8358_s14] ss:$0 sm:$0xff] }
0x1309   :  { %v4438_v62 = vpack.c.bf16 %v4437_v5, %v4437_v5  ;;  %v4517_v63 = vsel %vm1151_vm8, %v4513_v50, %v4515_v30  ;;  %v4280_v39 = vpack.c.bf16 %v4279_v48, %v4279_v48  ;;  %v4598_v20 = vpack.c.bf16 %v4597_v57, %v4597_v57  ;;  %v5996_v5 = vld [vmem:[%s8361_s17 + $0x20] sm:$0xff]  }
0x130a   :  { %5412 = vmatmul.mubr.msk.bf16.vlgmr.msra.gmra.mrb[64].mxu1 %vm4316_vm4, %v4285_v52  ;;  %v4518_v51 = vpack.c.bf16 %v4517_v63, %v4517_v63  ;;  %v5337_v57 = vld [vmem:[%s8360_s16] ss:$0 sm:$0xff] }
0x130b   :  { %5416 = vmatpush3.bf16.msra.mxu1 %v5969_v27  ;;  %5440 = vmatmul.mubr.msk.bf16.vlgmr.msra.gmra.mrb[40].mxu0 %vm4316_vm4, %v4438_v62 }
0x130c   :  { %5458 = vmatpush3.bf16.msra.mxu0 %v5970_v42  ;;  %5417 = vmatprep.subr.bf16.mxu1 %v8398_v6  ;;  %v5997_v42 = vld [vmem:[%s8361_s17 + $0x28] ss:$0 sps:$4 sm:$0x33]   ;;  %s6187_s17 = smov [#allocation2]  }
0x130d   :  { %5459 = vmatprep.subr.bf16.mxu0 %v8398_v6  ;;  %5425 = vmatprep.mubr.msk.bf16.mxu1 %vm6186_vm3, %v8398_v6  ;;  %v4825_v48 = vsel %vm1763_vm11, %v5997_v42, 0  ;;  %s4874_s27 = sshll.u32 %s6187_s17, 4  ;;  %s4875_s27 = int_to_ptr.vmem [resolvable:$true] %s4874_s27 }
0x130e   :  { %5467 = vmatprep.mubr.msk.bf16.mxu0 %vm6186_vm3, %v8398_v6  ;;  %s6159_s16 = scalar_lea.vmem %s4875_s27, 32  ;;  %p6164_p1 = scmp.lt.s32.totalorder %s4875_s27, %s4875_s27 }
0x130f   :  { %5418 = vmatpush3.bf16.msra.mxu1 %v5971_v0  ;;  %p6160_p0 = scmp.ne.s32.totalorder %s4875_s27, %s6159_s16  ;;  %p6165_p2 = scmp.lt.s32.totalorder %s6159_s16, %s6159_s16 }
0x1310   :  { %5460 = vmatpush3.bf16.msra.mxu0 %v5972_v7  ;;  %5419 = vmatprep.subr.bf16.mxu1 %v8398_v6 }
0x1311   :  { %5461 = vmatprep.subr.bf16.mxu0 %v8398_v6  ;;  %p6166_p3 = por %p6165_p2, %p6164_p1 }
0x1313   :  { %5420 = vmatpush3.bf16.msra.mxu1 %v5973_v56  ;;  %p6167_p4 = pnand %p6166_p3, %p6160_p0 }
0x1314   :  { %5462 = vmatpush3.bf16.msra.mxu0 %v5974_v60  ;;  %5421 = vmatprep.subr.bf16.mxu1 %v8398_v6 }
0x1315   :  { %5463 = vmatprep.subr.bf16.mxu0 %v8398_v6 }
0x1317   :  { %5422 = vmatpush3.bf16.msra.mxu1 %v5975_v31 }
0x1318   :  { %5464 = vmatpush3.bf16.msra.mxu0 %v5976_v47  ;;  %5423 = vmatprep.subr.bf16.mxu1 %v8398_v6 }
0x1319   :  { %5465 = vmatprep.subr.bf16.mxu0 %v8398_v6 }
0x131b   :  { %5424 = vmatpush3.bf16.msra.mxu1 %v5977_v13 }
0x131c   :  { %5466 = vmatpush3.bf16.msra.mxu0 %v5978_v55  ;;  %5443 = vmatprep.subr.bf16.mxu1 %v8398_v6 }
0x131d   :  { %5491 = vmatprep.subr.bf16.mxu0 %v8398_v6 }
0x131e   :  { %5426 = vmatmul.mubr.msk.bf16.vlgmr.msra.gmra.mrb[68].mxu1 %vm4316_vm4, %v4280_v39 }
0x131f   :  { %5444 = vmatpush3.bf16.msra.mxu1 %v5979_v36  ;;  %5468 = vmatmul.mubr.msk.bf16.vlgmr.msra.gmra.mrb[44].mxu0 %vm4316_vm4, %v4598_v20 }
0x1320   :  { %5445 = vmatprep.subr.bf16.mxu1 %v8398_v6  ;;  %5453 = vmatprep.mubr.msk.bf16.mxu1 %vm6186_vm3, %v8398_v6 }
0x1321   :  { %5503 = vmatprep.mubr.msk.bf16.mxu0 %vm6186_vm3, %v8398_v6  ;;  %5492 = vmatpush3.bf16.msra.mxu0 %v5992_v8 }
0x1322   :  { %5493 = vmatprep.subr.bf16.mxu0 %v8398_v6 }
0x1323   :  { %5446 = vmatpush3.bf16.msra.mxu1 %v5980_v26 }
0x1324   :  { %5447 = vmatprep.subr.bf16.mxu1 %v8398_v6 }
0x1325   :  { %5494 = vmatpush3.bf16.msra.mxu0 %v5993_v9 }
0x1326   :  { %5495 = vmatprep.subr.bf16.mxu0 %v8398_v6 }
0x1327   :  { %5448 = vmatpush3.bf16.msra.mxu1 %v5981_v35 }
0x1328   :  { %5449 = vmatprep.subr.bf16.mxu1 %v8398_v6 }
0x1329   :  { %5496 = vmatpush3.bf16.msra.mxu0 %v5994_v22 }
0x132a   :  { %5497 = vmatprep.subr.bf16.mxu0 %v8398_v6 }
0x132b   :  { %5450 = vmatpush3.bf16.msra.mxu1 %v5982_v16 }
0x132c   :  { %5451 = vmatprep.subr.bf16.mxu1 %v8398_v6 }
0x132d   :  { %5498 = vmatpush3.bf16.msra.mxu0 %v5995_v14 }
0x132e   :  { %5499 = vmatprep.subr.bf16.mxu0 %v8398_v6 }
0x132f   :  { %5452 = vmatpush3.bf16.msra.mxu1 %v5983_v19 }
0x1330   :  { %5471 = vmatprep.subr.bf16.mxu1 %v8398_v6 }
0x1331   :  { %5500 = vmatpush3.bf16.msra.mxu0 %v5996_v5 }
0x1332   :  { %5454 = vmatmul.mubr.msk.bf16.vlgmr.msra.gmra.mrb[72].mxu1 %vm4316_vm4, %v4518_v51  ;;  %5501 = vmatprep.subr.bf16.mxu0 %v8398_v6 }
0x1333   :  { %5487 = vmatprep.mubr.msk.bf16.mxu1 %vm6186_vm3, %v8398_v6  ;;  %5472 = vmatpush3.bf16.msra.mxu1 %v5984_v61 }
0x1334   :  { %5473 = vmatprep.subr.bf16.mxu1 %v8398_v6 }
0x1335   :  { %5502 = vmatpush3.bf16.msra.mxu0 %v4825_v48 }
0x1337   :  { %5474 = vmatpush3.bf16.msra.mxu1 %v5985_v18 }
0x1338   :  { %5475 = vmatprep.subr.bf16.mxu1 %v8398_v6 }
0x133b   :  { %5476 = vmatpush3.bf16.msra.mxu1 %v5986_v59 }
0x133c   :  { %5477 = vmatprep.subr.bf16.mxu1 %v8398_v6 }
0x133f   :  { %5478 = vmatpush3.bf16.msra.mxu1 %v5987_v29 }
0x1340   :  { %5479 = vmatprep.subr.bf16.mxu1 %v8398_v6 }
0x1343   :  { %5480 = vmatpush3.bf16.msra.mxu1 %v5988_v25 }
0x1344   :  { %5481 = vmatprep.subr.bf16.mxu1 %v8398_v6 }
0x1347   :  { %5482 = vmatpush3.bf16.msra.mxu1 %v5989_v23 }
0x1348   :  { %5483 = vmatprep.subr.bf16.mxu1 %v8398_v6 }
0x134b   :  { %5484 = vmatpush3.bf16.msra.mxu1 %v5990_v3 }
0x134c   :  { %5485 = vmatprep.subr.bf16.mxu1 %v8398_v6  ;;  %v5347_v6 = vld [vmem:[%s8362_s18] ss:$0 sm:$0xff] }
0x134f   :  { %5486 = vmatpush3.bf16.msra.mxu1 %v4738_v10 }
0x13dd   :  { %v4354_v17 = vpop.f32.mrb[64].mxu1 }
0x13de   :  { %v5413_v43 = vpop.f32.mrb[65].mxu1  ;;  %v4506_v46 = vpop.f32.mrb[40].mxu0 }
0x13df   :  { %v4357_v15 = vpop.f32.mrb[66].mxu1  ;;  %v5441_v21 = vpop.f32.mrb[41].mxu0 }
0x13e0   :  { %v5414_v49 = vpop.f32.mrb[67].mxu1  ;;  %v4509_v24 = vpop.f32.mrb[42].mxu0 }
0x13e1   :  { %v5442_v4 = vpop.f32.mrb[43].mxu0 }
0x13f1   :  { %v4427_v33 = vpop.f32.mrb[68].mxu1 }
0x13f2   :  { %v4428_v53 = vadd.f32 %v4427_v33, %v4354_v17  ;;  %v5427_v28 = vpop.f32.mrb[69].mxu1  ;;  %v4666_v38 = vpop.f32.mrb[44].mxu0 }
0x13f3   :  { %v4430_v32 = vpop.f32.mrb[70].mxu1  ;;  %v5469_v45 = vpop.f32.mrb[45].mxu0 }
0x13f4   :  { %v5428_v12 = vpop.f32.mrb[71].mxu1  ;;  %v4669_v11 = vpop.f32.mrb[46].mxu0  ;;  %v4512_v41 = vadd.f32 %v4506_v46, %v4428_v53 }
0x13f5   :  { %v5470_v34 = vpop.f32.mrb[47].mxu0 }
0x1405   :  { %v4586_v2 = vpop.f32.mrb[72].mxu1 }
0x1406   :  { %v4592_v44 = vadd.f32 %v4586_v2, %v4512_v41  ;;  %v5455_v30 = vpop.f32.mrb[73].mxu1 }
0x1407   :  { %v4589_v40 = vpop.f32.mrb[74].mxu1 }
0x1408   :  { %v4672_v1 = vadd.f32 %v4666_v38, %v4592_v44  ;;  %v5456_v50 = vpop.f32.mrb[75].mxu1 }
0x140a   :  { %v4679_v54 = vadd.f32 %v5336_v37, %v4672_v1 }
0x140c   :  { %v4680_v27 = vmax.f32 %v4679_v54, 0.0 }
0x140e   :  { %v4681_v52 = vpack.c.bf16 %v4680_v27, %v4680_v27 }
0x1410   :  { %5488 = vmatmul.mubr.msk.bf16.vlgmr.msra.gmra.mrb[76].mxu1 %vm4733_vm5, %v4681_v52 }
0x14e3   :  { %v4774_v62 = vpop.f32.mrb[76].mxu1 }
0x14e4   :  { %v4775_v63 = vadd.f32 %v5337_v57, %v4774_v62  ;;  %v5489_v0 = vpop.f32.mrb[77].mxu1 }
0x14e5   :  { %v4777_v7 = vpop.f32.mrb[78].mxu1 }
0x14e6   :  { %v4780_v56 = vmax.f32 %v4775_v63, 0.0  ;;  %v5490_v60 = vpop.f32.mrb[79].mxu1 }
0x14e8   :  { %v4781_v31 = vpack.c.bf16 %v4780_v56, %v4780_v56 }
0x14ea   :  { %5504 = vmatmul.mubr.msk.bf16.vlgmr.msra.gmra.mrb[48].mxu0 %vm1759_vm12, %v4781_v31 }
0x15bd   :  { %v4861_v47 = vpop.f32.mrb[48].mxu0 }
0x15be   :  { %v4862_v13 = vadd.f32 %v5347_v6, %v4861_v47  ;;  %v5505_v55 = vpop.f32.mrb[49].mxu0 }
0x15bf   :  { %v4864_v36 = vpop.f32.mrb[50].mxu0 }
0x15c0   :  { %4867 = vst [vmem:[#allocation2] sm:$0x3] %v4862_v13  ;;  %v5506_v39 = vpop.f32.mrb[51].mxu0 }
0x15c1   :  { %6170 = shalt.err (!%p6167_p4)
}
0x15c2   :  { %s6171_s18 = scalar_lea.hbm %s8363_s19, 32 }
0x15c3   :  { %p6172_p5 = scmp.ne.s32.totalorder %s8363_s19, %s6171_s18  ;;  %p6175_p6 = scmp.lt.u32.totalorder %s6171_s18, %s8363_s19 }
0x15c5   :  { %p6177_p7 = pnand %p6175_p6, %p6172_p5 }
0x15c7   :  { %6180 = shalt.err (!%p6177_p7)
}
0x15c8   :  { %4877 = dma.vmem_to_hbm [thread:$0]  %s4875_s27, 32, %s8363_s19, [#allocation3]  }
0x15c9   :  { %6181 = dma.done.wait [#allocation3], 32  }
0x15ca   :  { %6182 = vsyncadd [#allocation3], 4294967264 }
0x15cb   :  { %4881 = vsyncpa [#allocation3], 1 }

</bundles_post_ra>
